<compile_context>
chip_gen: v7x
topology: tpu7x:2x2x1
jax: 0.10.0
libtpu: 0.0.40
codegen_flags: <defaults>
</compile_context>

<pallas_src>
import functools
import math

import jax
import jax.numpy as jnp
from jax.experimental import pallas as pl
from jax.experimental.pallas import tpu as pltpu


# ---------------------------------------------------------------------------
# Pallas kernel: one block of bb batch elements -> (bb, 224, 256) dB-resized mels
# ---------------------------------------------------------------------------
def _mel_kernel(frames_ref, wdft_ref, melfb_ref, wmelT_ref, wtime_ref, out_ref,
                *, bb, n_frames, nfp):
    f = frames_ref[0]                                     # (bb*n_frames, n_fft) bf16

    # Windowed DFT: cos and -sin fused into one RHS -> single MXU pass over frames.
    y = jnp.dot(f, wdft_ref[...], preferred_element_type=jnp.float32)   # (R, 2*nfp)
    re = y[:, :nfp]
    im = y[:, nfp:]
    power = re * re + im * im                             # (R, nfp) f32

    # Mel filterbank (zero-padded rows beyond n_freqs contribute nothing).
    mel = jnp.dot(power.astype(jnp.bfloat16), melfb_ref[...],
                  preferred_element_type=jnp.float32)     # (R, n_mels)

    # AmplitudeToDB(power, top_db=None): 10*log10(clamp(x, 1e-10)).
    # Only the natural log stays here (EUP); the 10/ln(10) scale is folded into wmelT.
    db = jnp.log(jnp.maximum(mel, 1e-10))                 # (R, n_mels)

    # Bilinear resize along the mel axis for all (batch, frame) rows at once.
    u = jnp.dot(db, wmelT_ref[...], preferred_element_type=jnp.float32)  # (R, 256)

    # Bilinear resize along the time axis, per batch element in this block.
    wt = wtime_ref[...]                                   # (224, n_frames)
    for b in range(bb):
        u_b = u[b * n_frames:(b + 1) * n_frames, :]       # (n_frames, 256)
        out_ref[b] = jnp.dot(wt, u_b, preferred_element_type=jnp.float32)  # (224, 256)


# ---------------------------------------------------------------------------
# Deterministic "parameter" construction (pure functions of the config)
# ---------------------------------------------------------------------------
def _round_up(x, m):
    return (x + m - 1) // m * m


def _dft_weights(n_fft, n_freqs, n_freqs_pad):
    # Windowed DFT matrices [cos | -sin]; frequency axis zero-padded to a lane multiple.
    n = jnp.arange(n_fft, dtype=jnp.int32)
    k = jnp.arange(n_freqs, dtype=jnp.int32)
    # Reduce n*k mod n_fft in integer arithmetic before scaling (phase accuracy).
    phase = (n[:, None] * k[None, :]) % n_fft
    ang = phase.astype(jnp.float32) * (2.0 * jnp.pi / n_fft)
    nf32 = n.astype(jnp.float32)
    win = 0.5 * (1.0 - jnp.cos(2.0 * jnp.pi * nf32 / n_fft))   # periodic Hann
    wcos = win[:, None] * jnp.cos(ang)
    wsin = -win[:, None] * jnp.sin(ang)
    pad = n_freqs_pad - n_freqs
    wcos = jnp.pad(wcos, ((0, 0), (0, pad)))
    wsin = jnp.pad(wsin, ((0, 0), (0, pad)))
    return jnp.concatenate([wcos, wsin], axis=1).astype(jnp.bfloat16)   # (n_fft, 2*Fp)


def _mel_filterbank(n_freqs, n_freqs_pad, n_mels, sample_rate, f_min=0.0, f_max=None):
    # torchaudio melscale_fbanks with mel_scale='htk', norm=None; rows padded to Fp.
    if f_max is None:
        f_max = float(sample_rate // 2)

    def hz_to_mel(f):
        return 2595.0 * jnp.log10(1.0 + f / 700.0)

    def mel_to_hz(m):
        return 700.0 * (jnp.power(10.0, m / 2595.0) - 1.0)

    all_freqs = jnp.linspace(0.0, sample_rate // 2, n_freqs)
    m_pts = jnp.linspace(hz_to_mel(jnp.asarray(f_min)),
                         hz_to_mel(jnp.asarray(f_max)), n_mels + 2)
    f_pts = mel_to_hz(m_pts)
    f_diff = f_pts[1:] - f_pts[:-1]
    slopes = f_pts[None, :] - all_freqs[:, None]          # (n_freqs, n_mels+2)
    down = (-slopes[:, :-2]) / f_diff[:-1]
    up = slopes[:, 2:] / f_diff[1:]
    fb = jnp.maximum(jnp.minimum(down, up), 0.0)          # (n_freqs, n_mels)
    fb = jnp.pad(fb, ((0, n_freqs_pad - n_freqs), (0, 0)))
    return fb.astype(jnp.bfloat16)


def _interp_matrix(in_size, out_size):
    # bilinear, align_corners=True: src = i * (in-1)/(out-1)
    if in_size == 1:
        return jnp.ones((out_size, 1), jnp.float32)
    pos = jnp.arange(out_size, dtype=jnp.float32) * (in_size - 1) / (out_size - 1)
    lo = jnp.clip(jnp.floor(pos).astype(jnp.int32), 0, in_size - 2)
    frac = pos - lo.astype(jnp.float32)
    rows = jnp.arange(out_size)
    w = jnp.zeros((out_size, in_size), jnp.float32)
    w = w.at[rows, lo].add(1.0 - frac)
    w = w.at[rows, lo + 1].add(frac)
    return w


def _pick_batch_block(batch, n_frames, target_rows=256, max_bb=32):
    # Largest divisor of the batch such that the stacked M-dim is <= target_rows,
    # keeping >= 2 grid steps when possible (v7x megacore / pipelining).
    divisors = [d for d in range(1, batch + 1) if batch % d == 0]
    cands = [d for d in divisors if d * n_frames <= target_rows and d <= max_bb] or [1]
    bb = max(cands)
    two_step = [d for d in cands if batch // d >= 2]
    if batch // bb < 2 and two_step:
        bb = max(two_step)
    return bb


# ---------------------------------------------------------------------------
# Wrapper
# ---------------------------------------------------------------------------
def mel_extractor_forward(x, *, sample_rate=22050, n_fft=1024, hop_length=512,
                          n_mels=128, out_size=224):
    x = x.astype(jnp.float32)
    B, _ = x.shape
    n_freqs = n_fft // 2 + 1
    nfp = _round_up(n_freqs, 128)            # 640 for n_fft=1024
    outp = _round_up(out_size, 128)          # 256

    # Spectrogram(center=True, pad_mode='reflect'): reflect-pad, then frame.
    pad = n_fft // 2
    x_pad = jnp.pad(x, ((0, 0), (pad, pad)), mode="reflect")
    L = x_pad.shape[1]
    n_frames = 1 + (L - n_fft) // hop_length
    if n_fft % hop_length == 0:
        # hop divides n_fft: build frames from contiguous hop-sized chunks (no gather).
        r = n_fft // hop_length
        n_chunks = n_frames + r - 1
        c = x_pad[:, :n_chunks * hop_length].reshape(B, n_chunks, hop_length)
        frames = jnp.concatenate([c[:, i:i + n_frames] for i in range(r)], axis=-1)
    else:
        starts = jnp.arange(n_frames) * hop_length
        idx = starts[:, None] + jnp.arange(n_fft)[None, :]
        frames = x_pad[:, idx]                              # (B, n_frames, n_fft)

    # Batch-block the frames so the MXU M-dimension is well filled.
    bb = _pick_batch_block(B, n_frames)
    G = B // bb
    R = bb * n_frames
    frames = frames.reshape(G, R, n_fft).astype(jnp.bfloat16)

    wdft = _dft_weights(n_fft, n_freqs, nfp)                        # (n_fft, 2*nfp) bf16
    melfb = _mel_filterbank(n_freqs, nfp, n_mels, sample_rate)      # (nfp, n_mels) bf16
    # Mel-axis resize weights: transposed (plain A@B), dB scale folded in, lane-padded.
    wmelT = _interp_matrix(n_mels, out_size).T * (10.0 / math.log(10.0))
    wmelT = jnp.pad(wmelT, ((0, 0), (0, outp - out_size))).astype(jnp.float32)
    wtime = _interp_matrix(n_frames, out_size)                      # (224, n_frames)

    kernel = functools.partial(_mel_kernel, bb=bb, n_frames=n_frames, nfp=nfp)

    out = pl.pallas_call(
        kernel,
        out_shape=jax.ShapeDtypeStruct((B, out_size, outp), jnp.float32),
        grid_spec=pltpu.PrefetchScalarGridSpec(
            num_scalar_prefetch=0,
            grid=(G,),
            in_specs=[
                pl.BlockSpec((1, R, n_fft), lambda g: (g, 0, 0)),
                pl.BlockSpec((n_fft, 2 * nfp), lambda g: (0, 0)),
                pl.BlockSpec((nfp, n_mels), lambda g: (0, 0)),
                pl.BlockSpec((n_mels, outp), lambda g: (0, 0)),
                pl.BlockSpec((out_size, n_frames), lambda g: (0, 0)),
            ],
            out_specs=pl.BlockSpec((bb, out_size, outp), lambda g: (g, 0, 0)),
        ),
        compiler_params=pltpu.CompilerParams(
            dimension_semantics=("parallel",),
            vmem_limit_bytes=48 << 20,        # fits v7x's 64 MiB VMEM with headroom
        ),
    )(frames, wdft, melfb, wmelT, wtime)

    # Kernel output is (B, 224_time, 256_mel): crop lanes, swap to (mel, time),
    # then ch_expand == 'copy' (3x duplication) — cheap XLA glue.
    out = jnp.transpose(out[:, :, :out_size], (0, 2, 1))    # (B, 224_mel, 224_time)
    out = jnp.broadcast_to(out[:, None, :, :], (B, 3, out_size, out_size))
    return out


if __name__ == "__main__":
    key = jax.random.PRNGKey(0)
    B, T = 8, 3584                        # 8 small clips -> n_frames = 8 each
    x = jax.random.normal(key, (B, T), dtype=jnp.float32)

    y = mel_extractor_forward(x)
    jax.block_until_ready(y)

    assert y.shape == (B, 3, 224, 224), y.shape
    assert y.dtype == jnp.float32
    assert bool(jnp.all(jnp.isfinite(y)))
    print("KERNEL_OK")
</pallas_src>

<mosaic_0001>
module attributes {stable_mosaic.version = 11 : i64} {
  func.func @_mel_kernel(%arg0: i32, %arg1: memref<1x32x1024xbf16, #tpu.memory_space<vmem>>, %arg2: memref<1024x1280xbf16, #tpu.memory_space<vmem>>, %arg3: memref<640x128xbf16, #tpu.memory_space<vmem>>, %arg4: memref<128x256xf32, #tpu.memory_space<vmem>>, %arg5: memref<224x8xf32, #tpu.memory_space<vmem>>, %arg6: memref<4x224x256xf32, #tpu.memory_space<vmem>>) attributes {dimension_semantics = [#tpu.dimension_semantics<parallel>], iteration_bounds = array<i64: 2>, scalar_prefetch = 0 : i64, scratch_operands = 0 : i64, tpu.core_type = #tpu.core_type<tc>, window_params = [{transform_indices = @transform_0, window_bounds = array<i64: 1, 32, 1024>}, {pipeline_mode = #tpu.pipeline_mode<synchronous>, transform_indices = @transform_1, window_bounds = array<i64: 1024, 1280>}, {pipeline_mode = #tpu.pipeline_mode<synchronous>, transform_indices = @transform_2, window_bounds = array<i64: 640, 128>}, {pipeline_mode = #tpu.pipeline_mode<synchronous>, transform_indices = @transform_3, window_bounds = array<i64: 128, 256>}, {pipeline_mode = #tpu.pipeline_mode<synchronous>, transform_indices = @transform_4, window_bounds = array<i64: 224, 8>}, {transform_indices = @transform_5, window_bounds = array<i64: 4, 224, 256>}]} {
    %c0 = arith.constant 0 : index
    %c0_0 = arith.constant 0 : index
    %c0_1 = arith.constant 0 : index
    %0 = vector.load %arg1[%c0, %c0_0, %c0_1] : memref<1x32x1024xbf16, #tpu.memory_space<vmem>>, vector<1x32x1024xbf16>
    %1 = vector.shape_cast %0 : vector<1x32x1024xbf16> to vector<32x1024xbf16>
    %c0_2 = arith.constant 0 : index
    %c0_3 = arith.constant 0 : index
    %2 = vector.load %arg2[%c0_2, %c0_3] : memref<1024x1280xbf16, #tpu.memory_space<vmem>>, vector<1024x1280xbf16>
    %cst = arith.constant dense<0.000000e+00> : vector<32x1280xf32>
    %3 = tpu.matmul %1, %2, %cst {dimension_numbers = #tpu.dot_dimension_numbers<[1], [0], [0], [1], [0, 0, 1, 1], [], []>} : vector<32x1024xbf16>, vector<1024x1280xbf16>, vector<32x1280xf32> -> vector<32x1280xf32>
    %4 = vector.extract_strided_slice %3 {offsets = [0, 0], sizes = [32, 640], strides = [1, 1]} : vector<32x1280xf32> to vector<32x640xf32>
    %5 = vector.extract_strided_slice %3 {offsets = [0, 640], sizes = [32, 640], strides = [1, 1]} : vector<32x1280xf32> to vector<32x640xf32>
    %6 = arith.mulf %4, %4 : vector<32x640xf32>
    %7 = arith.mulf %5, %5 : vector<32x640xf32>
    %8 = arith.addf %6, %7 : vector<32x640xf32>
    %9 = arith.truncf %8 : vector<32x640xf32> to vector<32x640xbf16>
    %c0_4 = arith.constant 0 : index
    %c0_5 = arith.constant 0 : index
    %10 = vector.load %arg3[%c0_4, %c0_5] : memref<640x128xbf16, #tpu.memory_space<vmem>>, vector<640x128xbf16>
    %cst_6 = arith.constant dense<0.000000e+00> : vector<32x128xf32>
    %11 = tpu.matmul %9, %10, %cst_6 {dimension_numbers = #tpu.dot_dimension_numbers<[1], [0], [0], [1], [0, 0, 1, 1], [], []>} : vector<32x640xbf16>, vector<640x128xbf16>, vector<32x128xf32> -> vector<32x128xf32>
    %cst_7 = arith.constant 1.000000e-10 : f32
    %12 = vector.broadcast %cst_7 : f32 to vector<32x128xf32>
    %13 = arith.maximumf %11, %12 : vector<32x128xf32>
    %14 = math.log %13 : vector<32x128xf32>
    %c0_8 = arith.constant 0 : index
    %c0_9 = arith.constant 0 : index
    %15 = vector.load %arg4[%c0_8, %c0_9] : memref<128x256xf32, #tpu.memory_space<vmem>>, vector<128x256xf32>
    %cst_10 = arith.constant dense<0.000000e+00> : vector<32x256xf32>
    %16 = tpu.matmul %14, %15, %cst_10 {dimension_numbers = #tpu.dot_dimension_numbers<[1], [0], [0], [1], [0, 0, 1, 1], [], []>} : vector<32x128xf32>, vector<128x256xf32>, vector<32x256xf32> -> vector<32x256xf32>
    %c0_11 = arith.constant 0 : index
    %c0_12 = arith.constant 0 : index
    %17 = vector.load %arg5[%c0_11, %c0_12] : memref<224x8xf32, #tpu.memory_space<vmem>>, vector<224x8xf32>
    %18 = vector.extract_strided_slice %16 {offsets = [0, 0], sizes = [8, 256], strides = [1, 1]} : vector<32x256xf32> to vector<8x256xf32>
    %cst_13 = arith.constant dense<0.000000e+00> : vector<224x256xf32>
    %19 = tpu.matmul %17, %18, %cst_13 {dimension_numbers = #tpu.dot_dimension_numbers<[1], [0], [0], [1], [0, 0, 1, 1], [], []>} : vector<224x8xf32>, vector<8x256xf32>, vector<224x256xf32> -> vector<224x256xf32>
    %c0_14 = arith.constant 0 : index
    %c0_15 = arith.constant 0 : index
    %c0_16 = arith.constant 0 : index
    %20 = vector.load %arg6[%c0_14, %c0_15, %c0_16] : memref<4x224x256xf32, #tpu.memory_space<vmem>>, vector<1x224x256xf32>
    %21 = vector.shape_cast %20 : vector<1x224x256xf32> to vector<224x256xf32>
    %22 = vector.shape_cast %19 : vector<224x256xf32> to vector<1x224x256xf32>
    tpu.vector_store %arg6[%c0_14, %c0_15, %c0_16], %22 {strides = array<i32>} : memref<4x224x256xf32, #tpu.memory_space<vmem>>, vector<1x224x256xf32>,
    %23 = vector.extract_strided_slice %16 {offsets = [8, 0], sizes = [8, 256], strides = [1, 1]} : vector<32x256xf32> to vector<8x256xf32>
    %cst_17 = arith.constant dense<0.000000e+00> : vector<224x256xf32>
    %24 = tpu.matmul %17, %23, %cst_17 {dimension_numbers = #tpu.dot_dimension_numbers<[1], [0], [0], [1], [0, 0, 1, 1], [], []>} : vector<224x8xf32>, vector<8x256xf32>, vector<224x256xf32> -> vector<224x256xf32>
    %c1 = arith.constant 1 : index
    %c0_18 = arith.constant 0 : index
    %c0_19 = arith.constant 0 : index
    %25 = vector.load %arg6[%c1, %c0_18, %c0_19] : memref<4x224x256xf32, #tpu.memory_space<vmem>>, vector<1x224x256xf32>
    %26 = vector.shape_cast %25 : vector<1x224x256xf32> to vector<224x256xf32>
    %27 = vector.shape_cast %24 : vector<224x256xf32> to vector<1x224x256xf32>
    tpu.vector_store %arg6[%c1, %c0_18, %c0_19], %27 {strides = array<i32>} : memref<4x224x256xf32, #tpu.memory_space<vmem>>, vector<1x224x256xf32>,
    %28 = vector.extract_strided_slice %16 {offsets = [16, 0], sizes = [8, 256], strides = [1, 1]} : vector<32x256xf32> to vector<8x256xf32>
    %cst_20 = arith.constant dense<0.000000e+00> : vector<224x256xf32>
    %29 = tpu.matmul %17, %28, %cst_20 {dimension_numbers = #tpu.dot_dimension_numbers<[1], [0], [0], [1], [0, 0, 1, 1], [], []>} : vector<224x8xf32>, vector<8x256xf32>, vector<224x256xf32> -> vector<224x256xf32>
    %c2 = arith.constant 2 : index
    %c0_21 = arith.constant 0 : index
    %c0_22 = arith.constant 0 : index
    %30 = vector.load %arg6[%c2, %c0_21, %c0_22] : memref<4x224x256xf32, #tpu.memory_space<vmem>>, vector<1x224x256xf32>
    %31 = vector.shape_cast %30 : vector<1x224x256xf32> to vector<224x256xf32>
    %32 = vector.shape_cast %29 : vector<224x256xf32> to vector<1x224x256xf32>
    tpu.vector_store %arg6[%c2, %c0_21, %c0_22], %32 {strides = array<i32>} : memref<4x224x256xf32, #tpu.memory_space<vmem>>, vector<1x224x256xf32>,
    %33 = vector.extract_strided_slice %16 {offsets = [24, 0], sizes = [8, 256], strides = [1, 1]} : vector<32x256xf32> to vector<8x256xf32>
    %cst_23 = arith.constant dense<0.000000e+00> : vector<224x256xf32>
    %34 = tpu.matmul %17, %33, %cst_23 {dimension_numbers = #tpu.dot_dimension_numbers<[1], [0], [0], [1], [0, 0, 1, 1], [], []>} : vector<224x8xf32>, vector<8x256xf32>, vector<224x256xf32> -> vector<224x256xf32>
    %c3 = arith.constant 3 : index
    %c0_24 = arith.constant 0 : index
    %c0_25 = arith.constant 0 : index
    %35 = vector.load %arg6[%c3, %c0_24, %c0_25] : memref<4x224x256xf32, #tpu.memory_space<vmem>>, vector<1x224x256xf32>
    %36 = vector.shape_cast %35 : vector<1x224x256xf32> to vector<224x256xf32>
    %37 = vector.shape_cast %34 : vector<224x256xf32> to vector<1x224x256xf32>
    tpu.vector_store %arg6[%c3, %c0_24, %c0_25], %37 {strides = array<i32>} : memref<4x224x256xf32, #tpu.memory_space<vmem>>, vector<1x224x256xf32>,
    return
  }
  func.func @transform_0(%arg0: i32) -> (i32, i32, i32) {
    %c0_i32 = arith.constant 0 : i32
    %c0_i32_0 = arith.constant 0 : i32
    %c0_i32_1 = arith.constant 0 : i32
    return %arg0, %c0_i32, %c0_i32_0 : i32, i32, i32
  }
  func.func @transform_1(%arg0: i32) -> (i32, i32) {
    %c0_i32 = arith.constant 0 : i32
    %c0_i32_0 = arith.constant 0 : i32
    %c0_i32_1 = arith.constant 0 : i32
    return %c0_i32, %c0_i32_0 : i32, i32
  }
  func.func @transform_2(%arg0: i32) -> (i32, i32) {
    %c0_i32 = arith.constant 0 : i32
    %c0_i32_0 = arith.constant 0 : i32
    %c0_i32_1 = arith.constant 0 : i32
    return %c0_i32, %c0_i32_0 : i32, i32
  }
  func.func @transform_3(%arg0: i32) -> (i32, i32) {
    %c0_i32 = arith.constant 0 : i32
    %c0_i32_0 = arith.constant 0 : i32
    %c0_i32_1 = arith.constant 0 : i32
    return %c0_i32, %c0_i32_0 : i32, i32
  }
  func.func @transform_4(%arg0: i32) -> (i32, i32) {
    %c0_i32 = arith.constant 0 : i32
    %c0_i32_0 = arith.constant 0 : i32
    %c0_i32_1 = arith.constant 0 : i32
    return %c0_i32, %c0_i32_0 : i32, i32
  }
  func.func @transform_5(%arg0: i32) -> (i32, i32, i32) {
    %c0_i32 = arith.constant 0 : i32
    %c0_i32_0 = arith.constant 0 : i32
    %c0_i32_1 = arith.constant 0 : i32
    return %arg0, %c0_i32, %c0_i32_0 : i32, i32, i32
  }
}

</mosaic_0001>

<bundles_post_ra>
// kernel: tpu_custom_call.1
= control target key start
LH: loop header
LB: loop body
LE: loop exit
PB: predicated region body
PF: predicated region fallthrough
CT: control target
= control target key end

     0   :  { %10 = vsyncpa [#allocation3], 0  ;;  %s11145_s0 = inlined_call_operand.hbm [shape: bf16[2,32,1024], index: 0, kind: input, shape index: {}]   ;;  %s11146_s1 = inlined_call_operand.hbm [shape: bf16[1024,1280], index: 1, kind: input, shape index: {}]   ;;  %s11147_s2 = inlined_call_operand.hbm [shape: bf16[640,128], index: 2, kind: input, shape index: {}]   ;;  %s11148_s3 = inlined_call_operand.hbm [shape: f32[128,256], index: 3, kind: input, shape index: {}]   ;;  %s11149_s4 = inlined_call_operand.vmem [shape: f32[224,8], index: 4, kind: input, shape index: {}]   ;;  %s11150_s5 = inlined_call_operand.hbm [shape: f32[8,224,256], index: 5, kind: output, shape index: {}]  }
   0x1   :  { %12 = vsyncpa [#allocation3 + $0x1], 0 }
   0x2   :  { %13 = vsyncpa [#allocation6], 0 }
   0x3   :  { %14 = vsyncpa [#allocation9], 0 }
   0x4   :  { %15 = vsyncpa [#allocation4], 0 }
   0x5   :  { %17 = vsyncpa [#allocation4 + $0x1], 0  ;;  %s9914_s18 = smov 0   ;;  %s9916_s19 = smov 0  }
   0x6   :  { %s9918_s20 = smov 0   ;;  %s9920_s21 = smov 0  }
   0x7 LB: > { %s9935_s22 = sadd.s32 4294967295, %s9866_s21   ;;  %s7344_s23 = sadd.s32 4294967294, %s9866_s21   ;;  %s9866_s21 = sphi %s9920_s21, %s11173_s21   ;;  %s9862_s20 = sphi %s9918_s20, %s11172_s20   ;;  %s9858_s19 = sphi %s9916_s19, %s11171_s19   ;;  %s9854_s18 = sphi %s9914_s18, %s11170_s18  }
   0x8   : > { %p43_p0 = scmp.ne.s32.totalorder %s9858_s19, %s9854_s18  ;;  %p11151_p1 = scmp.eq.s32.totalorder %s9935_s22, 0 }
   0x9   : > { %p157_p3 = scmp.eq.s32.totalorder %s7344_s23, 1  ;;  %p7345_p5 = scmp.ge.s32.totalorder %s9866_s21, 1 }
   0xa   : > { %p9944_p4 = por %p11151_p1, %p43_p0  ;;  %p164_p7 = scmp.lt.s32.totalorder %s9866_s21, 3 }
   0xb   : > { %p9949_p6 = por %p157_p3, %p43_p0  ;;  %s9868_s27 = smov [#allocation5]  }
   0xc   : > { %s11154_s24 = scalar_select %p9944_p4, 1, 0 }
   0xd   : > { %s11155_s25 = scalar_select %p9949_p6, 1, 0 }
   0xe   : > { %p9954_p8 = pnand %p7345_p5, %p164_p7  ;;  %s176_s28 = sshll.u32 %s9868_s27, 4  ;;  %s9958_s28 = int_to_ptr.vmem [resolvable:$true] %s176_s28 }
   0xf   : > { %s9869_s30 = smov [#allocation7]   ;;  %s9678_s9 = scalar_lea.hbm %s11146_s1, 81920 }
  0x10   : > { %s11156_s26 = scalar_select %p9954_p8, 1, 0 }
  0x11   : > { %p8598_p9 = pneg %p9954_p8  ;;  %s189_s6 = sshll.u32 %s9869_s30, 4  ;;  %s9969_s6 = int_to_ptr.vmem [resolvable:$true] %s189_s6 }
  0x12   : > { %p9679_p12 = scmp.ne.s32.totalorder %s11146_s1, %s9678_s9  ;;  %p9685_p5 = scmp.lt.u32.totalorder %s9678_s9, %s11146_s1 }
  0x13   : > { %p9965_p11 = pnand %p8598_p9, %p11151_p1 }
  0x15   : > { %p9979_p13 = pneg %p9965_p11 }
  0x17   : > { %p9681_p0 = pnand %p9979_p13, %p9679_p12 }
  0x19   : > { %p9682_p3 = pneg %p9681_p0 }
  0x1b   : > { %p9687_p7 = pnand %p9685_p5, %p9682_p3 }
  0x1d   : > { %9690 = shalt.err (!%p9687_p7)
}
  0x1e   : > { %s9691_s15 = scalar_lea.vmem %s9958_s28, 81920  ;;  %p9699_p2 = scmp.lt.s32.totalorder %s9958_s28, %s9958_s28 }
  0x1f   : > { %p9692_p9 = scmp.ne.s32.totalorder %s9958_s28, %s9691_s15  ;;  %p9700_p6 = scmp.lt.s32.totalorder %s9691_s15, %s9691_s15 }
  0x21   : > { %p9694_p10 = pnand %p9692_p9, %p9979_p13  ;;  %p9701_p12 = por %p9700_p6, %p9699_p2 }
  0x23   : > { %p9695_p1 = pneg %p9694_p10 }
  0x25   : > { %p9702_p0 = pnand %p9701_p12, %p9695_p1 }
  0x27   : > { %9705 = shalt.err (!%p9702_p0)
}
  0x28   : > { %s9870_s16 = smov 640   ;;  %s9871_s17 = smov 40  }
  0x29   : > { %8601 = dma.hbm_to_vmem [thread:$0]  (!%p9965_p11), %s11146_s1, 81920, %s9958_s28, [#allocation6], %s9870_s16, %s9870_s16, %s9871_s17  }
  0x2a   : > { %s9706_s8 = scalar_lea.hbm %s11147_s2, 5120 }
  0x2b   : > { %p9707_p2 = scmp.ne.s32.totalorder %s11147_s2, %s9706_s8  ;;  %p9713_p10 = scmp.lt.u32.totalorder %s9706_s8, %s11147_s2 }
  0x2d   : > { %p9709_p1 = pnand %p9707_p2, %p9979_p13 }
  0x2f   : > { %p9710_p6 = pneg %p9709_p1 }
  0x31   : > { %p9715_p3 = pnand %p9713_p10, %p9710_p6 }
  0x33   : > { %9718 = shalt.err (!%p9715_p3)
}
  0x34   : > { %s9719_s28 = scalar_lea.vmem %s9969_s6, 5120  ;;  %p9727_p12 = scmp.lt.s32.totalorder %s9969_s6, %s9969_s6 }
  0x35   : > { %p9720_p5 = scmp.ne.s32.totalorder %s9969_s6, %s9719_s28  ;;  %p9728_p0 = scmp.lt.s32.totalorder %s9719_s28, %s9719_s28 }
  0x37   : > { %p9722_p7 = pnand %p9720_p5, %p9979_p13  ;;  %p9729_p2 = por %p9728_p0, %p9727_p12 }
  0x39   : > { %p9723_p9 = pneg %p9722_p7 }
  0x3b   : > { %p9730_p1 = pnand %p9729_p2, %p9723_p9 }
  0x3d   : > { %9733 = shalt.err (!%p9730_p1)
}
  0x3e   : > { %s9872_s14 = smov 64   ;;  %s9873_s15 = smov 4  }
  0x3f   : > { %8604 = dma.hbm_to_vmem [thread:$0]  (!%p9965_p11), %s11147_s2, 5120, %s9969_s6, [#allocation6], %s9872_s14, %s9872_s14, %s9873_s15  }
  0x40   : > { %s9874_s23 = smov [#allocation8]   ;;  %s9734_s8 = scalar_lea.hbm %s11148_s3, 4096 }
  0x41   : > { %s202_s27 = sshll.u32 %s9874_s23, 4  ;;  %p9735_p6 = scmp.ne.s32.totalorder %s11148_s3, %s9734_s8  ;;  %s203_s27 = int_to_ptr.vmem [resolvable:$true] %s202_s27 }
  0x42   : > { %p9741_p5 = scmp.lt.u32.totalorder %s9734_s8, %s11148_s3 }
  0x43   : > { %p9737_p10 = pnand %p9735_p6, %p9979_p13 }
  0x45   : > { %p9738_p3 = pneg %p9737_p10 }
  0x47   : > { %p9743_p7 = pnand %p9741_p5, %p9738_p3 }
  0x49   : > { %9746 = shalt.err (!%p9743_p7)
}
  0x4a   : > { %s9747_s6 = scalar_lea.vmem %s203_s27, 4096  ;;  %p9755_p2 = scmp.lt.s32.totalorder %s203_s27, %s203_s27 }
  0x4b   : > { %p9748_p9 = scmp.ne.s32.totalorder %s203_s27, %s9747_s6  ;;  %p9756_p1 = scmp.lt.s32.totalorder %s9747_s6, %s9747_s6 }
  0x4d   : > { %p9750_p12 = pnand %p9748_p9, %p9979_p13  ;;  %p9757_p4 = por %p9756_p1, %p9755_p2 }
  0x4f   : > { %p9751_p0 = pneg %p9750_p12 }
  0x51   : > { %p9758_p8 = pnand %p9757_p4, %p9751_p0 }
  0x53   : > { %9761 = shalt.err (!%p9758_p8)
}
  0x54   : > { %s9875_s28 = smov 256   ;;  %s9876_s12 = smov 16  }
  0x55   : > { %8607 = dma.hbm_to_vmem [thread:$0]  (!%p9965_p11), %s11148_s3, 4096, %s203_s27, [#allocation9], %s9875_s28, %s9875_s28, %s9876_s12  }
  0x56   : > { %s10042_s16 = sadd.s32 1, %s9866_s21   ;;  %s30_s23 = sadd.s32 1, %s9862_s20 }
  0x57   : > { %s27_s17 = ssub.s32 %s9866_s21, %s10042_s16  ;;  %p37_p8 = scmp.ne.s32.totalorder %s9862_s20, %s9858_s19 }
  0x58   : > { %p28_p4 = scmp.eq.s32.totalorder %s27_s17, 0  ;;  %p38_p13 = scmp.eq.s32.totalorder %s9866_s21, 0 }
  0x59   : > { %p8619_p6 = scmp.lt.s32.totalorder %s9866_s21, 2  ;;  %p11159_p3 = scmp.eq.s32.totalorder %s9935_s22, 1 }
  0x5a   : > { %s10052_s30 = scalar_select %p28_p4, %s9862_s20, %s30_s23  }
  0x5b   : > { %p39_p10 = por %p38_p13, %p37_p8  ;;  %p10056_p5 = por %p11159_p3, %p37_p8 }
  0x5c   : > { %s219_s29 = sand.u32 1, %s9862_s20   ;;  %s8339_s8 = sshll.u32 %s9866_s21, 11 }
  0x5d   : > { %s7350_s27 = sshll.u32 %s219_s29, 7  ;;  %s10065_s11 = scalar_lea.hbm %s11145_s0, %s8339_s8 }
  0x5e   : > { %s223_s13 = scalar_lea.vmem [#allocation2], %s7350_s27  ;;  %p10067_p11 = pnand %p8619_p6, %p39_p10 }
  0x5f   : > { %s230_s6 = sshll.u32 %s223_s13, 4  ;;  %s10073_s12 = scalar_lea.sflag [#allocation3], %s219_s29  ;;  %s10071_s6 = int_to_ptr.vmem [resolvable:$true] %s230_s6 }
  0x60   : > { %s9762_s14 = scalar_lea.hbm %s10065_s11, 2048  ;;  %p9764_p9 = pneg %p10067_p11 }
  0x61   : > { %p9763_p7 = scmp.ne.s32.totalorder %s10065_s11, %s9762_s14  ;;  %s9767_s23 = scalar_lea.hbm %s11145_s0, 4096 }
  0x62   : > { %p9768_p2 = scmp.lt.u32.totalorder %s10065_s11, %s11145_s0  ;;  %p9769_p1 = scmp.lt.u32.totalorder %s9767_s23, %s9762_s14 }
  0x63   : > { %p9765_p12 = pnand %p9764_p9, %p9763_p7  ;;  %p9771_p8 = scmp.lt.u32.totalorder %s9762_s14, %s10065_s11 }
  0x64   : > { %p9770_p4 = por %p9769_p1, %p9768_p2 }
  0x65   : > { %p9766_p0 = pneg %p9765_p12 }
  0x66   : > { %p9772_p13 = por %p9771_p8, %p9770_p4 }
  0x68   : > { %p9773_p6 = pnand %p9772_p13, %p9766_p0 }
  0x6a   : > { %9776 = shalt.err (!%p9773_p6)
}
  0x6b   : > { %s9777_s29 = scalar_lea.vmem %s10071_s6, 2048  ;;  %s9877_s9 = smov [#allocation2]  }
  0x6c   : > { %p9778_p10 = scmp.ne.s32.totalorder %s10071_s6, %s9777_s29  ;;  %s9782_s10 = sshll.u32 %s9877_s9, 4  ;;  %s9783_s10 = int_to_ptr.vmem [resolvable:$false] %s9782_s10 }
  0x6d   : > { %s9784_s13 = scalar_lea.vmem %s9783_s10, 4096  ;;  %p9785_p12 = scmp.lt.s32.totalorder %s10071_s6, %s9783_s10 }
  0x6e   : > { %p9780_p3 = pnand %p9778_p10, %p9764_p9  ;;  %p9786_p2 = scmp.lt.s32.totalorder %s9784_s13, %s9777_s29 }
  0x70   : > { %p9781_p7 = pneg %p9780_p3  ;;  %p9787_p1 = por %p9786_p2, %p9785_p12 }
  0x72   : > { %p9788_p4 = pnand %p9787_p1, %p9781_p7 }
  0x74   : > { %9791 = shalt.err (!%p9788_p4)
}
  0x75   : > { %s9878_s14 = smov 512   ;;  %s9879_s15 = smov 32  }
  0x76   : > { %8611 = dma.hbm_to_vmem [thread:$0]  (!%p10067_p11), %s10065_s11, 2048, %s10071_s6, %s10073_s12, %s9878_s14, %s9878_s14, %s9879_s15  }
  0x77   : > { %p11162_p9 = scmp.ne.s32.totalorder %s11156_s26, 0 }
  0x78   : > { %s10104_s17 = sand.u32 (!%p11162_p9), 1, %s9858_s19   ;;  %p11163_p0 = scmp.ne.s32.totalorder (!%p11162_p9), %s11154_s24, 0 }
  0x79   : > { %242 = sbr.rel (%p11162_p9) target bundleno = 2115 (0x843), region = 40  ;;  %s7354_s23 = sshll.u32 (!%p11162_p9), %s10104_s17, 7 }
  0x7a   : > { %s245_s8 = scalar_lea.sflag (!%p11162_p9), [#allocation3], %s10104_s17  ;;  %s10108_s27 = scalar_lea.vmem (!%p11162_p9), [#allocation2], %s7354_s23 }
  0x80   : > { %9837 = dma.done.wait (%p11163_p0), %s245_s8, 2048  }
  0x81   : > { %9839 = vsyncadd (%p11163_p0), %s245_s8, 4294965248  ;;  %p11164_p11 = scmp.eq.s32.totalorder %s9935_s22, 0 }
  0x83   : > { %9841 = dma.done.wait (%p11164_p11), [#allocation6], 87040   ;;  %p11165_p8 = pmov %p11164_p11 }
  0x85   : > { %9843 = vsyncadd (%p11165_p8), [#allocation6], 4294880256  ;;  %p11166_p13 = pmov %p11165_p8 }
  0x86   : > { %p11167_p6 = pmov %p11165_p8 }
  0x87   : > { %9845 = dma.done.wait (%p11166_p13), [#allocation9], 4096  }
  0x88   : > { %9847 = vsyncadd (%p11167_p6), [#allocation9], 4294963200  ;;  %v8670_v0 = vld [vmem:[#allocation5 + $0x4] ss:$40 sps:$4 sm:$0xff]   ;;  %v8674_v2 = vld [vmem:[#allocation5] ss:$40 sps:$4 sm:$0xff]  }
  0x89   : > { %v8672_v1 = vld [vmem:[#allocation5 + $0xc] ss:$40 sps:$4 sm:$0xff]   ;;  %4225 = vmatprep.subr.bf16.mxu0 %v8670_v0  ;;  %v8675_v3 = vld [vmem:[#allocation5 + $0x8] ss:$40 sps:$4 sm:$0xff]   ;;  %v8678_v5 = vld [vmem:[#allocation5 + $0x5c] ss:$40 sps:$4 sm:$0xff]  }
  0x8a   : > { %4437 = vmatprep.subr.bf16.mxu1 %v8672_v1  ;;  %v8676_v4 = vld [vmem:[#allocation5 + $0x54] ss:$40 sps:$4 sm:$0xff]   ;;  %4226 = vmatpush1.bf16.msra.mxu0 %v8674_v2  ;;  %v8680_v6 = vld [vmem:[#allocation5 + $0x50] ss:$40 sps:$4 sm:$0xff]   ;;  %v8682_v8 = vld [vmem:[#allocation5 + $0xa4] ss:$40 sps:$4 sm:$0xff]  }
  0x8b   : > { %4438 = vmatpush1.bf16.msra.mxu1 %v8675_v3  ;;  %4227 = vmatprep.subr.bf16.mxu0 %v8676_v4  ;;  %v8681_v7 = vld [vmem:[#allocation5 + $0x58] ss:$40 sps:$4 sm:$0xff]   ;;  %v8684_v9 = vld [vmem:[#allocation5 + $0xac] ss:$40 sps:$4 sm:$0xff]   ;;  %v8687_v11 = vld [vmem:[#allocation5 + $0xa8] ss:$40 sps:$4 sm:$0xff]  }
  0x8c   : > { %4439 = vmatprep.subr.bf16.mxu1 %v8678_v5  ;;  %v8686_v10 = vld [vmem:[#allocation5 + $0xa0] ss:$40 sps:$4 sm:$0xff]   ;;  %v8688_v12 = vld [vmem:[#allocation5 + $0xf4] ss:$40 sps:$4 sm:$0xff]   ;;  %v8692_v14 = vld [vmem:[#allocation5 + $0xf0] ss:$40 sps:$4 sm:$0xff]  }
  0x8d   : > { %v8690_v13 = vld [vmem:[#allocation5 + $0xfc] ss:$40 sps:$4 sm:$0xff]   ;;  %v8693_v15 = vld [vmem:[#allocation5 + $0xf8] ss:$40 sps:$4 sm:$0xff]   ;;  %v8696_v17 = vld [vmem:[#allocation5 + $0x14c] ss:$40 sps:$4 sm:$0xff]  }
  0x8e   : > { %4228 = vmatpush1.bf16.msra.mxu0 %v8680_v6  ;;  %v8694_v16 = vld [vmem:[#allocation5 + $0x144] ss:$40 sps:$4 sm:$0xff]   ;;  %v8698_v18 = vld [vmem:[#allocation5 + $0x140] ss:$40 sps:$4 sm:$0xff]   ;;  %v8700_v20 = vld [vmem:[#allocation5 + $0x194] ss:$40 sps:$4 sm:$0xff]  }
  0x8f   : > { %4440 = vmatpush1.bf16.msra.mxu1 %v8681_v7  ;;  %4229 = vmatprep.subr.bf16.mxu0 %v8682_v8  ;;  %v8699_v19 = vld [vmem:[#allocation5 + $0x148] ss:$40 sps:$4 sm:$0xff]   ;;  %v8702_v21 = vld [vmem:[#allocation5 + $0x19c] ss:$40 sps:$4 sm:$0xff]   ;;  %v8705_v23 = vld [vmem:[#allocation5 + $0x198] ss:$40 sps:$4 sm:$0xff]  }
  0x90   : > { %4441 = vmatprep.subr.bf16.mxu1 %v8684_v9  ;;  %v8704_v22 = vld [vmem:[#allocation5 + $0x190] ss:$40 sps:$4 sm:$0xff]   ;;  %v8706_v24 = vld [vmem:[#allocation5 + $0x1e4] ss:$40 sps:$4 sm:$0xff]   ;;  %v8710_v26 = vld [vmem:[#allocation5 + $0x1e0] ss:$40 sps:$4 sm:$0xff]  }
  0x91   : > { %v8708_v25 = vld [vmem:[#allocation5 + $0x1ec] ss:$40 sps:$4 sm:$0xff]   ;;  %v8711_v27 = vld [vmem:[#allocation5 + $0x1e8] ss:$40 sps:$4 sm:$0xff]   ;;  %v8714_v29 = vld [vmem:[#allocation5 + $0x23c] ss:$40 sps:$4 sm:$0xff]  }
  0x92   : > { %4230 = vmatpush1.bf16.msra.mxu0 %v8686_v10  ;;  %v8712_v28 = vld [vmem:[#allocation5 + $0x234] ss:$40 sps:$4 sm:$0xff]   ;;  %v8716_v30 = vld [vmem:[#allocation5 + $0x230] ss:$40 sps:$4 sm:$0xff]   ;;  %v8718_v32 = vld [vmem:[#allocation5 + $0x284] ss:$40 sps:$4 sm:$0xff]  }
  0x93   : > { %4442 = vmatpush1.bf16.msra.mxu1 %v8687_v11  ;;  %4231 = vmatprep.subr.bf16.mxu0 %v8688_v12  ;;  %v8717_v31 = vld [vmem:[#allocation5 + $0x238] ss:$40 sps:$4 sm:$0xff]   ;;  %v8720_v33 = vld [vmem:[#allocation5 + $0x28c] ss:$40 sps:$4 sm:$0xff]   ;;  %v8723_v35 = vld [vmem:[#allocation5 + $0x288] ss:$40 sps:$4 sm:$0xff]  }
  0x94   : > { %4443 = vmatprep.subr.bf16.mxu1 %v8690_v13  ;;  %v8722_v34 = vld [vmem:[#allocation5 + $0x280] ss:$40 sps:$4 sm:$0xff]   ;;  %v8724_v36 = vld [vmem:[#allocation5 + $0x2d4] ss:$40 sps:$4 sm:$0xff]   ;;  %v8728_v38 = vld [vmem:[#allocation5 + $0x2d0] ss:$40 sps:$4 sm:$0xff]  }
  0x95   : > { %v8726_v37 = vld [vmem:[#allocation5 + $0x2dc] ss:$40 sps:$4 sm:$0xff]   ;;  %v8729_v39 = vld [vmem:[#allocation5 + $0x2d8] ss:$40 sps:$4 sm:$0xff]   ;;  %v8732_v41 = vld [vmem:[#allocation5 + $0x32c] ss:$40 sps:$4 sm:$0xff]  }
  0x96   : > { %4232 = vmatpush1.bf16.msra.mxu0 %v8692_v14  ;;  %v8730_v40 = vld [vmem:[#allocation5 + $0x324] ss:$40 sps:$4 sm:$0xff]   ;;  %v8734_v42 = vld [vmem:[#allocation5 + $0x320] ss:$40 sps:$4 sm:$0xff]   ;;  %v8736_v44 = vld [vmem:[#allocation5 + $0x374] ss:$40 sps:$4 sm:$0xff]  }
  0x97   : > { %4444 = vmatpush1.bf16.msra.mxu1 %v8693_v15  ;;  %4233 = vmatprep.subr.bf16.mxu0 %v8694_v16  ;;  %v8735_v43 = vld [vmem:[#allocation5 + $0x328] ss:$40 sps:$4 sm:$0xff]   ;;  %v8738_v45 = vld [vmem:[#allocation5 + $0x37c] ss:$40 sps:$4 sm:$0xff]   ;;  %v8741_v49 = vld [vmem:[#allocation5 + $0x378] ss:$40 sps:$4 sm:$0xff]  }
  0x98   : > { %4445 = vmatprep.subr.bf16.mxu1 %v8696_v17  ;;  %v289_v46 = vld [vmem:[%s10108_s27] sm:$0xff]  ;;  %v8740_v48 = vld [vmem:[#allocation5 + $0x370] ss:$40 sps:$4 sm:$0xff]   ;;  %v8744_v52 = vld [vmem:[#allocation5 + $0x3cc] ss:$40 sps:$4 sm:$0xff]   ;;  %vm5983_vm0 = vcmask 64512  }
  0x99   : > { %v293_v47 = vld [vmem:[%s10108_s27 + $0x20] sm:$0xff]  ;;  %v8747_v54 = vld [vmem:[#allocation5 + $0x3c8] ss:$40 sps:$4 sm:$0xff]   ;;  %v8748_v55 = vld [vmem:[#allocation5 + $0x414] ss:$40 sps:$4 sm:$0xff]   ;;  %s8580_s15 = smul.u32 1792, %s10104_s17 }
  0x9a   : > { %4234 = vmatpush1.bf16.msra.mxu0 %v8698_v18  ;;  %v10124_v50 = vcombine.high %v289_v46, %v293_v47  ;;  %v8742_v51 = vld [vmem:[#allocation5 + $0x3c4] ss:$40 sps:$4 sm:$0xff]   ;;  %v8746_v53 = vld [vmem:[#allocation5 + $0x3c0] ss:$40 sps:$4 sm:$0xff]   ;;  %v8752_v57 = vld [vmem:[#allocation5 + $0x410] ss:$40 sps:$4 sm:$0xff]   ;;  %v10128_v5 = vcombine.low %v289_v46, %v293_v47 }
  0x9b   : > { %4446 = vmatpush1.bf16.msra.mxu1 %v8699_v19  ;;  %4235 = vmatprep.subr.bf16.mxu0 %v8700_v20  ;;  %v8750_v56 = vld [vmem:[#allocation5 + $0x41c] ss:$40 sps:$4 sm:$0xff]   ;;  %v8753_v58 = vld [vmem:[#allocation5 + $0x418] ss:$40 sps:$4 sm:$0xff]   ;;  %v8756_v60 = vld [vmem:[#allocation5 + $0x46c] ss:$40 sps:$4 sm:$0xff]  }
  0x9c   : > { %4447 = vmatprep.subr.bf16.mxu1 %v8702_v21  ;;  %4257 = vmatprep.mubr.bf16.mxu0 %v10124_v50  ;;  %v8754_v59 = vld [vmem:[#allocation5 + $0x464] ss:$40 sps:$4 sm:$0xff]   ;;  %v8758_v61 = vld [vmem:[#allocation5 + $0x460] ss:$40 sps:$4 sm:$0xff]   ;;  %v8760_v63 = vld [vmem:[#allocation5 + $0x4b4] ss:$40 sps:$4 sm:$0xff]  }
  0x9d   : > { %4469 = vmatprep.mubr.bf16.mxu1 %v10124_v50  ;;  %v8759_v62 = vld [vmem:[#allocation5 + $0x468] ss:$40 sps:$4 sm:$0xff]   ;;  %v8762_v0 = vld [vmem:[#allocation5 + $0x4bc] ss:$40 sps:$4 sm:$0xff]   ;;  %v8765_v2 = vld [vmem:[#allocation5 + $0x4b8] ss:$40 sps:$4 sm:$0xff]  }
  0x9e   : > { %4236 = vmatpush1.bf16.msra.mxu0 %v8704_v22  ;;  %v8764_v1 = vld [vmem:[#allocation5 + $0x4b0] ss:$40 sps:$4 sm:$0xff]   ;;  %v8768_v3 = vld [vmem:[#allocation5 + $0x504] ss:$40 sps:$4 sm:$0xff]   ;;  %v8766_v6 = vld [vmem:[#allocation5 + $0x500] ss:$40 sps:$4 sm:$0xff]  }
  0x9f   : > { %4448 = vmatpush1.bf16.msra.mxu1 %v8705_v23  ;;  %4237 = vmatprep.subr.bf16.mxu0 %v8706_v24  ;;  %v8771_v4 = vld [vmem:[#allocation5 + $0x50c] ss:$40 sps:$4 sm:$0xff]   ;;  %v8769_v7 = vld [vmem:[#allocation5 + $0x508] ss:$40 sps:$4 sm:$0xff]   ;;  %v8777_v9 = vld [vmem:[#allocation5 + $0x55c] ss:$40 sps:$4 sm:$0xff]  }
  0xa0   : > { %4449 = vmatprep.subr.bf16.mxu1 %v8708_v25  ;;  %v8774_v8 = vld [vmem:[#allocation5 + $0x554] ss:$40 sps:$4 sm:$0xff]   ;;  %v8772_v10 = vld [vmem:[#allocation5 + $0x550] ss:$40 sps:$4 sm:$0xff]   ;;  %v8780_v12 = vld [vmem:[#allocation5 + $0x5a4] ss:$40 sps:$4 sm:$0xff]  }
  0xa1   : > { %v8775_v11 = vld [vmem:[#allocation5 + $0x558] ss:$40 sps:$4 sm:$0xff]   ;;  %v8783_v13 = vld [vmem:[#allocation5 + $0x5ac] ss:$40 sps:$4 sm:$0xff]   ;;  %v8781_v15 = vld [vmem:[#allocation5 + $0x5a8] ss:$40 sps:$4 sm:$0xff]  }
  0xa2   : > { %4238 = vmatpush1.bf16.msra.mxu0 %v8710_v26  ;;  %v8778_v14 = vld [vmem:[#allocation5 + $0x5a0] ss:$40 sps:$4 sm:$0xff]   ;;  %v8786_v16 = vld [vmem:[#allocation5 + $0x5f4] ss:$40 sps:$4 sm:$0xff]   ;;  %v8784_v18 = vld [vmem:[#allocation5 + $0x5f0] ss:$40 sps:$4 sm:$0xff]  }
  0xa3   : > { %4450 = vmatpush1.bf16.msra.mxu1 %v8711_v27  ;;  %4239 = vmatprep.subr.bf16.mxu0 %v8712_v28  ;;  %v8789_v17 = vld [vmem:[#allocation5 + $0x5fc] ss:$40 sps:$4 sm:$0xff]   ;;  %v8787_v19 = vld [vmem:[#allocation5 + $0x5f8] ss:$40 sps:$4 sm:$0xff]   ;;  %v8795_v21 = vld [vmem:[#allocation5 + $0x64c] ss:$40 sps:$4 sm:$0xff]  }
  0xa4   : > { %4451 = vmatprep.subr.bf16.mxu1 %v8714_v29  ;;  %v8792_v20 = vld [vmem:[#allocation5 + $0x644] ss:$40 sps:$4 sm:$0xff]   ;;  %v8790_v22 = vld [vmem:[#allocation5 + $0x640] ss:$40 sps:$4 sm:$0xff]   ;;  %v8798_v24 = vld [vmem:[#allocation5 + $0x694] ss:$40 sps:$4 sm:$0xff]  }
  0xa5   : > { %v8793_v23 = vld [vmem:[#allocation5 + $0x648] ss:$40 sps:$4 sm:$0xff]   ;;  %v8801_v25 = vld [vmem:[#allocation5 + $0x69c] ss:$40 sps:$4 sm:$0xff]   ;;  %s10812_s23 = scalar_lea.vmem [#allocation10], %s8580_s15  ;;  %s8581_s8 = smul.u32 28672, %s9935_s22 }
  0xa6   : > { %4240 = vmatpush1.bf16.msra.mxu0 %v8716_v30  ;;  %v297_v26 = vld [vmem:[%s10108_s27 + $0x40] sm:$0xff]  ;;  %v8796_v29 = vld [vmem:[#allocation5 + $0x690] ss:$40 sps:$4 sm:$0xff]   ;;  %v8822_v47 = vld [vmem:[#allocation5 + $0x7d4] ss:$40 sps:$4 sm:$0xff]   ;;  %s7228_s22 = scalar_lea.sflag [#allocation4], %s10104_s17 }
  0xa7   : > { %4452 = vmatpush1.bf16.msra.mxu1 %v8717_v31  ;;  %4241 = vmatprep.subr.bf16.mxu0 %v8718_v32  ;;  %v301_v27 = vld [vmem:[%s10108_s27 + $0x60] sm:$0xff]  ;;  %v8817_v46 = vld [vmem:[#allocation5 + $0x788] ss:$40 sps:$4 sm:$0xff]   ;;  %s11097_s11 = scalar_lea.hbm %s11150_s5, %s8581_s8  ;;  %s9881_s28 = smov [#allocation10]  }
  0xa8   : > { %4453 = vmatprep.subr.bf16.mxu1 %v8720_v33  ;;  %v10134_v28 = vcombine.high %v297_v26, %v301_v27  ;;  %v8799_v30 = vld [vmem:[#allocation5 + $0x698] ss:$40 sps:$4 sm:$0xff]   ;;  %v10136_v31 = vcombine.low %v297_v26, %v301_v27  ;;  %v8804_v32 = vld [vmem:[#allocation5 + $0x6e4] ss:$40 sps:$4 sm:$0xff]   ;;  %v10167_v27 = vld [vmem:[%s10108_s27 + $0x10] sm:$0xff]  ;;  %s9796_s12 = sshll.u32 %s9881_s28, 4  ;;  %s9797_s12 = int_to_ptr.vmem [resolvable:$false] %s9796_s12 }
  0xa9   : > { %v8807_v33 = vld [vmem:[#allocation5 + $0x6ec] ss:$40 sps:$4 sm:$0xff]   ;;  %s9798_s29 = scalar_lea.vmem %s9797_s12, 57344 }
  0xaa   : > { %4242 = vmatpush1.bf16.msra.mxu0 %v8722_v34  ;;  %v10141_v34 = vld [vmem:[%s10108_s27 + $0x8] sm:$0xff] }
  0xab   : > { %4454 = vmatpush1.bf16.msra.mxu1 %v8723_v35  ;;  %4243 = vmatprep.subr.bf16.mxu0 %v8724_v36  ;;  %v10146_v35 = vld [vmem:[%s10108_s27 + $0x28] sm:$0xff] }
  0xac   : > { %4455 = vmatprep.subr.bf16.mxu1 %v8726_v37  ;;  %v8802_v36 = vld [vmem:[#allocation5 + $0x6e0] ss:$40 sps:$4 sm:$0xff]   ;;  %v8879_v26 = vld [vmem:[#allocation5 + $0xaac] ss:$40 sps:$4 sm:$0xff]  }
  0xad   : > { %v8805_v37 = vld [vmem:[#allocation5 + $0x6e8] ss:$40 sps:$4 sm:$0xff]  }
  0xae   : > { %4244 = vmatpush1.bf16.msra.mxu0 %v8728_v38  ;;  %v10150_v38 = vcombine.high %v10141_v34, %v10146_v35 }
  0xaf   : > { %4456 = vmatpush1.bf16.msra.mxu1 %v8729_v39  ;;  %4245 = vmatprep.subr.bf16.mxu0 %v8730_v40  ;;  %v8810_v39 = vld [vmem:[#allocation5 + $0x734] ss:$40 sps:$4 sm:$0xff]  }
  0xb0   : > { %4457 = vmatprep.subr.bf16.mxu1 %v8732_v41  ;;  %v8813_v40 = vld [vmem:[#allocation5 + $0x73c] ss:$40 sps:$4 sm:$0xff]   ;;  %v8808_v41 = vld [vmem:[#allocation5 + $0x730] ss:$40 sps:$4 sm:$0xff]  }
  0xb2   : > { %4246 = vmatpush1.bf16.msra.mxu0 %v8734_v42  ;;  %v8811_v42 = vld [vmem:[#allocation5 + $0x738] ss:$40 sps:$4 sm:$0xff]  }
  0xb3   : > { %4458 = vmatpush1.bf16.msra.mxu1 %v8735_v43  ;;  %4247 = vmatprep.subr.bf16.mxu0 %v8736_v44  ;;  %v8816_v43 = vld [vmem:[#allocation5 + $0x784] ss:$40 sps:$4 sm:$0xff]  }
  0xb4   : > { %4459 = vmatprep.subr.bf16.mxu1 %v8738_v45  ;;  %v8819_v44 = vld [vmem:[#allocation5 + $0x78c] ss:$40 sps:$4 sm:$0xff]   ;;  %v8814_v45 = vld [vmem:[#allocation5 + $0x780] ss:$40 sps:$4 sm:$0xff]  }
  0xb6   : > { %4248 = vmatpush1.bf16.msra.mxu0 %v8740_v48  ;;  %v8825_v48 = vld [vmem:[#allocation5 + $0x7dc] ss:$40 sps:$4 sm:$0xff]  }
  0xb7   : > { %4460 = vmatpush1.bf16.msra.mxu1 %v8741_v49  ;;  %4249 = vmatprep.subr.bf16.mxu0 %v8742_v51  ;;  %v8820_v49 = vld [vmem:[#allocation5 + $0x7d0] ss:$40 sps:$4 sm:$0xff]  }
  0xb8   : > { %4461 = vmatprep.subr.bf16.mxu1 %v8744_v52  ;;  %v8823_v51 = vld [vmem:[#allocation5 + $0x7d8] ss:$40 sps:$4 sm:$0xff]   ;;  %v8828_v52 = vld [vmem:[#allocation5 + $0x824] ss:$40 sps:$4 sm:$0xff]  }
  0xba   : > { %4250 = vmatpush1.bf16.msra.mxu0 %v8746_v53  ;;  %v8831_v53 = vld [vmem:[#allocation5 + $0x82c] ss:$40 sps:$4 sm:$0xff]  }
  0xbb   : > { %4462 = vmatpush1.bf16.msra.mxu1 %v8747_v54  ;;  %4251 = vmatprep.subr.bf16.mxu0 %v8748_v55  ;;  %v8826_v54 = vld [vmem:[#allocation5 + $0x820] ss:$40 sps:$4 sm:$0xff]  }
  0xbc   : > { %4463 = vmatprep.subr.bf16.mxu1 %v8750_v56  ;;  %v8829_v55 = vld [vmem:[#allocation5 + $0x828] ss:$40 sps:$4 sm:$0xff]   ;;  %v8834_v56 = vld [vmem:[#allocation5 + $0x874] ss:$40 sps:$4 sm:$0xff]  }
  0xbe   : > { %4252 = vmatpush1.bf16.msra.mxu0 %v8752_v57  ;;  %v8837_v57 = vld [vmem:[#allocation5 + $0x87c] ss:$40 sps:$4 sm:$0xff]  }
  0xbf   : > { %4464 = vmatpush1.bf16.msra.mxu1 %v8753_v58  ;;  %4253 = vmatprep.subr.bf16.mxu0 %v8754_v59  ;;  %v8832_v58 = vld [vmem:[#allocation5 + $0x870] ss:$40 sps:$4 sm:$0xff]  }
  0xc0   : > { %4465 = vmatprep.subr.bf16.mxu1 %v8756_v60  ;;  %v8835_v59 = vld [vmem:[#allocation5 + $0x878] ss:$40 sps:$4 sm:$0xff]   ;;  %v8840_v60 = vld [vmem:[#allocation5 + $0x8c4] ss:$40 sps:$4 sm:$0xff]  }
  0xc2   : > { %4254 = vmatpush1.bf16.msra.mxu0 %v8758_v61  ;;  %v8843_v61 = vld [vmem:[#allocation5 + $0x8cc] ss:$40 sps:$4 sm:$0xff]  }
  0xc3   : > { %4466 = vmatpush1.bf16.msra.mxu1 %v8759_v62  ;;  %4255 = vmatprep.subr.bf16.mxu0 %v8760_v63  ;;  %v8838_v62 = vld [vmem:[#allocation5 + $0x8c0] ss:$40 sps:$4 sm:$0xff]  }
  0xc4   : > { %4467 = vmatprep.subr.bf16.mxu1 %v8762_v0  ;;  %v8841_v63 = vld [vmem:[#allocation5 + $0x8c8] ss:$40 sps:$4 sm:$0xff]   ;;  %v8846_v0 = vld [vmem:[#allocation5 + $0x914] ss:$40 sps:$4 sm:$0xff]  }
  0xc6   : > { %4256 = vmatpush1.bf16.msra.mxu0 %v8764_v1  ;;  %v8849_v1 = vld [vmem:[#allocation5 + $0x91c] ss:$40 sps:$4 sm:$0xff]  }
  0xc7   : > { %4468 = vmatpush1.bf16.msra.mxu1 %v8765_v2  ;;  %4278 = vmatprep.subr.bf16.mxu0 %v8768_v3  ;;  %v8844_v2 = vld [vmem:[#allocation5 + $0x910] ss:$40 sps:$4 sm:$0xff]  }
  0xc8   : > { %4490 = vmatprep.subr.bf16.mxu1 %v8771_v4  ;;  %v8847_v3 = vld [vmem:[#allocation5 + $0x918] ss:$40 sps:$4 sm:$0xff]   ;;  %v8852_v4 = vld [vmem:[#allocation5 + $0x964] ss:$40 sps:$4 sm:$0xff]  }
  0xc9   : > { %4258 = vmatmul.mubr.bf16.vlgmr.msra.gmra.mrb[0].mxu0 %v10128_v5 }
  0xca   : > { %4470 = vmatmul.mubr.bf16.vlgmr.msra.gmra.mrb[0].mxu1 %v10128_v5  ;;  %4279 = vmatpush1.bf16.msra.mxu0 %v8766_v6  ;;  %v8855_v6 = vld [vmem:[#allocation5 + $0x96c] ss:$40 sps:$4 sm:$0xff]  }
  0xcb   : > { %4491 = vmatpush1.bf16.msra.mxu1 %v8769_v7  ;;  %4280 = vmatprep.subr.bf16.mxu0 %v8774_v8  ;;  %v8850_v7 = vld [vmem:[#allocation5 + $0x960] ss:$40 sps:$4 sm:$0xff]  }
  0xcc   : > { %4492 = vmatprep.subr.bf16.mxu1 %v8777_v9  ;;  %4267 = vmatprep.mubr.bf16.mxu0 %v10134_v28  ;;  %v8853_v8 = vld [vmem:[#allocation5 + $0x968] ss:$40 sps:$4 sm:$0xff]   ;;  %v8858_v9 = vld [vmem:[#allocation5 + $0x9b4] ss:$40 sps:$4 sm:$0xff]  }
  0xcd   : > { %4479 = vmatprep.mubr.bf16.mxu1 %v10134_v28 }
  0xce   : > { %4281 = vmatpush1.bf16.msra.mxu0 %v8772_v10  ;;  %v8861_v10 = vld [vmem:[#allocation5 + $0x9bc] ss:$40 sps:$4 sm:$0xff]  }
  0xcf   : > { %4493 = vmatpush1.bf16.msra.mxu1 %v8775_v11  ;;  %4282 = vmatprep.subr.bf16.mxu0 %v8780_v12  ;;  %v8856_v11 = vld [vmem:[#allocation5 + $0x9b0] ss:$40 sps:$4 sm:$0xff]  }
  0xd0   : > { %4494 = vmatprep.subr.bf16.mxu1 %v8783_v13  ;;  %v8859_v12 = vld [vmem:[#allocation5 + $0x9b8] ss:$40 sps:$4 sm:$0xff]   ;;  %v8864_v13 = vld [vmem:[#allocation5 + $0xa04] ss:$40 sps:$4 sm:$0xff]  }
  0xd1   : > { %4268 = vmatmul.mubr.bf16.gmra.mrb[4].mxu0 %v10136_v31 }
  0xd2   : > { %4283 = vmatpush1.bf16.msra.mxu0 %v8778_v14  ;;  %4480 = vmatmul.mubr.bf16.gmra.mrb[4].mxu1 %v10136_v31  ;;  %v8867_v14 = vld [vmem:[#allocation5 + $0xa0c] ss:$40 sps:$4 sm:$0xff]  }
  0xd3   : > { %4495 = vmatpush1.bf16.msra.mxu1 %v8781_v15  ;;  %4284 = vmatprep.subr.bf16.mxu0 %v8786_v16  ;;  %v8862_v15 = vld [vmem:[#allocation5 + $0xa00] ss:$40 sps:$4 sm:$0xff]  }
  0xd4   : > { %4496 = vmatprep.subr.bf16.mxu1 %v8789_v17  ;;  %4310 = vmatprep.mubr.bf16.mxu0 %v10150_v38  ;;  %v8865_v16 = vld [vmem:[#allocation5 + $0xa08] ss:$40 sps:$4 sm:$0xff]   ;;  %v10156_v17 = vcombine.low %v10141_v34, %v10146_v35  ;;  %v8882_v34 = vld [vmem:[#allocation5 + $0xaf4] ss:$40 sps:$4 sm:$0xff]  }
  0xd5   : > { %4522 = vmatprep.mubr.bf16.mxu1 %v10150_v38  ;;  %v8885_v35 = vld [vmem:[#allocation5 + $0xafc] ss:$40 sps:$4 sm:$0xff]  }
  0xd6   : > { %4285 = vmatpush1.bf16.msra.mxu0 %v8784_v18  ;;  %v298_v18 = vld [vmem:[%s10108_s27 + $0x48] sm:$0xff] }
  0xd7   : > { %4497 = vmatpush1.bf16.msra.mxu1 %v8787_v19  ;;  %4286 = vmatprep.subr.bf16.mxu0 %v8792_v20  ;;  %v302_v19 = vld [vmem:[%s10108_s27 + $0x68] sm:$0xff]  ;;  %v8870_v20 = vld [vmem:[#allocation5 + $0xa54] ss:$40 sps:$4 sm:$0xff]  }
  0xd8   : > { %4498 = vmatprep.subr.bf16.mxu1 %v8795_v21  ;;  %v8873_v21 = vld [vmem:[#allocation5 + $0xa5c] ss:$40 sps:$4 sm:$0xff]  }
  0xda   : > { %4287 = vmatpush1.bf16.msra.mxu0 %v8790_v22  ;;  %v10160_v22 = vcombine.high %v298_v18, %v302_v19 }
  0xdb   : > { %4499 = vmatpush1.bf16.msra.mxu1 %v8793_v23  ;;  %4288 = vmatprep.subr.bf16.mxu0 %v8798_v24  ;;  %v8868_v23 = vld [vmem:[#allocation5 + $0xa50] ss:$40 sps:$4 sm:$0xff]  }
  0xdc   : > { %4500 = vmatprep.subr.bf16.mxu1 %v8801_v25  ;;  %v8871_v24 = vld [vmem:[#allocation5 + $0xa58] ss:$40 sps:$4 sm:$0xff]   ;;  %v8876_v25 = vld [vmem:[#allocation5 + $0xaa4] ss:$40 sps:$4 sm:$0xff]  }
  0xde   : > { %4289 = vmatpush1.bf16.msra.mxu0 %v8796_v29  ;;  %v10169_v29 = vcombine.low %v298_v18, %v302_v19  ;;  %v8943_v18 = vld [vmem:[#allocation5 + $0xe18] ss:$40 sps:$4 sm:$0xff]   ;;  %v8948_v19 = vld [vmem:[#allocation5 + $0xe64] ss:$40 sps:$4 sm:$0xff]  }
  0xdf   : > { %4501 = vmatpush1.bf16.msra.mxu1 %v8799_v30  ;;  %4290 = vmatprep.subr.bf16.mxu0 %v8804_v32  ;;  %v10172_v30 = vld [vmem:[%s10108_s27 + $0x30] sm:$0xff]  ;;  %v8874_v32 = vld [vmem:[#allocation5 + $0xaa0] ss:$40 sps:$4 sm:$0xff]  }
  0xe0   : > { %4502 = vmatprep.subr.bf16.mxu1 %v8807_v33  ;;  %v8877_v33 = vld [vmem:[#allocation5 + $0xaa8] ss:$40 sps:$4 sm:$0xff]  }
  0xe2   : > { %4291 = vmatpush1.bf16.msra.mxu0 %v8802_v36  ;;  %v10176_v36 = vcombine.high %v10167_v27, %v10172_v30 }
  0xe3   : > { %4503 = vmatpush1.bf16.msra.mxu1 %v8805_v37  ;;  %4292 = vmatprep.subr.bf16.mxu0 %v8810_v39  ;;  %v8880_v37 = vld [vmem:[#allocation5 + $0xaf0] ss:$40 sps:$4 sm:$0xff]  }
  0xe4   : > { %4504 = vmatprep.subr.bf16.mxu1 %v8813_v40  ;;  %v8883_v39 = vld [vmem:[#allocation5 + $0xaf8] ss:$40 sps:$4 sm:$0xff]   ;;  %v8888_v40 = vld [vmem:[#allocation5 + $0xb44] ss:$40 sps:$4 sm:$0xff]  }
  0xe6   : > { %4293 = vmatpush1.bf16.msra.mxu0 %v8808_v41  ;;  %v8891_v41 = vld [vmem:[#allocation5 + $0xb4c] ss:$40 sps:$4 sm:$0xff]  }
  0xe7   : > { %4505 = vmatpush1.bf16.msra.mxu1 %v8811_v42  ;;  %4294 = vmatprep.subr.bf16.mxu0 %v8816_v43  ;;  %v8886_v42 = vld [vmem:[#allocation5 + $0xb40] ss:$40 sps:$4 sm:$0xff]  }
  0xe8   : > { %4506 = vmatprep.subr.bf16.mxu1 %v8819_v44  ;;  %v8889_v43 = vld [vmem:[#allocation5 + $0xb48] ss:$40 sps:$4 sm:$0xff]   ;;  %v8894_v44 = vld [vmem:[#allocation5 + $0xb94] ss:$40 sps:$4 sm:$0xff]  }
  0xea   : > { %4295 = vmatpush1.bf16.msra.mxu0 %v8814_v45  ;;  %v8897_v45 = vld [vmem:[#allocation5 + $0xb9c] ss:$40 sps:$4 sm:$0xff]  }
  0xeb   : > { %4507 = vmatpush1.bf16.msra.mxu1 %v8817_v46  ;;  %4296 = vmatprep.subr.bf16.mxu0 %v8822_v47  ;;  %v8892_v46 = vld [vmem:[#allocation5 + $0xb90] ss:$40 sps:$4 sm:$0xff]  }
  0xec   : > { %4508 = vmatprep.subr.bf16.mxu1 %v8825_v48  ;;  %v8895_v47 = vld [vmem:[#allocation5 + $0xb98] ss:$40 sps:$4 sm:$0xff]   ;;  %v8900_v48 = vld [vmem:[#allocation5 + $0xbe4] ss:$40 sps:$4 sm:$0xff]  }
  0xee   : > { %4297 = vmatpush1.bf16.msra.mxu0 %v8820_v49  ;;  %v8903_v49 = vld [vmem:[#allocation5 + $0xbec] ss:$40 sps:$4 sm:$0xff]  }
  0xef   : > { %4509 = vmatpush1.bf16.msra.mxu1 %v8823_v51  ;;  %4298 = vmatprep.subr.bf16.mxu0 %v8828_v52  ;;  %v8898_v51 = vld [vmem:[#allocation5 + $0xbe0] ss:$40 sps:$4 sm:$0xff]  }
  0xf0   : > { %4510 = vmatprep.subr.bf16.mxu1 %v8831_v53  ;;  %v8901_v52 = vld [vmem:[#allocation5 + $0xbe8] ss:$40 sps:$4 sm:$0xff]   ;;  %v8906_v53 = vld [vmem:[#allocation5 + $0xc34] ss:$40 sps:$4 sm:$0xff]  }
  0xf2   : > { %4299 = vmatpush1.bf16.msra.mxu0 %v8826_v54  ;;  %v8909_v54 = vld [vmem:[#allocation5 + $0xc3c] ss:$40 sps:$4 sm:$0xff]  }
  0xf3   : > { %4511 = vmatpush1.bf16.msra.mxu1 %v8829_v55  ;;  %4300 = vmatprep.subr.bf16.mxu0 %v8834_v56  ;;  %v8904_v55 = vld [vmem:[#allocation5 + $0xc30] ss:$40 sps:$4 sm:$0xff]  }
  0xf4   : > { %4512 = vmatprep.subr.bf16.mxu1 %v8837_v57  ;;  %v8907_v56 = vld [vmem:[#allocation5 + $0xc38] ss:$40 sps:$4 sm:$0xff]   ;;  %v8912_v57 = vld [vmem:[#allocation5 + $0xc84] ss:$40 sps:$4 sm:$0xff]  }
  0xf6   : > { %4301 = vmatpush1.bf16.msra.mxu0 %v8832_v58  ;;  %v8915_v58 = vld [vmem:[#allocation5 + $0xc8c] ss:$40 sps:$4 sm:$0xff]  }
  0xf7   : > { %4513 = vmatpush1.bf16.msra.mxu1 %v8835_v59  ;;  %4302 = vmatprep.subr.bf16.mxu0 %v8840_v60  ;;  %v8910_v59 = vld [vmem:[#allocation5 + $0xc80] ss:$40 sps:$4 sm:$0xff]  }
  0xf8   : > { %4514 = vmatprep.subr.bf16.mxu1 %v8843_v61  ;;  %v8913_v60 = vld [vmem:[#allocation5 + $0xc88] ss:$40 sps:$4 sm:$0xff]   ;;  %v8918_v61 = vld [vmem:[#allocation5 + $0xcd4] ss:$40 sps:$4 sm:$0xff]  }
  0xfa   : > { %4303 = vmatpush1.bf16.msra.mxu0 %v8838_v62  ;;  %v8921_v62 = vld [vmem:[#allocation5 + $0xcdc] ss:$40 sps:$4 sm:$0xff]  }
  0xfb   : > { %4515 = vmatpush1.bf16.msra.mxu1 %v8841_v63  ;;  %4304 = vmatprep.subr.bf16.mxu0 %v8846_v0  ;;  %v8916_v63 = vld [vmem:[#allocation5 + $0xcd0] ss:$40 sps:$4 sm:$0xff]  }
  0xfc   : > { %4516 = vmatprep.subr.bf16.mxu1 %v8849_v1  ;;  %v8919_v0 = vld [vmem:[#allocation5 + $0xcd8] ss:$40 sps:$4 sm:$0xff]   ;;  %v8924_v1 = vld [vmem:[#allocation5 + $0xd24] ss:$40 sps:$4 sm:$0xff]  }
  0xfe   : > { %4305 = vmatpush1.bf16.msra.mxu0 %v8844_v2  ;;  %v8927_v2 = vld [vmem:[#allocation5 + $0xd2c] ss:$40 sps:$4 sm:$0xff]  }
  0xff   : > { %4517 = vmatpush1.bf16.msra.mxu1 %v8847_v3  ;;  %4306 = vmatprep.subr.bf16.mxu0 %v8852_v4  ;;  %v8922_v3 = vld [vmem:[#allocation5 + $0xd20] ss:$40 sps:$4 sm:$0xff]  }
 0x100   : > { %4518 = vmatprep.subr.bf16.mxu1 %v8855_v6  ;;  %v8925_v4 = vld [vmem:[#allocation5 + $0xd28] ss:$40 sps:$4 sm:$0xff]   ;;  %v8930_v6 = vld [vmem:[#allocation5 + $0xd74] ss:$40 sps:$4 sm:$0xff]  }
 0x102   : > { %4307 = vmatpush1.bf16.msra.mxu0 %v8850_v7  ;;  %v8933_v7 = vld [vmem:[#allocation5 + $0xd7c] ss:$40 sps:$4 sm:$0xff]  }
 0x103   : > { %4519 = vmatpush1.bf16.msra.mxu1 %v8853_v8  ;;  %4308 = vmatprep.subr.bf16.mxu0 %v8858_v9  ;;  %v8928_v8 = vld [vmem:[#allocation5 + $0xd70] ss:$40 sps:$4 sm:$0xff]  }
 0x104   : > { %4520 = vmatprep.subr.bf16.mxu1 %v8861_v10  ;;  %v8931_v9 = vld [vmem:[#allocation5 + $0xd78] ss:$40 sps:$4 sm:$0xff]   ;;  %v8936_v10 = vld [vmem:[#allocation5 + $0xdc4] ss:$40 sps:$4 sm:$0xff]  }
 0x106   : > { %4309 = vmatpush1.bf16.msra.mxu0 %v8856_v11  ;;  %v8939_v11 = vld [vmem:[#allocation5 + $0xdcc] ss:$40 sps:$4 sm:$0xff]  }
 0x107   : > { %4521 = vmatpush1.bf16.msra.mxu1 %v8859_v12  ;;  %4331 = vmatprep.subr.bf16.mxu0 %v8864_v13  ;;  %v8934_v12 = vld [vmem:[#allocation5 + $0xdc0] ss:$40 sps:$4 sm:$0xff]  }
 0x108   : > { %4543 = vmatprep.subr.bf16.mxu1 %v8867_v14  ;;  %v8937_v13 = vld [vmem:[#allocation5 + $0xdc8] ss:$40 sps:$4 sm:$0xff]   ;;  %v8942_v14 = vld [vmem:[#allocation5 + $0xe14] ss:$40 sps:$4 sm:$0xff]  }
 0x109   : > { %4311 = vmatmul.mubr.bf16.vlgmr.msra.gmra.mrb[0].mxu0 %v10156_v17 }
 0x10a   : > { %4523 = vmatmul.mubr.bf16.vlgmr.msra.gmra.mrb[0].mxu1 %v10156_v17  ;;  %4332 = vmatpush1.bf16.msra.mxu0 %v8862_v15  ;;  %v8945_v15 = vld [vmem:[#allocation5 + $0xe1c] ss:$40 sps:$4 sm:$0xff]  }
 0x10b   : > { %4544 = vmatpush1.bf16.msra.mxu1 %v8865_v16  ;;  %4333 = vmatprep.subr.bf16.mxu0 %v8870_v20  ;;  %v8940_v16 = vld [vmem:[#allocation5 + $0xe10] ss:$40 sps:$4 sm:$0xff]   ;;  %v8951_v20 = vld [vmem:[#allocation5 + $0xe6c] ss:$40 sps:$4 sm:$0xff]  }
 0x10c   : > { %4545 = vmatprep.subr.bf16.mxu1 %v8873_v21  ;;  %4320 = vmatprep.mubr.bf16.mxu0 %v10160_v22  ;;  %v8946_v21 = vld [vmem:[#allocation5 + $0xe60] ss:$40 sps:$4 sm:$0xff]  }
 0x10d   : > { %4532 = vmatprep.mubr.bf16.mxu1 %v10160_v22 }
 0x10e   : > { %4334 = vmatpush1.bf16.msra.mxu0 %v8868_v23  ;;  %v8949_v23 = vld [vmem:[#allocation5 + $0xe68] ss:$40 sps:$4 sm:$0xff]  }
 0x10f   : > { %4546 = vmatpush1.bf16.msra.mxu1 %v8871_v24  ;;  %4335 = vmatprep.subr.bf16.mxu0 %v8876_v25  ;;  %v8954_v24 = vld [vmem:[#allocation5 + $0xeb4] ss:$40 sps:$4 sm:$0xff]  }
 0x110   : > { %4547 = vmatprep.subr.bf16.mxu1 %v8879_v26  ;;  %v8957_v25 = vld [vmem:[#allocation5 + $0xebc] ss:$40 sps:$4 sm:$0xff]   ;;  %v8952_v26 = vld [vmem:[#allocation5 + $0xeb0] ss:$40 sps:$4 sm:$0xff]  }
 0x111   : > { %4321 = vmatmul.mubr.bf16.gmra.mrb[4].mxu0 %v10169_v29 }
 0x112   : > { %4533 = vmatmul.mubr.bf16.gmra.mrb[4].mxu1 %v10169_v29  ;;  %4336 = vmatpush1.bf16.msra.mxu0 %v8874_v32  ;;  %v8955_v32 = vld [vmem:[#allocation5 + $0xeb8] ss:$40 sps:$4 sm:$0xff]  }
 0x113   : > { %4548 = vmatpush1.bf16.msra.mxu1 %v8877_v33  ;;  %4337 = vmatprep.subr.bf16.mxu0 %v8882_v34  ;;  %v8960_v33 = vld [vmem:[#allocation5 + $0xf04] ss:$40 sps:$4 sm:$0xff]  }
 0x114   : > { %4549 = vmatprep.subr.bf16.mxu1 %v8885_v35  ;;  %4363 = vmatprep.mubr.bf16.mxu0 %v10176_v36  ;;  %v8963_v34 = vld [vmem:[#allocation5 + $0xf0c] ss:$40 sps:$4 sm:$0xff]   ;;  %v8958_v35 = vld [vmem:[#allocation5 + $0xf00] ss:$40 sps:$4 sm:$0xff]  }
 0x115   : > { %4575 = vmatprep.mubr.bf16.mxu1 %v10176_v36 }
 0x116   : > { %4338 = vmatpush1.bf16.msra.mxu0 %v8880_v37  ;;  %v8961_v37 = vld [vmem:[#allocation5 + $0xf08] ss:$40 sps:$4 sm:$0xff]  }
 0x117   : > { %4550 = vmatpush1.bf16.msra.mxu1 %v8883_v39  ;;  %4339 = vmatprep.subr.bf16.mxu0 %v8888_v40  ;;  %v10184_v39 = vcombine.low %v10167_v27, %v10172_v30  ;;  %v299_v40 = vld [vmem:[%s10108_s27 + $0x50] sm:$0xff]  ;;  %v8972_v27 = vld [vmem:[#allocation5 + $0xfa4] ss:$40 sps:$4 sm:$0xff]  }
 0x118   : > { %4551 = vmatprep.subr.bf16.mxu1 %v8891_v41  ;;  %v303_v41 = vld [vmem:[%s10108_s27 + $0x70] sm:$0xff] }
 0x119   : > { %v8975_v30 = vld [vmem:[#allocation5 + $0xfac] ss:$40 sps:$4 sm:$0xff]  }
 0x11a   : > { %4340 = vmatpush1.bf16.msra.mxu0 %v8886_v42  ;;  %v8966_v42 = vld [vmem:[#allocation5 + $0xf54] ss:$40 sps:$4 sm:$0xff]  }
 0x11b   : > { %4552 = vmatpush1.bf16.msra.mxu1 %v8889_v43  ;;  %4341 = vmatprep.subr.bf16.mxu0 %v8894_v44  ;;  %v8969_v43 = vld [vmem:[#allocation5 + $0xf5c] ss:$40 sps:$4 sm:$0xff]   ;;  %v10188_v44 = vcombine.high %v299_v40, %v303_v41 }
 0x11c   : > { %4553 = vmatprep.subr.bf16.mxu1 %v8897_v45  ;;  %v8964_v45 = vld [vmem:[#allocation5 + $0xf50] ss:$40 sps:$4 sm:$0xff]  }
 0x11e   : > { %4342 = vmatpush1.bf16.msra.mxu0 %v8892_v46  ;;  %v8967_v46 = vld [vmem:[#allocation5 + $0xf58] ss:$40 sps:$4 sm:$0xff]  }
 0x11f   : > { %4554 = vmatpush1.bf16.msra.mxu1 %v8895_v47  ;;  %4343 = vmatprep.subr.bf16.mxu0 %v8900_v48  ;;  %v8970_v47 = vld [vmem:[#allocation5 + $0xfa0] ss:$40 sps:$4 sm:$0xff]  }
 0x120   : > { %4555 = vmatprep.subr.bf16.mxu1 %v8903_v49  ;;  %v8973_v48 = vld [vmem:[#allocation5 + $0xfa8] ss:$40 sps:$4 sm:$0xff]   ;;  %v10194_v49 = vcombine.low %v299_v40, %v303_v41  ;;  %v9038_v41 = vld [vmem:[#allocation5 + $0x1314] ss:$40 sps:$4 sm:$0xff]  }
 0x121   : > { %v9033_v40 = vld [vmem:[#allocation5 + $0x12c8] ss:$40 sps:$4 sm:$0xff]  }
 0x122   : > { %4344 = vmatpush1.bf16.msra.mxu0 %v8898_v51  ;;  %v10197_v51 = vld [vmem:[%s10108_s27 + $0x18] sm:$0xff] }
 0x123   : > { %4556 = vmatpush1.bf16.msra.mxu1 %v8901_v52  ;;  %4345 = vmatprep.subr.bf16.mxu0 %v8906_v53  ;;  %v10200_v52 = vld [vmem:[%s10108_s27 + $0x38] sm:$0xff] }
 0x124   : > { %4557 = vmatprep.subr.bf16.mxu1 %v8909_v54  ;;  %v8978_v53 = vld [vmem:[#allocation5 + $0xff4] ss:$40 sps:$4 sm:$0xff]  }
 0x125   : > { %v8981_v54 = vld [vmem:[#allocation5 + $0xffc] ss:$40 sps:$4 sm:$0xff]  }
 0x126   : > { %4346 = vmatpush1.bf16.msra.mxu0 %v8904_v55  ;;  %v10204_v55 = vcombine.high %v10197_v51, %v10200_v52 }
 0x127   : > { %4558 = vmatpush1.bf16.msra.mxu1 %v8907_v56  ;;  %4347 = vmatprep.subr.bf16.mxu0 %v8912_v57  ;;  %v8976_v56 = vld [vmem:[#allocation5 + $0xff0] ss:$40 sps:$4 sm:$0xff]  }
 0x128   : > { %4559 = vmatprep.subr.bf16.mxu1 %v8915_v58  ;;  %v8979_v57 = vld [vmem:[#allocation5 + $0xff8] ss:$40 sps:$4 sm:$0xff]   ;;  %v8984_v58 = vld [vmem:[#allocation5 + $0x1044] ss:$40 sps:$4 sm:$0xff]  }
 0x12a   : > { %4348 = vmatpush1.bf16.msra.mxu0 %v8910_v59  ;;  %v8987_v59 = vld [vmem:[#allocation5 + $0x104c] ss:$40 sps:$4 sm:$0xff]  }
 0x12b   : > { %4560 = vmatpush1.bf16.msra.mxu1 %v8913_v60  ;;  %4349 = vmatprep.subr.bf16.mxu0 %v8918_v61  ;;  %v8982_v60 = vld [vmem:[#allocation5 + $0x1040] ss:$40 sps:$4 sm:$0xff]  }
 0x12c   : > { %4561 = vmatprep.subr.bf16.mxu1 %v8921_v62  ;;  %v8985_v61 = vld [vmem:[#allocation5 + $0x1048] ss:$40 sps:$4 sm:$0xff]   ;;  %v8990_v62 = vld [vmem:[#allocation5 + $0x1094] ss:$40 sps:$4 sm:$0xff]  }
 0x12e   : > { %4350 = vmatpush1.bf16.msra.mxu0 %v8916_v63  ;;  %v8993_v63 = vld [vmem:[#allocation5 + $0x109c] ss:$40 sps:$4 sm:$0xff]  }
 0x12f   : > { %4562 = vmatpush1.bf16.msra.mxu1 %v8919_v0  ;;  %4351 = vmatprep.subr.bf16.mxu0 %v8924_v1  ;;  %v8988_v0 = vld [vmem:[#allocation5 + $0x1090] ss:$40 sps:$4 sm:$0xff]  }
 0x130   : > { %4563 = vmatprep.subr.bf16.mxu1 %v8927_v2  ;;  %v8991_v1 = vld [vmem:[#allocation5 + $0x1098] ss:$40 sps:$4 sm:$0xff]   ;;  %v8996_v2 = vld [vmem:[#allocation5 + $0x10e4] ss:$40 sps:$4 sm:$0xff]  }
 0x132   : > { %4352 = vmatpush1.bf16.msra.mxu0 %v8922_v3  ;;  %v8999_v3 = vld [vmem:[#allocation5 + $0x10ec] ss:$40 sps:$4 sm:$0xff]  }
 0x133   : > { %4564 = vmatpush1.bf16.msra.mxu1 %v8925_v4  ;;  %4353 = vmatprep.subr.bf16.mxu0 %v8930_v6  ;;  %v8994_v4 = vld [vmem:[#allocation5 + $0x10e0] ss:$40 sps:$4 sm:$0xff]  }
 0x134   : > { %4565 = vmatprep.subr.bf16.mxu1 %v8933_v7  ;;  %v8997_v6 = vld [vmem:[#allocation5 + $0x10e8] ss:$40 sps:$4 sm:$0xff]   ;;  %v9002_v7 = vld [vmem:[#allocation5 + $0x1134] ss:$40 sps:$4 sm:$0xff]  }
 0x136   : > { %4354 = vmatpush1.bf16.msra.mxu0 %v8928_v8  ;;  %v9005_v8 = vld [vmem:[#allocation5 + $0x113c] ss:$40 sps:$4 sm:$0xff]  }
 0x137   : > { %4566 = vmatpush1.bf16.msra.mxu1 %v8931_v9  ;;  %4355 = vmatprep.subr.bf16.mxu0 %v8936_v10  ;;  %v9000_v9 = vld [vmem:[#allocation5 + $0x1130] ss:$40 sps:$4 sm:$0xff]  }
 0x138   : > { %4567 = vmatprep.subr.bf16.mxu1 %v8939_v11  ;;  %v9003_v10 = vld [vmem:[#allocation5 + $0x1138] ss:$40 sps:$4 sm:$0xff]   ;;  %v9008_v11 = vld [vmem:[#allocation5 + $0x1184] ss:$40 sps:$4 sm:$0xff]  }
 0x13a   : > { %4356 = vmatpush1.bf16.msra.mxu0 %v8934_v12  ;;  %v9011_v12 = vld [vmem:[#allocation5 + $0x118c] ss:$40 sps:$4 sm:$0xff]  }
 0x13b   : > { %4568 = vmatpush1.bf16.msra.mxu1 %v8937_v13  ;;  %4357 = vmatprep.subr.bf16.mxu0 %v8942_v14  ;;  %v9006_v13 = vld [vmem:[#allocation5 + $0x1180] ss:$40 sps:$4 sm:$0xff]  }
 0x13c   : > { %4569 = vmatprep.subr.bf16.mxu1 %v8945_v15  ;;  %v9009_v14 = vld [vmem:[#allocation5 + $0x1188] ss:$40 sps:$4 sm:$0xff]   ;;  %v9014_v15 = vld [vmem:[#allocation5 + $0x11d4] ss:$40 sps:$4 sm:$0xff]  }
 0x13e   : > { %4358 = vmatpush1.bf16.msra.mxu0 %v8940_v16  ;;  %v9017_v16 = vld [vmem:[#allocation5 + $0x11dc] ss:$40 sps:$4 sm:$0xff]  }
 0x13f   : > { %4570 = vmatpush1.bf16.msra.mxu1 %v8943_v18  ;;  %4359 = vmatprep.subr.bf16.mxu0 %v8948_v19  ;;  %v9012_v18 = vld [vmem:[#allocation5 + $0x11d0] ss:$40 sps:$4 sm:$0xff]  }
 0x140   : > { %4571 = vmatprep.subr.bf16.mxu1 %v8951_v20  ;;  %v9015_v19 = vld [vmem:[#allocation5 + $0x11d8] ss:$40 sps:$4 sm:$0xff]   ;;  %v9020_v20 = vld [vmem:[#allocation5 + $0x1224] ss:$40 sps:$4 sm:$0xff]  }
 0x142   : > { %4360 = vmatpush1.bf16.msra.mxu0 %v8946_v21  ;;  %v9023_v21 = vld [vmem:[#allocation5 + $0x122c] ss:$40 sps:$4 sm:$0xff]  }
 0x143   : > { %4572 = vmatpush1.bf16.msra.mxu1 %v8949_v23  ;;  %4361 = vmatprep.subr.bf16.mxu0 %v8954_v24  ;;  %v9018_v23 = vld [vmem:[#allocation5 + $0x1220] ss:$40 sps:$4 sm:$0xff]  }
 0x144   : > { %4573 = vmatprep.subr.bf16.mxu1 %v8957_v25  ;;  %v9021_v24 = vld [vmem:[#allocation5 + $0x1228] ss:$40 sps:$4 sm:$0xff]   ;;  %v9026_v25 = vld [vmem:[#allocation5 + $0x1274] ss:$40 sps:$4 sm:$0xff]  }
 0x146   : > { %4362 = vmatpush1.bf16.msra.mxu0 %v8952_v26  ;;  %v9029_v26 = vld [vmem:[#allocation5 + $0x127c] ss:$40 sps:$4 sm:$0xff]  }
 0x147   : > { %4574 = vmatpush1.bf16.msra.mxu1 %v8955_v32  ;;  %4384 = vmatprep.subr.bf16.mxu0 %v8960_v33  ;;  %v9024_v32 = vld [vmem:[#allocation5 + $0x1270] ss:$40 sps:$4 sm:$0xff]  }
 0x148   : > { %4596 = vmatprep.subr.bf16.mxu1 %v8963_v34  ;;  %v9027_v33 = vld [vmem:[#allocation5 + $0x1278] ss:$40 sps:$4 sm:$0xff]   ;;  %v9032_v34 = vld [vmem:[#allocation5 + $0x12c4] ss:$40 sps:$4 sm:$0xff]  }
 0x149   : > { %4364 = vmatmul.mubr.bf16.vlgmr.msra.gmra.mrb[0].mxu0 %v10184_v39 }
 0x14a   : > { %4576 = vmatmul.mubr.bf16.vlgmr.msra.gmra.mrb[0].mxu1 %v10184_v39  ;;  %4385 = vmatpush1.bf16.msra.mxu0 %v8958_v35  ;;  %v9035_v35 = vld [vmem:[#allocation5 + $0x12cc] ss:$40 sps:$4 sm:$0xff]  }
 0x14b   : > { %4597 = vmatpush1.bf16.msra.mxu1 %v8961_v37  ;;  %4386 = vmatprep.subr.bf16.mxu0 %v8966_v42  ;;  %v9030_v37 = vld [vmem:[#allocation5 + $0x12c0] ss:$40 sps:$4 sm:$0xff]   ;;  %v9041_v42 = vld [vmem:[#allocation5 + $0x131c] ss:$40 sps:$4 sm:$0xff]  }
 0x14c   : > { %4598 = vmatprep.subr.bf16.mxu1 %v8969_v43  ;;  %4373 = vmatprep.mubr.bf16.mxu0 %v10188_v44  ;;  %v9036_v43 = vld [vmem:[#allocation5 + $0x1310] ss:$40 sps:$4 sm:$0xff]  }
 0x14d   : > { %4585 = vmatprep.mubr.bf16.mxu1 %v10188_v44 }
 0x14e   : > { %4387 = vmatpush1.bf16.msra.mxu0 %v8964_v45  ;;  %v9039_v45 = vld [vmem:[#allocation5 + $0x1318] ss:$40 sps:$4 sm:$0xff]  }
 0x14f   : > { %4599 = vmatpush1.bf16.msra.mxu1 %v8967_v46  ;;  %4388 = vmatprep.subr.bf16.mxu0 %v8972_v27  ;;  %v9044_v46 = vld [vmem:[#allocation5 + $0x1364] ss:$40 sps:$4 sm:$0xff]  }
 0x150   : > { %4600 = vmatprep.subr.bf16.mxu1 %v8975_v30  ;;  %v9047_v27 = vld [vmem:[#allocation5 + $0x136c] ss:$40 sps:$4 sm:$0xff]   ;;  %v9042_v30 = vld [vmem:[#allocation5 + $0x1360] ss:$40 sps:$4 sm:$0xff]  }
 0x151   : > { %4374 = vmatmul.mubr.bf16.gmra.mrb[4].mxu0 %v10194_v49 }
 0x152   : > { %4586 = vmatmul.mubr.bf16.gmra.mrb[4].mxu1 %v10194_v49  ;;  %4389 = vmatpush1.bf16.msra.mxu0 %v8970_v47  ;;  %v9045_v47 = vld [vmem:[#allocation5 + $0x1368] ss:$40 sps:$4 sm:$0xff]  }
 0x153   : > { %4601 = vmatpush1.bf16.msra.mxu1 %v8973_v48  ;;  %4390 = vmatprep.subr.bf16.mxu0 %v8978_v53  ;;  %v9050_v48 = vld [vmem:[#allocation5 + $0x13b4] ss:$40 sps:$4 sm:$0xff]  }
 0x154   : > { %4602 = vmatprep.subr.bf16.mxu1 %v8981_v54  ;;  %4416 = vmatprep.mubr.bf16.mxu0 %v10204_v55  ;;  %v9053_v53 = vld [vmem:[#allocation5 + $0x13bc] ss:$40 sps:$4 sm:$0xff]   ;;  %v9048_v54 = vld [vmem:[#allocation5 + $0x13b0] ss:$40 sps:$4 sm:$0xff]  }
 0x155   : > { %4628 = vmatprep.mubr.bf16.mxu1 %v10204_v55 }
 0x156   : > { %4391 = vmatpush1.bf16.msra.mxu0 %v8976_v56  ;;  %v9051_v56 = vld [vmem:[#allocation5 + $0x13b8] ss:$40 sps:$4 sm:$0xff]  }
 0x157   : > { %4603 = vmatpush1.bf16.msra.mxu1 %v8979_v57  ;;  %4392 = vmatprep.subr.bf16.mxu0 %v8984_v58  ;;  %v9056_v57 = vld [vmem:[#allocation5 + $0x14] ss:$40 sps:$4 sm:$0xff]  }
 0x158   : > { %4604 = vmatprep.subr.bf16.mxu1 %v8987_v59  ;;  %v9059_v58 = vld [vmem:[#allocation5 + $0x1c] ss:$40 sps:$4 sm:$0xff]   ;;  %v9054_v59 = vld [vmem:[#allocation5 + $0x10] ss:$40 sps:$4 sm:$0xff]  }
 0x15a   : > { %4393 = vmatpush1.bf16.msra.mxu0 %v8982_v60  ;;  %v9057_v60 = vld [vmem:[#allocation5 + $0x18] ss:$40 sps:$4 sm:$0xff]  }
 0x15b   : > { %4605 = vmatpush1.bf16.msra.mxu1 %v8985_v61  ;;  %4394 = vmatprep.subr.bf16.mxu0 %v8990_v62  ;;  %v10212_v61 = vcombine.low %v10197_v51, %v10200_v52  ;;  %v300_v62 = vld [vmem:[%s10108_s27 + $0x58] sm:$0xff] }
 0x15c   : > { %4606 = vmatprep.subr.bf16.mxu1 %v8993_v63  ;;  %v304_v63 = vld [vmem:[%s10108_s27 + $0x78] sm:$0xff]  ;;  %s7242_s27 = sshll.u32 %s10812_s23, 4  ;;  %s11099_s27 = int_to_ptr.vmem [resolvable:$true] %s7242_s27 }
 0x15d   : > { %v9068_v51 = vld [vmem:[#allocation5 + $0xb4] ss:$40 sps:$4 sm:$0xff]   ;;  %s9792_s6 = scalar_lea.vmem %s11099_s27, 28672  ;;  %p9799_p12 = scmp.lt.s32.totalorder %s11099_s27, %s9797_s12 }
 0x15e   : > { %4395 = vmatpush1.bf16.msra.mxu0 %v8988_v0  ;;  %v9062_v0 = vld [vmem:[#allocation5 + $0x64] ss:$40 sps:$4 sm:$0xff]   ;;  %p9793_p10 = scmp.ne.s32.totalorder %s11099_s27, %s9792_s6  ;;  %p9800_p2 = scmp.lt.s32.totalorder %s9798_s29, %s9792_s6 }
 0x15f   : > { %4607 = vmatpush1.bf16.msra.mxu1 %v8991_v1  ;;  %4396 = vmatprep.subr.bf16.mxu0 %v8996_v2  ;;  %v9065_v1 = vld [vmem:[#allocation5 + $0x6c] ss:$40 sps:$4 sm:$0xff]   ;;  %v10216_v2 = vcombine.high %v300_v62, %v304_v63  ;;  %v9071_v52 = vld [vmem:[#allocation5 + $0xbc] ss:$40 sps:$4 sm:$0xff]  }
 0x160   : > { %4608 = vmatprep.subr.bf16.mxu1 %v8999_v3  ;;  %v9060_v3 = vld [vmem:[#allocation5 + $0x60] ss:$40 sps:$4 sm:$0xff]   ;;  %p9794_p3 = pnand %p9793_p10, %p10056_p5  ;;  %p9801_p1 = por %p9800_p2, %p9799_p12 }
 0x162   : > { %4397 = vmatpush1.bf16.msra.mxu0 %v8994_v4  ;;  %v9063_v4 = vld [vmem:[#allocation5 + $0x68] ss:$40 sps:$4 sm:$0xff]   ;;  %p9795_p7 = pneg %p9794_p3 }
 0x163   : > { %4609 = vmatpush1.bf16.msra.mxu1 %v8997_v6  ;;  %4398 = vmatprep.subr.bf16.mxu0 %v9002_v7  ;;  %v10222_v6 = vcombine.low %v300_v62, %v304_v63  ;;  %v9066_v7 = vld [vmem:[#allocation5 + $0xb0] ss:$40 sps:$4 sm:$0xff]  }
 0x164   : > { %4610 = vmatprep.subr.bf16.mxu1 %v9005_v8  ;;  %v9069_v8 = vld [vmem:[#allocation5 + $0xb8] ss:$40 sps:$4 sm:$0xff]   ;;  %p9802_p4 = pnand %p9801_p1, %p9795_p7 }
 0x165   : > { %v9126_v62 = vld [vmem:[#allocation5 + $0x3d0] ss:$40 sps:$4 sm:$0xff]  }
 0x166   : > { %4399 = vmatpush1.bf16.msra.mxu0 %v9000_v9  ;;  %v9074_v9 = vld [vmem:[#allocation5 + $0x104] ss:$40 sps:$4 sm:$0xff]   ;;  %v9129_v63 = vld [vmem:[#allocation5 + $0x3d8] ss:$40 sps:$4 sm:$0xff]  }
 0x167   : > { %4611 = vmatpush1.bf16.msra.mxu1 %v9003_v10  ;;  %4400 = vmatprep.subr.bf16.mxu0 %v9008_v11  ;;  %v9077_v10 = vld [vmem:[#allocation5 + $0x10c] ss:$40 sps:$4 sm:$0xff]   ;;  %v9072_v11 = vld [vmem:[#allocation5 + $0x100] ss:$40 sps:$4 sm:$0xff]  }
 0x168   : > { %4612 = vmatprep.subr.bf16.mxu1 %v9011_v12  ;;  %v9075_v12 = vld [vmem:[#allocation5 + $0x108] ss:$40 sps:$4 sm:$0xff]  }
 0x16a   : > { %4401 = vmatpush1.bf16.msra.mxu0 %v9006_v13  ;;  %v9080_v13 = vld [vmem:[#allocation5 + $0x154] ss:$40 sps:$4 sm:$0xff]  }
 0x16b   : > { %4613 = vmatpush1.bf16.msra.mxu1 %v9009_v14  ;;  %4402 = vmatprep.subr.bf16.mxu0 %v9014_v15  ;;  %v9083_v14 = vld [vmem:[#allocation5 + $0x15c] ss:$40 sps:$4 sm:$0xff]   ;;  %v9078_v15 = vld [vmem:[#allocation5 + $0x150] ss:$40 sps:$4 sm:$0xff]  }
 0x16c   : > { %4614 = vmatprep.subr.bf16.mxu1 %v9017_v16  ;;  %v9081_v16 = vld [vmem:[#allocation5 + $0x158] ss:$40 sps:$4 sm:$0xff]  }
 0x16e   : > { %4403 = vmatpush1.bf16.msra.mxu0 %v9012_v18  ;;  %v9086_v18 = vld [vmem:[#allocation5 + $0x1a4] ss:$40 sps:$4 sm:$0xff]  }
 0x16f   : > { %4615 = vmatpush1.bf16.msra.mxu1 %v9015_v19  ;;  %4404 = vmatprep.subr.bf16.mxu0 %v9020_v20  ;;  %v9089_v19 = vld [vmem:[#allocation5 + $0x1ac] ss:$40 sps:$4 sm:$0xff]   ;;  %v9084_v20 = vld [vmem:[#allocation5 + $0x1a0] ss:$40 sps:$4 sm:$0xff]  }
 0x170   : > { %4616 = vmatprep.subr.bf16.mxu1 %v9023_v21  ;;  %v9087_v21 = vld [vmem:[#allocation5 + $0x1a8] ss:$40 sps:$4 sm:$0xff]  }
 0x172   : > { %4405 = vmatpush1.bf16.msra.mxu0 %v9018_v23  ;;  %v9092_v23 = vld [vmem:[#allocation5 + $0x1f4] ss:$40 sps:$4 sm:$0xff]  }
 0x173   : > { %4617 = vmatpush1.bf16.msra.mxu1 %v9021_v24  ;;  %4406 = vmatprep.subr.bf16.mxu0 %v9026_v25  ;;  %v9095_v24 = vld [vmem:[#allocation5 + $0x1fc] ss:$40 sps:$4 sm:$0xff]   ;;  %v9090_v25 = vld [vmem:[#allocation5 + $0x1f0] ss:$40 sps:$4 sm:$0xff]  }
 0x174   : > { %4618 = vmatprep.subr.bf16.mxu1 %v9029_v26  ;;  %v9093_v26 = vld [vmem:[#allocation5 + $0x1f8] ss:$40 sps:$4 sm:$0xff]  }
 0x176   : > { %4407 = vmatpush1.bf16.msra.mxu0 %v9024_v32  ;;  %v9098_v32 = vld [vmem:[#allocation5 + $0x244] ss:$40 sps:$4 sm:$0xff]  }
 0x177   : > { %4619 = vmatpush1.bf16.msra.mxu1 %v9027_v33  ;;  %4408 = vmatprep.subr.bf16.mxu0 %v9032_v34  ;;  %v9101_v33 = vld [vmem:[#allocation5 + $0x24c] ss:$40 sps:$4 sm:$0xff]   ;;  %v9096_v34 = vld [vmem:[#allocation5 + $0x240] ss:$40 sps:$4 sm:$0xff]  }
 0x178   : > { %4620 = vmatprep.subr.bf16.mxu1 %v9035_v35  ;;  %v9099_v35 = vld [vmem:[#allocation5 + $0x248] ss:$40 sps:$4 sm:$0xff]  }
 0x17a   : > { %4409 = vmatpush1.bf16.msra.mxu0 %v9030_v37  ;;  %v9104_v37 = vld [vmem:[#allocation5 + $0x294] ss:$40 sps:$4 sm:$0xff]  }
 0x17b   : > { %4621 = vmatpush1.bf16.msra.mxu1 %v9033_v40  ;;  %4410 = vmatprep.subr.bf16.mxu0 %v9038_v41  ;;  %v9107_v40 = vld [vmem:[#allocation5 + $0x29c] ss:$40 sps:$4 sm:$0xff]   ;;  %v9102_v41 = vld [vmem:[#allocation5 + $0x290] ss:$40 sps:$4 sm:$0xff]  }
 0x17c   : > { %4622 = vmatprep.subr.bf16.mxu1 %v9041_v42  ;;  %v9105_v42 = vld [vmem:[#allocation5 + $0x298] ss:$40 sps:$4 sm:$0xff]  }
 0x17e   : > { %4411 = vmatpush1.bf16.msra.mxu0 %v9036_v43  ;;  %v9110_v43 = vld [vmem:[#allocation5 + $0x2e4] ss:$40 sps:$4 sm:$0xff]  }
 0x17f   : > { %4623 = vmatpush1.bf16.msra.mxu1 %v9039_v45  ;;  %4412 = vmatprep.subr.bf16.mxu0 %v9044_v46  ;;  %v9113_v45 = vld [vmem:[#allocation5 + $0x2ec] ss:$40 sps:$4 sm:$0xff]   ;;  %v9108_v46 = vld [vmem:[#allocation5 + $0x2e0] ss:$40 sps:$4 sm:$0xff]  }
 0x180   : > { %4624 = vmatprep.subr.bf16.mxu1 %v9047_v27  ;;  %v9111_v27 = vld [vmem:[#allocation5 + $0x2e8] ss:$40 sps:$4 sm:$0xff]  }
 0x182   : > { %4413 = vmatpush1.bf16.msra.mxu0 %v9042_v30  ;;  %v9116_v30 = vld [vmem:[#allocation5 + $0x334] ss:$40 sps:$4 sm:$0xff]  }
 0x183   : > { %4625 = vmatpush1.bf16.msra.mxu1 %v9045_v47  ;;  %4414 = vmatprep.subr.bf16.mxu0 %v9050_v48  ;;  %v9119_v47 = vld [vmem:[#allocation5 + $0x33c] ss:$40 sps:$4 sm:$0xff]   ;;  %v9114_v48 = vld [vmem:[#allocation5 + $0x330] ss:$40 sps:$4 sm:$0xff]  }
 0x184   : > { %4626 = vmatprep.subr.bf16.mxu1 %v9053_v53  ;;  %v9117_v53 = vld [vmem:[#allocation5 + $0x338] ss:$40 sps:$4 sm:$0xff]  }
 0x186   : > { %4415 = vmatpush1.bf16.msra.mxu0 %v9048_v54  ;;  %v9122_v54 = vld [vmem:[#allocation5 + $0x384] ss:$40 sps:$4 sm:$0xff]  }
 0x187   : > { %4627 = vmatpush1.bf16.msra.mxu1 %v9051_v56  ;;  %4649 = vmatprep.subr.bf16.mxu0 %v9056_v57  ;;  %v9125_v56 = vld [vmem:[#allocation5 + $0x38c] ss:$40 sps:$4 sm:$0xff]   ;;  %v9120_v57 = vld [vmem:[#allocation5 + $0x380] ss:$40 sps:$4 sm:$0xff]  }
 0x188   : > { %4861 = vmatprep.subr.bf16.mxu1 %v9059_v58  ;;  %v9123_v58 = vld [vmem:[#allocation5 + $0x388] ss:$40 sps:$4 sm:$0xff]  }
 0x189   : > { %4417 = vmatmul.mubr.bf16.vlgmr.msra.gmra.mrb[0].mxu0 %v10212_v61 }
 0x18a   : > { %4629 = vmatmul.mubr.bf16.vlgmr.msra.gmra.mrb[0].mxu1 %v10212_v61  ;;  %4650 = vmatpush1.bf16.msra.mxu0 %v9054_v59  ;;  %v9128_v59 = vld [vmem:[#allocation5 + $0x3d4] ss:$40 sps:$4 sm:$0xff]  }
 0x18b   : > { %4862 = vmatpush1.bf16.msra.mxu1 %v9057_v60  ;;  %4651 = vmatprep.subr.bf16.mxu0 %v9062_v0  ;;  %v9131_v60 = vld [vmem:[#allocation5 + $0x3dc] ss:$40 sps:$4 sm:$0xff]  }
 0x18c   : > { %4863 = vmatprep.subr.bf16.mxu1 %v9065_v1  ;;  %4426 = vmatprep.mubr.bf16.mxu0 %v10216_v2  ;;  %v9134_v0 = vld [vmem:[#allocation5 + $0x424] ss:$40 sps:$4 sm:$0xff]  }
 0x18d   : > { %4638 = vmatprep.mubr.bf16.mxu1 %v10216_v2  ;;  %v9137_v1 = vld [vmem:[#allocation5 + $0x42c] ss:$40 sps:$4 sm:$0xff]  }
 0x18e   : > { %4652 = vmatpush1.bf16.msra.mxu0 %v9060_v3  ;;  %v9132_v3 = vld [vmem:[#allocation5 + $0x420] ss:$40 sps:$4 sm:$0xff]  }
 0x18f   : > { %4864 = vmatpush1.bf16.msra.mxu1 %v9063_v4  ;;  %4653 = vmatprep.subr.bf16.mxu0 %v9068_v51  ;;  %v9135_v4 = vld [vmem:[#allocation5 + $0x428] ss:$40 sps:$4 sm:$0xff]   ;;  %v9140_v51 = vld [vmem:[#allocation5 + $0x474] ss:$40 sps:$4 sm:$0xff]  }
 0x190   : > { %4865 = vmatprep.subr.bf16.mxu1 %v9071_v52  ;;  %v9143_v52 = vld [vmem:[#allocation5 + $0x47c] ss:$40 sps:$4 sm:$0xff]  }
 0x191   : > { %4427 = vmatmul.mubr.bf16.gmra.mrb[4].mxu0 %v10222_v6 }
 0x192   : > { %4639 = vmatmul.mubr.bf16.gmra.mrb[4].mxu1 %v10222_v6  ;;  %4654 = vmatpush1.bf16.msra.mxu0 %v9066_v7  ;;  %v9138_v7 = vld [vmem:[#allocation5 + $0x470] ss:$40 sps:$4 sm:$0xff]  }
 0x193   : > { %4866 = vmatpush1.bf16.msra.mxu1 %v9069_v8  ;;  %4655 = vmatprep.subr.bf16.mxu0 %v9074_v9  ;;  %v9141_v8 = vld [vmem:[#allocation5 + $0x478] ss:$40 sps:$4 sm:$0xff]   ;;  %v9146_v9 = vld [vmem:[#allocation5 + $0x4c4] ss:$40 sps:$4 sm:$0xff]  }
 0x194   : > { %4867 = vmatprep.subr.bf16.mxu1 %v9077_v10  ;;  %4681 = vmatprep.mubr.bf16.mxu0 %v10124_v50  ;;  %v9149_v10 = vld [vmem:[#allocation5 + $0x4cc] ss:$40 sps:$4 sm:$0xff]  }
 0x195   : > { %4893 = vmatprep.mubr.bf16.mxu1 %v10124_v50 }
 0x196   : > { %4656 = vmatpush1.bf16.msra.mxu0 %v9072_v11  ;;  %v9144_v11 = vld [vmem:[#allocation5 + $0x4c0] ss:$40 sps:$4 sm:$0xff]  }
 0x197   : > { %4868 = vmatpush1.bf16.msra.mxu1 %v9075_v12  ;;  %4657 = vmatprep.subr.bf16.mxu0 %v9080_v13  ;;  %v9147_v12 = vld [vmem:[#allocation5 + $0x4c8] ss:$40 sps:$4 sm:$0xff]   ;;  %v9152_v13 = vld [vmem:[#allocation5 + $0x514] ss:$40 sps:$4 sm:$0xff]  }
 0x198   : > { %4869 = vmatprep.subr.bf16.mxu1 %v9083_v14  ;;  %v9155_v14 = vld [vmem:[#allocation5 + $0x51c] ss:$40 sps:$4 sm:$0xff]  }
 0x19a   : > { %4658 = vmatpush1.bf16.msra.mxu0 %v9078_v15  ;;  %v9150_v15 = vld [vmem:[#allocation5 + $0x510] ss:$40 sps:$4 sm:$0xff]  }
 0x19b   : > { %4870 = vmatpush1.bf16.msra.mxu1 %v9081_v16  ;;  %4659 = vmatprep.subr.bf16.mxu0 %v9086_v18  ;;  %v9153_v16 = vld [vmem:[#allocation5 + $0x518] ss:$40 sps:$4 sm:$0xff]   ;;  %v9158_v18 = vld [vmem:[#allocation5 + $0x564] ss:$40 sps:$4 sm:$0xff]  }
 0x19c   : > { %4871 = vmatprep.subr.bf16.mxu1 %v9089_v19  ;;  %v9161_v19 = vld [vmem:[#allocation5 + $0x56c] ss:$40 sps:$4 sm:$0xff]  }
 0x19e   : > { %4660 = vmatpush1.bf16.msra.mxu0 %v9084_v20  ;;  %v9156_v20 = vld [vmem:[#allocation5 + $0x560] ss:$40 sps:$4 sm:$0xff]  }
 0x19f   : > { %4872 = vmatpush1.bf16.msra.mxu1 %v9087_v21  ;;  %4661 = vmatprep.subr.bf16.mxu0 %v9092_v23  ;;  %v9159_v21 = vld [vmem:[#allocation5 + $0x568] ss:$40 sps:$4 sm:$0xff]   ;;  %v9164_v23 = vld [vmem:[#allocation5 + $0x5b4] ss:$40 sps:$4 sm:$0xff]  }
 0x1a0   : > { %4873 = vmatprep.subr.bf16.mxu1 %v9095_v24  ;;  %v9167_v24 = vld [vmem:[#allocation5 + $0x5bc] ss:$40 sps:$4 sm:$0xff]  }
 0x1a2   : > { %4662 = vmatpush1.bf16.msra.mxu0 %v9090_v25  ;;  %v9162_v25 = vld [vmem:[#allocation5 + $0x5b0] ss:$40 sps:$4 sm:$0xff]  }
 0x1a3   : > { %4874 = vmatpush1.bf16.msra.mxu1 %v9093_v26  ;;  %4663 = vmatprep.subr.bf16.mxu0 %v9098_v32  ;;  %v9165_v26 = vld [vmem:[#allocation5 + $0x5b8] ss:$40 sps:$4 sm:$0xff]   ;;  %v9170_v32 = vld [vmem:[#allocation5 + $0x604] ss:$40 sps:$4 sm:$0xff]  }
 0x1a4   : > { %4875 = vmatprep.subr.bf16.mxu1 %v9101_v33  ;;  %v9173_v33 = vld [vmem:[#allocation5 + $0x60c] ss:$40 sps:$4 sm:$0xff]  }
 0x1a6   : > { %4664 = vmatpush1.bf16.msra.mxu0 %v9096_v34  ;;  %v9168_v34 = vld [vmem:[#allocation5 + $0x600] ss:$40 sps:$4 sm:$0xff]  }
 0x1a7   : > { %4876 = vmatpush1.bf16.msra.mxu1 %v9099_v35  ;;  %4665 = vmatprep.subr.bf16.mxu0 %v9104_v37  ;;  %v9171_v35 = vld [vmem:[#allocation5 + $0x608] ss:$40 sps:$4 sm:$0xff]   ;;  %v9176_v37 = vld [vmem:[#allocation5 + $0x654] ss:$40 sps:$4 sm:$0xff]  }
 0x1a8   : > { %4877 = vmatprep.subr.bf16.mxu1 %v9107_v40  ;;  %v9179_v40 = vld [vmem:[#allocation5 + $0x65c] ss:$40 sps:$4 sm:$0xff]  }
 0x1aa   : > { %4666 = vmatpush1.bf16.msra.mxu0 %v9102_v41  ;;  %v9174_v41 = vld [vmem:[#allocation5 + $0x650] ss:$40 sps:$4 sm:$0xff]  }
 0x1ab   : > { %4878 = vmatpush1.bf16.msra.mxu1 %v9105_v42  ;;  %4667 = vmatprep.subr.bf16.mxu0 %v9110_v43  ;;  %v9177_v42 = vld [vmem:[#allocation5 + $0x658] ss:$40 sps:$4 sm:$0xff]   ;;  %v9182_v43 = vld [vmem:[#allocation5 + $0x6a4] ss:$40 sps:$4 sm:$0xff]  }
 0x1ac   : > { %4879 = vmatprep.subr.bf16.mxu1 %v9113_v45  ;;  %v9185_v45 = vld [vmem:[#allocation5 + $0x6ac] ss:$40 sps:$4 sm:$0xff]  }
 0x1ae   : > { %4668 = vmatpush1.bf16.msra.mxu0 %v9108_v46  ;;  %v9180_v46 = vld [vmem:[#allocation5 + $0x6a0] ss:$40 sps:$4 sm:$0xff]  }
 0x1af   : > { %4880 = vmatpush1.bf16.msra.mxu1 %v9111_v27  ;;  %4669 = vmatprep.subr.bf16.mxu0 %v9116_v30  ;;  %v9183_v27 = vld [vmem:[#allocation5 + $0x6a8] ss:$40 sps:$4 sm:$0xff]   ;;  %v9188_v30 = vld [vmem:[#allocation5 + $0x6f4] ss:$40 sps:$4 sm:$0xff]  }
 0x1b0   : > { %4881 = vmatprep.subr.bf16.mxu1 %v9119_v47  ;;  %v9191_v47 = vld [vmem:[#allocation5 + $0x6fc] ss:$40 sps:$4 sm:$0xff]  }
 0x1b2   : > { %4670 = vmatpush1.bf16.msra.mxu0 %v9114_v48  ;;  %v9186_v48 = vld [vmem:[#allocation5 + $0x6f0] ss:$40 sps:$4 sm:$0xff]  }
 0x1b3   : > { %4882 = vmatpush1.bf16.msra.mxu1 %v9117_v53  ;;  %4671 = vmatprep.subr.bf16.mxu0 %v9122_v54  ;;  %v9189_v53 = vld [vmem:[#allocation5 + $0x6f8] ss:$40 sps:$4 sm:$0xff]   ;;  %v9194_v54 = vld [vmem:[#allocation5 + $0x744] ss:$40 sps:$4 sm:$0xff]  }
 0x1b4   : > { %4883 = vmatprep.subr.bf16.mxu1 %v9125_v56  ;;  %v9197_v56 = vld [vmem:[#allocation5 + $0x74c] ss:$40 sps:$4 sm:$0xff]  }
 0x1b6   : > { %4672 = vmatpush1.bf16.msra.mxu0 %v9120_v57  ;;  %v9192_v57 = vld [vmem:[#allocation5 + $0x740] ss:$40 sps:$4 sm:$0xff]  }
 0x1b7   : > { %4884 = vmatpush1.bf16.msra.mxu1 %v9123_v58  ;;  %4673 = vmatprep.subr.bf16.mxu0 %v9128_v59  ;;  %v9195_v58 = vld [vmem:[#allocation5 + $0x748] ss:$40 sps:$4 sm:$0xff]   ;;  %v9200_v59 = vld [vmem:[#allocation5 + $0x794] ss:$40 sps:$4 sm:$0xff]  }
 0x1b8   : > { %4885 = vmatprep.subr.bf16.mxu1 %v9131_v60  ;;  %v9203_v60 = vld [vmem:[#allocation5 + $0x79c] ss:$40 sps:$4 sm:$0xff]  }
 0x1ba   : > { %4674 = vmatpush1.bf16.msra.mxu0 %v9126_v62  ;;  %v9198_v62 = vld [vmem:[#allocation5 + $0x790] ss:$40 sps:$4 sm:$0xff]  }
 0x1bb   : > { %4886 = vmatpush1.bf16.msra.mxu1 %v9129_v63  ;;  %4675 = vmatprep.subr.bf16.mxu0 %v9134_v0  ;;  %v9201_v63 = vld [vmem:[#allocation5 + $0x798] ss:$40 sps:$4 sm:$0xff]   ;;  %v9206_v0 = vld [vmem:[#allocation5 + $0x7e4] ss:$40 sps:$4 sm:$0xff]  }
 0x1bc   : > { %4887 = vmatprep.subr.bf16.mxu1 %v9137_v1  ;;  %v9209_v1 = vld [vmem:[#allocation5 + $0x7ec] ss:$40 sps:$4 sm:$0xff]  }
 0x1be   : > { %4676 = vmatpush1.bf16.msra.mxu0 %v9132_v3  ;;  %v9204_v3 = vld [vmem:[#allocation5 + $0x7e0] ss:$40 sps:$4 sm:$0xff]  }
 0x1bf   : > { %4888 = vmatpush1.bf16.msra.mxu1 %v9135_v4  ;;  %4677 = vmatprep.subr.bf16.mxu0 %v9140_v51  ;;  %v9207_v4 = vld [vmem:[#allocation5 + $0x7e8] ss:$40 sps:$4 sm:$0xff]   ;;  %v9212_v51 = vld [vmem:[#allocation5 + $0x834] ss:$40 sps:$4 sm:$0xff]  }
 0x1c0   : > { %4889 = vmatprep.subr.bf16.mxu1 %v9143_v52  ;;  %v9215_v52 = vld [vmem:[#allocation5 + $0x83c] ss:$40 sps:$4 sm:$0xff]  }
 0x1c2   : > { %4678 = vmatpush1.bf16.msra.mxu0 %v9138_v7  ;;  %v9210_v7 = vld [vmem:[#allocation5 + $0x830] ss:$40 sps:$4 sm:$0xff]  }
 0x1c3   : > { %4890 = vmatpush1.bf16.msra.mxu1 %v9141_v8  ;;  %4679 = vmatprep.subr.bf16.mxu0 %v9146_v9  ;;  %v9213_v8 = vld [vmem:[#allocation5 + $0x838] ss:$40 sps:$4 sm:$0xff]   ;;  %v9218_v9 = vld [vmem:[#allocation5 + $0x884] ss:$40 sps:$4 sm:$0xff]  }
 0x1c4   : > { %4891 = vmatprep.subr.bf16.mxu1 %v9149_v10  ;;  %v9221_v10 = vld [vmem:[#allocation5 + $0x88c] ss:$40 sps:$4 sm:$0xff]  }
 0x1c6   : > { %4680 = vmatpush1.bf16.msra.mxu0 %v9144_v11  ;;  %v9216_v11 = vld [vmem:[#allocation5 + $0x880] ss:$40 sps:$4 sm:$0xff]  }
 0x1c7   : > { %4892 = vmatpush1.bf16.msra.mxu1 %v9147_v12  ;;  %4702 = vmatprep.subr.bf16.mxu0 %v9152_v13  ;;  %v9219_v12 = vld [vmem:[#allocation5 + $0x888] ss:$40 sps:$4 sm:$0xff]   ;;  %v9224_v13 = vld [vmem:[#allocation5 + $0x8d4] ss:$40 sps:$4 sm:$0xff]  }
 0x1c8   : > { %4914 = vmatprep.subr.bf16.mxu1 %v9155_v14  ;;  %v9227_v14 = vld [vmem:[#allocation5 + $0x8dc] ss:$40 sps:$4 sm:$0xff]  }
 0x1c9   : > { %4682 = vmatmul.mubr.bf16.vlgmr.msra.gmra.mrb[8].mxu0 %v10128_v5 }
 0x1ca   : > { %4894 = vmatmul.mubr.bf16.vlgmr.msra.gmra.mrb[8].mxu1 %v10128_v5  ;;  %4703 = vmatpush1.bf16.msra.mxu0 %v9150_v15  ;;  %v9222_v15 = vld [vmem:[#allocation5 + $0x8d0] ss:$40 sps:$4 sm:$0xff]  }
 0x1cb   : > { %4915 = vmatpush1.bf16.msra.mxu1 %v9153_v16  ;;  %4704 = vmatprep.subr.bf16.mxu0 %v9158_v18  ;;  %v9225_v16 = vld [vmem:[#allocation5 + $0x8d8] ss:$40 sps:$4 sm:$0xff]   ;;  %v9230_v18 = vld [vmem:[#allocation5 + $0x924] ss:$40 sps:$4 sm:$0xff]  }
 0x1cc   : > { %4916 = vmatprep.subr.bf16.mxu1 %v9161_v19  ;;  %4691 = vmatprep.mubr.bf16.mxu0 %v10134_v28  ;;  %v9233_v19 = vld [vmem:[#allocation5 + $0x92c] ss:$40 sps:$4 sm:$0xff]  }
 0x1cd   : > { %4903 = vmatprep.mubr.bf16.mxu1 %v10134_v28 }
 0x1ce   : > { %4705 = vmatpush1.bf16.msra.mxu0 %v9156_v20  ;;  %v9228_v20 = vld [vmem:[#allocation5 + $0x920] ss:$40 sps:$4 sm:$0xff]  }
 0x1cf   : > { %4917 = vmatpush1.bf16.msra.mxu1 %v9159_v21  ;;  %4706 = vmatprep.subr.bf16.mxu0 %v9164_v23  ;;  %v9231_v21 = vld [vmem:[#allocation5 + $0x928] ss:$40 sps:$4 sm:$0xff]   ;;  %v9236_v23 = vld [vmem:[#allocation5 + $0x974] ss:$40 sps:$4 sm:$0xff]  }
 0x1d0   : > { %4918 = vmatprep.subr.bf16.mxu1 %v9167_v24  ;;  %v9239_v24 = vld [vmem:[#allocation5 + $0x97c] ss:$40 sps:$4 sm:$0xff]  }
 0x1d1   : > { %4692 = vmatmul.mubr.bf16.gmra.mrb[12].mxu0 %v10136_v31 }
 0x1d2   : > { %4904 = vmatmul.mubr.bf16.gmra.mrb[12].mxu1 %v10136_v31  ;;  %4707 = vmatpush1.bf16.msra.mxu0 %v9162_v25  ;;  %v9234_v25 = vld [vmem:[#allocation5 + $0x970] ss:$40 sps:$4 sm:$0xff]  }
 0x1d3   : > { %4919 = vmatpush1.bf16.msra.mxu1 %v9165_v26  ;;  %4708 = vmatprep.subr.bf16.mxu0 %v9170_v32  ;;  %v9237_v26 = vld [vmem:[#allocation5 + $0x978] ss:$40 sps:$4 sm:$0xff]   ;;  %v9242_v32 = vld [vmem:[#allocation5 + $0x9c4] ss:$40 sps:$4 sm:$0xff]  }
 0x1d4   : > { %4920 = vmatprep.subr.bf16.mxu1 %v9173_v33  ;;  %4734 = vmatprep.mubr.bf16.mxu0 %v10150_v38  ;;  %v9245_v33 = vld [vmem:[#allocation5 + $0x9cc] ss:$40 sps:$4 sm:$0xff]  }
 0x1d5   : > { %4946 = vmatprep.mubr.bf16.mxu1 %v10150_v38 }
 0x1d6   : > { %4709 = vmatpush1.bf16.msra.mxu0 %v9168_v34  ;;  %v9240_v34 = vld [vmem:[#allocation5 + $0x9c0] ss:$40 sps:$4 sm:$0xff]  }
 0x1d7   : > { %4921 = vmatpush1.bf16.msra.mxu1 %v9171_v35  ;;  %4710 = vmatprep.subr.bf16.mxu0 %v9176_v37  ;;  %v9243_v35 = vld [vmem:[#allocation5 + $0x9c8] ss:$40 sps:$4 sm:$0xff]   ;;  %v9248_v37 = vld [vmem:[#allocation5 + $0xa14] ss:$40 sps:$4 sm:$0xff]  }
 0x1d8   : > { %4922 = vmatprep.subr.bf16.mxu1 %v9179_v40  ;;  %v9251_v40 = vld [vmem:[#allocation5 + $0xa1c] ss:$40 sps:$4 sm:$0xff]  }
 0x1da   : > { %4711 = vmatpush1.bf16.msra.mxu0 %v9174_v41  ;;  %v9246_v41 = vld [vmem:[#allocation5 + $0xa10] ss:$40 sps:$4 sm:$0xff]  }
 0x1db   : > { %4923 = vmatpush1.bf16.msra.mxu1 %v9177_v42  ;;  %4712 = vmatprep.subr.bf16.mxu0 %v9182_v43  ;;  %v9249_v42 = vld [vmem:[#allocation5 + $0xa18] ss:$40 sps:$4 sm:$0xff]   ;;  %v9254_v43 = vld [vmem:[#allocation5 + $0xa64] ss:$40 sps:$4 sm:$0xff]  }
 0x1dc   : > { %4924 = vmatprep.subr.bf16.mxu1 %v9185_v45  ;;  %v9257_v45 = vld [vmem:[#allocation5 + $0xa6c] ss:$40 sps:$4 sm:$0xff]  }
 0x1de   : > { %4713 = vmatpush1.bf16.msra.mxu0 %v9180_v46  ;;  %v9252_v46 = vld [vmem:[#allocation5 + $0xa60] ss:$40 sps:$4 sm:$0xff]  }
 0x1df   : > { %4925 = vmatpush1.bf16.msra.mxu1 %v9183_v27  ;;  %4714 = vmatprep.subr.bf16.mxu0 %v9188_v30  ;;  %v9255_v27 = vld [vmem:[#allocation5 + $0xa68] ss:$40 sps:$4 sm:$0xff]   ;;  %v9260_v30 = vld [vmem:[#allocation5 + $0xab4] ss:$40 sps:$4 sm:$0xff]  }
 0x1e0   : > { %4926 = vmatprep.subr.bf16.mxu1 %v9191_v47  ;;  %v9263_v47 = vld [vmem:[#allocation5 + $0xabc] ss:$40 sps:$4 sm:$0xff]  }
 0x1e2   : > { %4715 = vmatpush1.bf16.msra.mxu0 %v9186_v48  ;;  %v9258_v48 = vld [vmem:[#allocation5 + $0xab0] ss:$40 sps:$4 sm:$0xff]  }
 0x1e3   : > { %4927 = vmatpush1.bf16.msra.mxu1 %v9189_v53  ;;  %4716 = vmatprep.subr.bf16.mxu0 %v9194_v54  ;;  %v9261_v53 = vld [vmem:[#allocation5 + $0xab8] ss:$40 sps:$4 sm:$0xff]   ;;  %v9266_v54 = vld [vmem:[#allocation5 + $0xb04] ss:$40 sps:$4 sm:$0xff]  }
 0x1e4   : > { %4928 = vmatprep.subr.bf16.mxu1 %v9197_v56  ;;  %v9269_v56 = vld [vmem:[#allocation5 + $0xb0c] ss:$40 sps:$4 sm:$0xff]  }
 0x1e6   : > { %4717 = vmatpush1.bf16.msra.mxu0 %v9192_v57  ;;  %v9264_v57 = vld [vmem:[#allocation5 + $0xb00] ss:$40 sps:$4 sm:$0xff]  }
 0x1e7   : > { %4929 = vmatpush1.bf16.msra.mxu1 %v9195_v58  ;;  %4718 = vmatprep.subr.bf16.mxu0 %v9200_v59  ;;  %v9267_v58 = vld [vmem:[#allocation5 + $0xb08] ss:$40 sps:$4 sm:$0xff]   ;;  %v9272_v59 = vld [vmem:[#allocation5 + $0xb54] ss:$40 sps:$4 sm:$0xff]  }
 0x1e8   : > { %4930 = vmatprep.subr.bf16.mxu1 %v9203_v60  ;;  %v9275_v60 = vld [vmem:[#allocation5 + $0xb5c] ss:$40 sps:$4 sm:$0xff]  }
 0x1ea   : > { %4719 = vmatpush1.bf16.msra.mxu0 %v9198_v62  ;;  %v9270_v62 = vld [vmem:[#allocation5 + $0xb50] ss:$40 sps:$4 sm:$0xff]  }
 0x1eb   : > { %4931 = vmatpush1.bf16.msra.mxu1 %v9201_v63  ;;  %4720 = vmatprep.subr.bf16.mxu0 %v9206_v0  ;;  %v9273_v63 = vld [vmem:[#allocation5 + $0xb58] ss:$40 sps:$4 sm:$0xff]   ;;  %v9278_v0 = vld [vmem:[#allocation5 + $0xba4] ss:$40 sps:$4 sm:$0xff]  }
 0x1ec   : > { %4932 = vmatprep.subr.bf16.mxu1 %v9209_v1  ;;  %v9281_v1 = vld [vmem:[#allocation5 + $0xbac] ss:$40 sps:$4 sm:$0xff]  }
 0x1ee   : > { %4721 = vmatpush1.bf16.msra.mxu0 %v9204_v3  ;;  %v9276_v3 = vld [vmem:[#allocation5 + $0xba0] ss:$40 sps:$4 sm:$0xff]  }
 0x1ef   : > { %4933 = vmatpush1.bf16.msra.mxu1 %v9207_v4  ;;  %4722 = vmatprep.subr.bf16.mxu0 %v9212_v51  ;;  %v9279_v4 = vld [vmem:[#allocation5 + $0xba8] ss:$40 sps:$4 sm:$0xff]   ;;  %v9284_v51 = vld [vmem:[#allocation5 + $0xbf4] ss:$40 sps:$4 sm:$0xff]  }
 0x1f0   : > { %4934 = vmatprep.subr.bf16.mxu1 %v9215_v52  ;;  %v9287_v52 = vld [vmem:[#allocation5 + $0xbfc] ss:$40 sps:$4 sm:$0xff]  }
 0x1f2   : > { %4723 = vmatpush1.bf16.msra.mxu0 %v9210_v7  ;;  %v9282_v7 = vld [vmem:[#allocation5 + $0xbf0] ss:$40 sps:$4 sm:$0xff]  }
 0x1f3   : > { %4935 = vmatpush1.bf16.msra.mxu1 %v9213_v8  ;;  %4724 = vmatprep.subr.bf16.mxu0 %v9218_v9  ;;  %v9285_v8 = vld [vmem:[#allocation5 + $0xbf8] ss:$40 sps:$4 sm:$0xff]   ;;  %v9290_v9 = vld [vmem:[#allocation5 + $0xc44] ss:$40 sps:$4 sm:$0xff]  }
 0x1f4   : > { %4936 = vmatprep.subr.bf16.mxu1 %v9221_v10  ;;  %v9293_v10 = vld [vmem:[#allocation5 + $0xc4c] ss:$40 sps:$4 sm:$0xff]  }
 0x1f6   : > { %4725 = vmatpush1.bf16.msra.mxu0 %v9216_v11  ;;  %v9288_v11 = vld [vmem:[#allocation5 + $0xc40] ss:$40 sps:$4 sm:$0xff]  }
 0x1f7   : > { %4937 = vmatpush1.bf16.msra.mxu1 %v9219_v12  ;;  %4726 = vmatprep.subr.bf16.mxu0 %v9224_v13  ;;  %v9291_v12 = vld [vmem:[#allocation5 + $0xc48] ss:$40 sps:$4 sm:$0xff]   ;;  %v9296_v13 = vld [vmem:[#allocation5 + $0xc94] ss:$40 sps:$4 sm:$0xff]  }
 0x1f8   : > { %4938 = vmatprep.subr.bf16.mxu1 %v9227_v14  ;;  %v9299_v14 = vld [vmem:[#allocation5 + $0xc9c] ss:$40 sps:$4 sm:$0xff]  }
 0x1fa   : > { %4727 = vmatpush1.bf16.msra.mxu0 %v9222_v15  ;;  %v9294_v15 = vld [vmem:[#allocation5 + $0xc90] ss:$40 sps:$4 sm:$0xff]  }
 0x1fb   : > { %4939 = vmatpush1.bf16.msra.mxu1 %v9225_v16  ;;  %4728 = vmatprep.subr.bf16.mxu0 %v9230_v18  ;;  %v9297_v16 = vld [vmem:[#allocation5 + $0xc98] ss:$40 sps:$4 sm:$0xff]   ;;  %v9302_v18 = vld [vmem:[#allocation5 + $0xce4] ss:$40 sps:$4 sm:$0xff]  }
 0x1fc   : > { %4940 = vmatprep.subr.bf16.mxu1 %v9233_v19  ;;  %v9305_v19 = vld [vmem:[#allocation5 + $0xcec] ss:$40 sps:$4 sm:$0xff]  }
 0x1fe   : > { %4729 = vmatpush1.bf16.msra.mxu0 %v9228_v20  ;;  %v9300_v20 = vld [vmem:[#allocation5 + $0xce0] ss:$40 sps:$4 sm:$0xff]  }
 0x1ff   : > { %4941 = vmatpush1.bf16.msra.mxu1 %v9231_v21  ;;  %4730 = vmatprep.subr.bf16.mxu0 %v9236_v23  ;;  %v9303_v21 = vld [vmem:[#allocation5 + $0xce8] ss:$40 sps:$4 sm:$0xff]   ;;  %v9308_v23 = vld [vmem:[#allocation5 + $0xd34] ss:$40 sps:$4 sm:$0xff]  }
 0x200   : > { %4942 = vmatprep.subr.bf16.mxu1 %v9239_v24  ;;  %v9311_v24 = vld [vmem:[#allocation5 + $0xd3c] ss:$40 sps:$4 sm:$0xff]  }
 0x202   : > { %4731 = vmatpush1.bf16.msra.mxu0 %v9234_v25  ;;  %v9306_v25 = vld [vmem:[#allocation5 + $0xd30] ss:$40 sps:$4 sm:$0xff]  }
 0x203   : > { %4943 = vmatpush1.bf16.msra.mxu1 %v9237_v26  ;;  %4732 = vmatprep.subr.bf16.mxu0 %v9242_v32  ;;  %v9309_v26 = vld [vmem:[#allocation5 + $0xd38] ss:$40 sps:$4 sm:$0xff]   ;;  %v9314_v32 = vld [vmem:[#allocation5 + $0xd84] ss:$40 sps:$4 sm:$0xff]  }
 0x204   : > { %4944 = vmatprep.subr.bf16.mxu1 %v9245_v33  ;;  %v9317_v33 = vld [vmem:[#allocation5 + $0xd8c] ss:$40 sps:$4 sm:$0xff]  }
 0x206   : > { %4733 = vmatpush1.bf16.msra.mxu0 %v9240_v34  ;;  %v9312_v34 = vld [vmem:[#allocation5 + $0xd80] ss:$40 sps:$4 sm:$0xff]  }
 0x207   : > { %4945 = vmatpush1.bf16.msra.mxu1 %v9243_v35  ;;  %4755 = vmatprep.subr.bf16.mxu0 %v9248_v37  ;;  %v9315_v35 = vld [vmem:[#allocation5 + $0xd88] ss:$40 sps:$4 sm:$0xff]   ;;  %v9320_v37 = vld [vmem:[#allocation5 + $0xdd4] ss:$40 sps:$4 sm:$0xff]  }
 0x208   : > { %4967 = vmatprep.subr.bf16.mxu1 %v9251_v40  ;;  %v9323_v40 = vld [vmem:[#allocation5 + $0xddc] ss:$40 sps:$4 sm:$0xff]  }
 0x209   : > { %4735 = vmatmul.mubr.bf16.vlgmr.msra.gmra.mrb[8].mxu0 %v10156_v17 }
 0x20a   : > { %4947 = vmatmul.mubr.bf16.vlgmr.msra.gmra.mrb[8].mxu1 %v10156_v17  ;;  %4756 = vmatpush1.bf16.msra.mxu0 %v9246_v41  ;;  %v9318_v41 = vld [vmem:[#allocation5 + $0xdd0] ss:$40 sps:$4 sm:$0xff]  }
 0x20b   : > { %4968 = vmatpush1.bf16.msra.mxu1 %v9249_v42  ;;  %4757 = vmatprep.subr.bf16.mxu0 %v9254_v43  ;;  %v9321_v42 = vld [vmem:[#allocation5 + $0xdd8] ss:$40 sps:$4 sm:$0xff]   ;;  %v9326_v43 = vld [vmem:[#allocation5 + $0xe24] ss:$40 sps:$4 sm:$0xff]  }
 0x20c   : > { %4969 = vmatprep.subr.bf16.mxu1 %v9257_v45  ;;  %4744 = vmatprep.mubr.bf16.mxu0 %v10160_v22  ;;  %v9329_v45 = vld [vmem:[#allocation5 + $0xe2c] ss:$40 sps:$4 sm:$0xff]  }
 0x20d   : > { %4956 = vmatprep.mubr.bf16.mxu1 %v10160_v22 }
 0x20e   : > { %4758 = vmatpush1.bf16.msra.mxu0 %v9252_v46  ;;  %v9324_v46 = vld [vmem:[#allocation5 + $0xe20] ss:$40 sps:$4 sm:$0xff]  }
 0x20f   : > { %4970 = vmatpush1.bf16.msra.mxu1 %v9255_v27  ;;  %4759 = vmatprep.subr.bf16.mxu0 %v9260_v30  ;;  %v9327_v27 = vld [vmem:[#allocation5 + $0xe28] ss:$40 sps:$4 sm:$0xff]   ;;  %v9332_v30 = vld [vmem:[#allocation5 + $0xe74] ss:$40 sps:$4 sm:$0xff]  }
 0x210   : > { %4971 = vmatprep.subr.bf16.mxu1 %v9263_v47  ;;  %v9335_v47 = vld [vmem:[#allocation5 + $0xe7c] ss:$40 sps:$4 sm:$0xff]  }
 0x211   : > { %4745 = vmatmul.mubr.bf16.gmra.mrb[12].mxu0 %v10169_v29 }
 0x212   : > { %4957 = vmatmul.mubr.bf16.gmra.mrb[12].mxu1 %v10169_v29  ;;  %4760 = vmatpush1.bf16.msra.mxu0 %v9258_v48  ;;  %v9330_v48 = vld [vmem:[#allocation5 + $0xe70] ss:$40 sps:$4 sm:$0xff]  }
 0x213   : > { %4972 = vmatpush1.bf16.msra.mxu1 %v9261_v53  ;;  %4761 = vmatprep.subr.bf16.mxu0 %v9266_v54  ;;  %v9333_v53 = vld [vmem:[#allocation5 + $0xe78] ss:$40 sps:$4 sm:$0xff]   ;;  %v9338_v54 = vld [vmem:[#allocation5 + $0xec4] ss:$40 sps:$4 sm:$0xff]  }
 0x214   : > { %4973 = vmatprep.subr.bf16.mxu1 %v9269_v56  ;;  %4787 = vmatprep.mubr.bf16.mxu0 %v10176_v36  ;;  %v9341_v56 = vld [vmem:[#allocation5 + $0xecc] ss:$40 sps:$4 sm:$0xff]  }
 0x215   : > { %4999 = vmatprep.mubr.bf16.mxu1 %v10176_v36 }
 0x216   : > { %4762 = vmatpush1.bf16.msra.mxu0 %v9264_v57  ;;  %v9336_v57 = vld [vmem:[#allocation5 + $0xec0] ss:$40 sps:$4 sm:$0xff]  }
 0x217   : > { %4974 = vmatpush1.bf16.msra.mxu1 %v9267_v58  ;;  %4763 = vmatprep.subr.bf16.mxu0 %v9272_v59  ;;  %v9339_v58 = vld [vmem:[#allocation5 + $0xec8] ss:$40 sps:$4 sm:$0xff]   ;;  %v9344_v59 = vld [vmem:[#allocation5 + $0xf14] ss:$40 sps:$4 sm:$0xff]  }
 0x218   : > { %4975 = vmatprep.subr.bf16.mxu1 %v9275_v60  ;;  %v9347_v60 = vld [vmem:[#allocation5 + $0xf1c] ss:$40 sps:$4 sm:$0xff]  }
 0x21a   : > { %4764 = vmatpush1.bf16.msra.mxu0 %v9270_v62  ;;  %v9342_v62 = vld [vmem:[#allocation5 + $0xf10] ss:$40 sps:$4 sm:$0xff]  }
 0x21b   : > { %4976 = vmatpush1.bf16.msra.mxu1 %v9273_v63  ;;  %4765 = vmatprep.subr.bf16.mxu0 %v9278_v0  ;;  %v9345_v63 = vld [vmem:[#allocation5 + $0xf18] ss:$40 sps:$4 sm:$0xff]   ;;  %v9350_v0 = vld [vmem:[#allocation5 + $0xf64] ss:$40 sps:$4 sm:$0xff]  }
 0x21c   : > { %4977 = vmatprep.subr.bf16.mxu1 %v9281_v1  ;;  %v9353_v1 = vld [vmem:[#allocation5 + $0xf6c] ss:$40 sps:$4 sm:$0xff]  }
 0x21e   : > { %4766 = vmatpush1.bf16.msra.mxu0 %v9276_v3  ;;  %v9348_v3 = vld [vmem:[#allocation5 + $0xf60] ss:$40 sps:$4 sm:$0xff]  }
 0x21f   : > { %4978 = vmatpush1.bf16.msra.mxu1 %v9279_v4  ;;  %4767 = vmatprep.subr.bf16.mxu0 %v9284_v51  ;;  %v9351_v4 = vld [vmem:[#allocation5 + $0xf68] ss:$40 sps:$4 sm:$0xff]   ;;  %v9356_v51 = vld [vmem:[#allocation5 + $0xfb4] ss:$40 sps:$4 sm:$0xff]  }
 0x220   : > { %4979 = vmatprep.subr.bf16.mxu1 %v9287_v52  ;;  %v9359_v52 = vld [vmem:[#allocation5 + $0xfbc] ss:$40 sps:$4 sm:$0xff]  }
 0x222   : > { %4768 = vmatpush1.bf16.msra.mxu0 %v9282_v7  ;;  %v9354_v7 = vld [vmem:[#allocation5 + $0xfb0] ss:$40 sps:$4 sm:$0xff]  }
 0x223   : > { %4980 = vmatpush1.bf16.msra.mxu1 %v9285_v8  ;;  %4769 = vmatprep.subr.bf16.mxu0 %v9290_v9  ;;  %v9357_v8 = vld [vmem:[#allocation5 + $0xfb8] ss:$40 sps:$4 sm:$0xff]   ;;  %v9362_v9 = vld [vmem:[#allocation5 + $0x1004] ss:$40 sps:$4 sm:$0xff]  }
 0x224   : > { %4981 = vmatprep.subr.bf16.mxu1 %v9293_v10  ;;  %v9365_v10 = vld [vmem:[#allocation5 + $0x100c] ss:$40 sps:$4 sm:$0xff]  }
 0x226   : > { %4770 = vmatpush1.bf16.msra.mxu0 %v9288_v11  ;;  %v9360_v11 = vld [vmem:[#allocation5 + $0x1000] ss:$40 sps:$4 sm:$0xff]  }
 0x227   : > { %4982 = vmatpush1.bf16.msra.mxu1 %v9291_v12  ;;  %4771 = vmatprep.subr.bf16.mxu0 %v9296_v13  ;;  %v9363_v12 = vld [vmem:[#allocation5 + $0x1008] ss:$40 sps:$4 sm:$0xff]   ;;  %v9368_v13 = vld [vmem:[#allocation5 + $0x1054] ss:$40 sps:$4 sm:$0xff]  }
 0x228   : > { %4983 = vmatprep.subr.bf16.mxu1 %v9299_v14  ;;  %v9371_v14 = vld [vmem:[#allocation5 + $0x105c] ss:$40 sps:$4 sm:$0xff]  }
 0x22a   : > { %4772 = vmatpush1.bf16.msra.mxu0 %v9294_v15  ;;  %v9366_v15 = vld [vmem:[#allocation5 + $0x1050] ss:$40 sps:$4 sm:$0xff]  }
 0x22b   : > { %4984 = vmatpush1.bf16.msra.mxu1 %v9297_v16  ;;  %4773 = vmatprep.subr.bf16.mxu0 %v9302_v18  ;;  %v9369_v16 = vld [vmem:[#allocation5 + $0x1058] ss:$40 sps:$4 sm:$0xff]   ;;  %v9374_v18 = vld [vmem:[#allocation5 + $0x10a4] ss:$40 sps:$4 sm:$0xff]  }
 0x22c   : > { %4985 = vmatprep.subr.bf16.mxu1 %v9305_v19  ;;  %v9377_v19 = vld [vmem:[#allocation5 + $0x10ac] ss:$40 sps:$4 sm:$0xff]  }
 0x22e   : > { %4774 = vmatpush1.bf16.msra.mxu0 %v9300_v20  ;;  %v9372_v20 = vld [vmem:[#allocation5 + $0x10a0] ss:$40 sps:$4 sm:$0xff]  }
 0x22f   : > { %4986 = vmatpush1.bf16.msra.mxu1 %v9303_v21  ;;  %4775 = vmatprep.subr.bf16.mxu0 %v9308_v23  ;;  %v9375_v21 = vld [vmem:[#allocation5 + $0x10a8] ss:$40 sps:$4 sm:$0xff]   ;;  %v9380_v23 = vld [vmem:[#allocation5 + $0x10f4] ss:$40 sps:$4 sm:$0xff]  }
 0x230   : > { %4987 = vmatprep.subr.bf16.mxu1 %v9311_v24  ;;  %v9383_v24 = vld [vmem:[#allocation5 + $0x10fc] ss:$40 sps:$4 sm:$0xff]  }
 0x232   : > { %4776 = vmatpush1.bf16.msra.mxu0 %v9306_v25 }
 0x233   : > { %4988 = vmatpush1.bf16.msra.mxu1 %v9309_v26  ;;  %4777 = vmatprep.subr.bf16.mxu0 %v9314_v32 }
 0x234   : > { %4989 = vmatprep.subr.bf16.mxu1 %v9317_v33 }
 0x236   : > { %4778 = vmatpush1.bf16.msra.mxu0 %v9312_v34 }
 0x237   : > { %4990 = vmatpush1.bf16.msra.mxu1 %v9315_v35  ;;  %4779 = vmatprep.subr.bf16.mxu0 %v9320_v37  ;;  %v9378_v35 = vld [vmem:[#allocation5 + $0x10f0] ss:$40 sps:$4 sm:$0xff]  }
 0x238   : > { %4991 = vmatprep.subr.bf16.mxu1 %v9323_v40  ;;  %v9381_v37 = vld [vmem:[#allocation5 + $0x10f8] ss:$40 sps:$4 sm:$0xff]  }
 0x23a   : > { %4780 = vmatpush1.bf16.msra.mxu0 %v9318_v41 }
 0x23b   : > { %4992 = vmatpush1.bf16.msra.mxu1 %v9321_v42  ;;  %4781 = vmatprep.subr.bf16.mxu0 %v9326_v43  ;;  %v9386_v42 = vld [vmem:[#allocation5 + $0x1144] ss:$40 sps:$4 sm:$0xff]  }
 0x23c   : > { %4993 = vmatprep.subr.bf16.mxu1 %v9329_v45  ;;  %v9389_v43 = vld [vmem:[#allocation5 + $0x114c] ss:$40 sps:$4 sm:$0xff]  }
 0x23e   : > { %4782 = vmatpush1.bf16.msra.mxu0 %v9324_v46  ;;  %v9384_v46 = vld [vmem:[#allocation5 + $0x1140] ss:$40 sps:$4 sm:$0xff]  }
 0x23f   : > { %4994 = vmatpush1.bf16.msra.mxu1 %v9327_v27  ;;  %4783 = vmatprep.subr.bf16.mxu0 %v9332_v30  ;;  %v9387_v27 = vld [vmem:[#allocation5 + $0x1148] ss:$40 sps:$4 sm:$0xff]   ;;  %v9392_v30 = vld [vmem:[#allocation5 + $0x1194] ss:$40 sps:$4 sm:$0xff]  }
 0x240   : > { %4995 = vmatprep.subr.bf16.mxu1 %v9335_v47  ;;  %v9395_v47 = vld [vmem:[#allocation5 + $0x119c] ss:$40 sps:$4 sm:$0xff]  }
 0x242   : > { %4784 = vmatpush1.bf16.msra.mxu0 %v9330_v48 }
 0x243   : > { %4996 = vmatpush1.bf16.msra.mxu1 %v9333_v53  ;;  %4785 = vmatprep.subr.bf16.mxu0 %v9338_v54 }
 0x244   : > { %4997 = vmatprep.subr.bf16.mxu1 %v9341_v56 }
 0x246   : > { %4786 = vmatpush1.bf16.msra.mxu0 %v9336_v57 }
 0x247   : > { %4998 = vmatpush1.bf16.msra.mxu1 %v9339_v58  ;;  %4808 = vmatprep.subr.bf16.mxu0 %v9344_v59  ;;  %v9390_v58 = vld [vmem:[#allocation5 + $0x1190] ss:$40 sps:$4 sm:$0xff]  }
 0x248   : > { %5020 = vmatprep.subr.bf16.mxu1 %v9347_v60  ;;  %v9393_v59 = vld [vmem:[#allocation5 + $0x1198] ss:$40 sps:$4 sm:$0xff]  }
 0x249   : > { %4788 = vmatmul.mubr.bf16.vlgmr.msra.gmra.mrb[8].mxu0 %v10184_v39 }
 0x24a   : > { %5000 = vmatmul.mubr.bf16.vlgmr.msra.gmra.mrb[8].mxu1 %v10184_v39  ;;  %4809 = vmatpush1.bf16.msra.mxu0 %v9342_v62 }
 0x24b   : > { %5021 = vmatpush1.bf16.msra.mxu1 %v9345_v63  ;;  %4810 = vmatprep.subr.bf16.mxu0 %v9350_v0  ;;  %v9398_v63 = vld [vmem:[#allocation5 + $0x11e4] ss:$40 sps:$4 sm:$0xff]  }
 0x24c   : > { %5022 = vmatprep.subr.bf16.mxu1 %v9353_v1  ;;  %4797 = vmatprep.mubr.bf16.mxu0 %v10188_v44  ;;  %v9401_v0 = vld [vmem:[#allocation5 + $0x11ec] ss:$40 sps:$4 sm:$0xff]  }
 0x24d   : > { %5009 = vmatprep.mubr.bf16.mxu1 %v10188_v44 }
 0x24e   : > { %4811 = vmatpush1.bf16.msra.mxu0 %v9348_v3  ;;  %v9396_v3 = vld [vmem:[#allocation5 + $0x11e0] ss:$40 sps:$4 sm:$0xff]  }
 0x24f   : > { %5023 = vmatpush1.bf16.msra.mxu1 %v9351_v4  ;;  %4812 = vmatprep.subr.bf16.mxu0 %v9356_v51  ;;  %v9399_v4 = vld [vmem:[#allocation5 + $0x11e8] ss:$40 sps:$4 sm:$0xff]   ;;  %v9404_v51 = vld [vmem:[#allocation5 + $0x1234] ss:$40 sps:$4 sm:$0xff]  }
 0x250   : > { %5024 = vmatprep.subr.bf16.mxu1 %v9359_v52  ;;  %v9407_v52 = vld [vmem:[#allocation5 + $0x123c] ss:$40 sps:$4 sm:$0xff]  }
 0x251   : > { %4798 = vmatmul.mubr.bf16.gmra.mrb[12].mxu0 %v10194_v49 }
 0x252   : > { %5010 = vmatmul.mubr.bf16.gmra.mrb[12].mxu1 %v10194_v49  ;;  %4813 = vmatpush1.bf16.msra.mxu0 %v9354_v7  ;;  %v9402_v7 = vld [vmem:[#allocation5 + $0x1230] ss:$40 sps:$4 sm:$0xff]  }
 0x253   : > { %5025 = vmatpush1.bf16.msra.mxu1 %v9357_v8  ;;  %4814 = vmatprep.subr.bf16.mxu0 %v9362_v9  ;;  %v9405_v8 = vld [vmem:[#allocation5 + $0x1238] ss:$40 sps:$4 sm:$0xff]   ;;  %v9410_v9 = vld [vmem:[#allocation5 + $0x1284] ss:$40 sps:$4 sm:$0xff]  }
 0x254   : > { %5026 = vmatprep.subr.bf16.mxu1 %v9365_v10  ;;  %4840 = vmatprep.mubr.bf16.mxu0 %v10204_v55  ;;  %v9413_v10 = vld [vmem:[#allocation5 + $0x128c] ss:$40 sps:$4 sm:$0xff]  }
 0x255   : > { %5052 = vmatprep.mubr.bf16.mxu1 %v10204_v55 }
 0x256   : > { %4815 = vmatpush1.bf16.msra.mxu0 %v9360_v11  ;;  %v9408_v11 = vld [vmem:[#allocation5 + $0x1280] ss:$40 sps:$4 sm:$0xff]  }
 0x257   : > { %5027 = vmatpush1.bf16.msra.mxu1 %v9363_v12  ;;  %4816 = vmatprep.subr.bf16.mxu0 %v9368_v13  ;;  %v9411_v12 = vld [vmem:[#allocation5 + $0x1288] ss:$40 sps:$4 sm:$0xff]   ;;  %v9416_v13 = vld [vmem:[#allocation5 + $0x12d4] ss:$40 sps:$4 sm:$0xff]  }
 0x258   : > { %5028 = vmatprep.subr.bf16.mxu1 %v9371_v14  ;;  %v9419_v14 = vld [vmem:[#allocation5 + $0x12dc] ss:$40 sps:$4 sm:$0xff]  }
 0x25a   : > { %4817 = vmatpush1.bf16.msra.mxu0 %v9366_v15  ;;  %v9414_v15 = vld [vmem:[#allocation5 + $0x12d0] ss:$40 sps:$4 sm:$0xff]  }
 0x25b   : > { %5029 = vmatpush1.bf16.msra.mxu1 %v9369_v16  ;;  %4818 = vmatprep.subr.bf16.mxu0 %v9374_v18  ;;  %v9417_v16 = vld [vmem:[#allocation5 + $0x12d8] ss:$40 sps:$4 sm:$0xff]   ;;  %v9422_v18 = vld [vmem:[#allocation5 + $0x1324] ss:$40 sps:$4 sm:$0xff]  }
 0x25c   : > { %5030 = vmatprep.subr.bf16.mxu1 %v9377_v19  ;;  %v10252_v25 = vpop.f32.mrb[0].mxu0  ;;  %v9425_v19 = vld [vmem:[#allocation5 + $0x132c] ss:$40 sps:$4 sm:$0xff]  }
 0x25d   : > { %v10254_v26 = vpop.f32.mrb[0].mxu1  ;;  %v10256_v32 = vpop.f32.mrb[1].mxu0 }
 0x25e   : > { %v10258_v33 = vpop.f32.mrb[1].mxu1  ;;  %v10260_v34 = vpop.f32.mrb[2].mxu0  ;;  %4819 = vmatpush1.bf16.msra.mxu0 %v9372_v20  ;;  %v9420_v20 = vld [vmem:[#allocation5 + $0x1320] ss:$40 sps:$4 sm:$0xff]  }
 0x25f   : > { %5031 = vmatpush1.bf16.msra.mxu1 %v9375_v21  ;;  %v10262_v40 = vpop.f32.mrb[2].mxu1  ;;  %v10264_v41 = vpop.f32.mrb[3].mxu0  ;;  %4820 = vmatprep.subr.bf16.mxu0 %v9380_v23  ;;  %v9423_v21 = vld [vmem:[#allocation5 + $0x1328] ss:$40 sps:$4 sm:$0xff]   ;;  %v9428_v23 = vld [vmem:[#allocation5 + $0x1374] ss:$40 sps:$4 sm:$0xff]  }
 0x260   : > { %5032 = vmatprep.subr.bf16.mxu1 %v9383_v24  ;;  %v10266_v45 = vpop.f32.mrb[3].mxu1  ;;  %v9431_v24 = vld [vmem:[#allocation5 + $0x137c] ss:$40 sps:$4 sm:$0xff]  }
 0x262   : > { %4821 = vmatpush1.bf16.msra.mxu0 %v9378_v35  ;;  %v9426_v35 = vld [vmem:[#allocation5 + $0x1370] ss:$40 sps:$4 sm:$0xff]  }
 0x263   : > { %5033 = vmatpush1.bf16.msra.mxu1 %v9381_v37  ;;  %4822 = vmatprep.subr.bf16.mxu0 %v9386_v42  ;;  %v9429_v37 = vld [vmem:[#allocation5 + $0x1378] ss:$40 sps:$4 sm:$0xff]   ;;  %v9434_v42 = vld [vmem:[#allocation5 + $0x13c4] ss:$40 sps:$4 sm:$0xff]  }
 0x264   : > { %5034 = vmatprep.subr.bf16.mxu1 %v9389_v43  ;;  %v10268_v48 = vpop.f32.mrb[4].mxu0  ;;  %v9437_v43 = vld [vmem:[#allocation5 + $0x13cc] ss:$40 sps:$4 sm:$0xff]  }
 0x265   : > { %v10270_v53 = vpop.f32.mrb[4].mxu1  ;;  %v10272_v54 = vpop.f32.mrb[5].mxu0 }
 0x266   : > { %v10274_v56 = vpop.f32.mrb[5].mxu1  ;;  %v10276_v57 = vpop.f32.mrb[6].mxu0  ;;  %4823 = vmatpush1.bf16.msra.mxu0 %v9384_v46  ;;  %v9432_v46 = vld [vmem:[#allocation5 + $0x13c0] ss:$40 sps:$4 sm:$0xff]  }
 0x267   : > { %5035 = vmatpush1.bf16.msra.mxu1 %v9387_v27  ;;  %v10278_v60 = vpop.f32.mrb[6].mxu1  ;;  %v10280_v62 = vpop.f32.mrb[7].mxu0  ;;  %4824 = vmatprep.subr.bf16.mxu0 %v9392_v30  ;;  %v9435_v27 = vld [vmem:[#allocation5 + $0x13c8] ss:$40 sps:$4 sm:$0xff]   ;;  %v9440_v30 = vld [vmem:[#allocation5 + $0x24] ss:$40 sps:$4 sm:$0xff]  }
 0x268   : > { %5036 = vmatprep.subr.bf16.mxu1 %v9395_v47  ;;  %v10282_v1 = vpop.f32.mrb[7].mxu1  ;;  %v9438_v47 = vld [vmem:[#allocation5 + $0x20] ss:$40 sps:$4 sm:$0xff]  }
 0x26a   : > { %4825 = vmatpush1.bf16.msra.mxu0 %v9390_v58  ;;  %v9443_v58 = vld [vmem:[#allocation5 + $0x74] ss:$40 sps:$4 sm:$0xff]  }
 0x26b   : > { %5037 = vmatpush1.bf16.msra.mxu1 %v9393_v59  ;;  %4826 = vmatprep.subr.bf16.mxu0 %v9398_v63  ;;  %v9441_v59 = vld [vmem:[#allocation5 + $0x70] ss:$40 sps:$4 sm:$0xff]   ;;  %v9446_v63 = vld [vmem:[#allocation5 + $0xc4] ss:$40 sps:$4 sm:$0xff]  }
 0x26c   : > { %5038 = vmatprep.subr.bf16.mxu1 %v9401_v0  ;;  %v9444_v0 = vld [vmem:[#allocation5 + $0xc0] ss:$40 sps:$4 sm:$0xff]  }
 0x26e   : > { %4827 = vmatpush1.bf16.msra.mxu0 %v9396_v3  ;;  %v9449_v3 = vld [vmem:[#allocation5 + $0x114] ss:$40 sps:$4 sm:$0xff]  }
 0x26f   : > { %5039 = vmatpush1.bf16.msra.mxu1 %v9399_v4  ;;  %4828 = vmatprep.subr.bf16.mxu0 %v9404_v51  ;;  %v9447_v4 = vld [vmem:[#allocation5 + $0x110] ss:$40 sps:$4 sm:$0xff]   ;;  %v9452_v51 = vld [vmem:[#allocation5 + $0x164] ss:$40 sps:$4 sm:$0xff]  }
 0x270   : > { %5040 = vmatprep.subr.bf16.mxu1 %v9407_v52  ;;  %v9450_v52 = vld [vmem:[#allocation5 + $0x160] ss:$40 sps:$4 sm:$0xff]  }
 0x272   : > { %4829 = vmatpush1.bf16.msra.mxu0 %v9402_v7  ;;  %v9455_v7 = vld [vmem:[#allocation5 + $0x1b4] ss:$40 sps:$4 sm:$0xff]  }
 0x273   : > { %5041 = vmatpush1.bf16.msra.mxu1 %v9405_v8  ;;  %4830 = vmatprep.subr.bf16.mxu0 %v9410_v9  ;;  %v9453_v8 = vld [vmem:[#allocation5 + $0x1b0] ss:$40 sps:$4 sm:$0xff]   ;;  %v9458_v9 = vld [vmem:[#allocation5 + $0x204] ss:$40 sps:$4 sm:$0xff]  }
 0x274   : > { %5042 = vmatprep.subr.bf16.mxu1 %v9413_v10  ;;  %v9456_v10 = vld [vmem:[#allocation5 + $0x200] ss:$40 sps:$4 sm:$0xff]  }
 0x276   : > { %4831 = vmatpush1.bf16.msra.mxu0 %v9408_v11  ;;  %v9461_v11 = vld [vmem:[#allocation5 + $0x254] ss:$40 sps:$4 sm:$0xff]  }
 0x277   : > { %5043 = vmatpush1.bf16.msra.mxu1 %v9411_v12  ;;  %4832 = vmatprep.subr.bf16.mxu0 %v9416_v13  ;;  %v9459_v12 = vld [vmem:[#allocation5 + $0x250] ss:$40 sps:$4 sm:$0xff]   ;;  %v9464_v13 = vld [vmem:[#allocation5 + $0x2a4] ss:$40 sps:$4 sm:$0xff]  }
 0x278   : > { %5044 = vmatprep.subr.bf16.mxu1 %v9419_v14  ;;  %v9467_v14 = vld [vmem:[#allocation5 + $0x2f4] ss:$40 sps:$4 sm:$0xff]  }
 0x27a   : > { %4833 = vmatpush1.bf16.msra.mxu0 %v9414_v15  ;;  %v9465_v15 = vld [vmem:[#allocation5 + $0x2f0] ss:$40 sps:$4 sm:$0xff]  }
 0x27b   : > { %5045 = vmatpush1.bf16.msra.mxu1 %v9417_v16  ;;  %4834 = vmatprep.subr.bf16.mxu0 %v9422_v18  ;;  %v9470_v16 = vld [vmem:[#allocation5 + $0x344] ss:$40 sps:$4 sm:$0xff]   ;;  %v9468_v18 = vld [vmem:[#allocation5 + $0x340] ss:$40 sps:$4 sm:$0xff]  }
 0x27c   : > { %5046 = vmatprep.subr.bf16.mxu1 %v9425_v19  ;;  %v9473_v19 = vld [vmem:[#allocation5 + $0x394] ss:$40 sps:$4 sm:$0xff]  }
 0x27e   : > { %4835 = vmatpush1.bf16.msra.mxu0 %v9420_v20  ;;  %v9471_v20 = vld [vmem:[#allocation5 + $0x390] ss:$40 sps:$4 sm:$0xff]  }
 0x27f   : > { %5047 = vmatpush1.bf16.msra.mxu1 %v9423_v21  ;;  %4836 = vmatprep.subr.bf16.mxu0 %v9428_v23  ;;  %v9476_v21 = vld [vmem:[#allocation5 + $0x3e4] ss:$40 sps:$4 sm:$0xff]   ;;  %v9474_v23 = vld [vmem:[#allocation5 + $0x3e0] ss:$40 sps:$4 sm:$0xff]  }
 0x280   : > { %5048 = vmatprep.subr.bf16.mxu1 %v9431_v24  ;;  %v9479_v24 = vld [vmem:[#allocation5 + $0x434] ss:$40 sps:$4 sm:$0xff]  }
 0x282   : > { %4837 = vmatpush1.bf16.msra.mxu0 %v9426_v35  ;;  %v9477_v35 = vld [vmem:[#allocation5 + $0x430] ss:$40 sps:$4 sm:$0xff]  }
 0x283   : > { %5049 = vmatpush1.bf16.msra.mxu1 %v9429_v37  ;;  %4838 = vmatprep.subr.bf16.mxu0 %v9434_v42  ;;  %v9482_v37 = vld [vmem:[#allocation5 + $0x484] ss:$40 sps:$4 sm:$0xff]   ;;  %v9480_v42 = vld [vmem:[#allocation5 + $0x480] ss:$40 sps:$4 sm:$0xff]  }
 0x284   : > { %5050 = vmatprep.subr.bf16.mxu1 %v9437_v43  ;;  %v9485_v43 = vld [vmem:[#allocation5 + $0x4d4] ss:$40 sps:$4 sm:$0xff]  }
 0x286   : > { %4839 = vmatpush1.bf16.msra.mxu0 %v9432_v46  ;;  %v9483_v46 = vld [vmem:[#allocation5 + $0x4d0] ss:$40 sps:$4 sm:$0xff]  }
 0x287   : > { %5051 = vmatpush1.bf16.msra.mxu1 %v9435_v27  ;;  %5073 = vmatprep.subr.bf16.mxu0 %v9440_v30  ;;  %v9488_v27 = vld [vmem:[#allocation5 + $0x524] ss:$40 sps:$4 sm:$0xff]  }
 0x288   : > { %v9582_v30 = vld [vmem:[#allocation7 + $0x40] sm:$0xff]  }
 0x289   : > { %4841 = vmatmul.mubr.bf16.vlgmr.msra.gmra.mrb[8].mxu0 %v10212_v61  ;;  %8340 = vmatprep.subr.bf16.mxu1 %v9582_v30  ;;  %v9521_v30 = vld [vmem:[#allocation5 + $0x894] ss:$40 sps:$4 sm:$0xff]  }
 0x28a   : > { %5053 = vmatmul.mubr.bf16.vlgmr.msra.gmra.mrb[8].mxu1 %v10212_v61  ;;  %5074 = vmatpush1.bf16.msra.mxu0 %v9438_v47  ;;  %v9583_v47 = vld [vmem:[#allocation7] sm:$0xff]  }
 0x28b   : > { %4850 = vmatprep.mubr.bf16.mxu0 %v10216_v2  ;;  %5075 = vmatprep.subr.bf16.mxu0 %v9443_v58  ;;  %v9486_v58 = vld [vmem:[#allocation5 + $0x520] ss:$40 sps:$4 sm:$0xff]  }
 0x28c   : > { %5062 = vmatprep.mubr.bf16.mxu1 %v10216_v2  ;;  %8341 = vmatpush3.bf16.msra.mxu1 %v9583_v47  ;;  %v9519_v47 = vld [vmem:[#allocation5 + $0x890] ss:$40 sps:$4 sm:$0xff]  }
 0x28e   : > { %5076 = vmatpush1.bf16.msra.mxu0 %v9441_v59  ;;  %v9491_v59 = vld [vmem:[#allocation5 + $0x574] ss:$40 sps:$4 sm:$0xff]  }
 0x28f   : > { %5077 = vmatprep.subr.bf16.mxu0 %v9446_v63  ;;  %v9587_v63 = vld [vmem:[#allocation7 + $0x48] sm:$0xff]  }
 0x290   : > { %8342 = vmatprep.subr.bf16.mxu1 %v9587_v63  ;;  %v9527_v63 = vld [vmem:[#allocation5 + $0x934] ss:$40 sps:$4 sm:$0xff]  }
 0x291   : > { %4851 = vmatmul.mubr.bf16.gmra.mrb[12].mxu0 %v10222_v6 }
 0x292   : > { %5063 = vmatmul.mubr.bf16.gmra.mrb[12].mxu1 %v10222_v6  ;;  %5078 = vmatpush1.bf16.msra.mxu0 %v9444_v0  ;;  %v9588_v0 = vld [vmem:[#allocation7 + $0x8] sm:$0xff]  }
 0x293   : > { %5105 = vmatprep.mubr.bf16.mxu0 %v10124_v50  ;;  %5079 = vmatprep.subr.bf16.mxu0 %v9449_v3  ;;  %v9462_v50 = vld [vmem:[#allocation5 + $0x2a0] ss:$40 sps:$4 sm:$0xff]   ;;  %v9489_v3 = vld [vmem:[#allocation5 + $0x570] ss:$40 sps:$4 sm:$0xff]  }
 0x294   : > { %8343 = vmatpush3.bf16.msra.mxu1 %v9588_v0  ;;  %v9525_v0 = vld [vmem:[#allocation5 + $0x930] ss:$40 sps:$4 sm:$0xff]  }
 0x296   : > { %5080 = vmatpush1.bf16.msra.mxu0 %v9447_v4  ;;  %v9494_v4 = vld [vmem:[#allocation5 + $0x5c4] ss:$40 sps:$4 sm:$0xff]  }
 0x297   : > { %5081 = vmatprep.subr.bf16.mxu0 %v9452_v51  ;;  %v9592_v51 = vld [vmem:[#allocation7 + $0x50] sm:$0xff]  }
 0x298   : > { %8344 = vmatprep.subr.bf16.mxu1 %v9592_v51  ;;  %v9533_v51 = vld [vmem:[#allocation5 + $0x9d4] ss:$40 sps:$4 sm:$0xff]  }
 0x29a   : > { %5082 = vmatpush1.bf16.msra.mxu0 %v9450_v52  ;;  %v9593_v52 = vld [vmem:[#allocation7 + $0x10] sm:$0xff]  }
 0x29b   : > { %5083 = vmatprep.subr.bf16.mxu0 %v9455_v7  ;;  %v9492_v7 = vld [vmem:[#allocation5 + $0x5c0] ss:$40 sps:$4 sm:$0xff]   ;;  %8345 = vmatpush3.bf16.msra.mxu1 %v9593_v52  ;;  %v9531_v52 = vld [vmem:[#allocation5 + $0x9d0] ss:$40 sps:$4 sm:$0xff]  }
 0x29e   : > { %5084 = vmatpush1.bf16.msra.mxu0 %v9453_v8  ;;  %v9497_v8 = vld [vmem:[#allocation5 + $0x614] ss:$40 sps:$4 sm:$0xff]  }
 0x29f   : > { %5085 = vmatprep.subr.bf16.mxu0 %v9458_v9  ;;  %v9597_v9 = vld [vmem:[#allocation7 + $0x58] sm:$0xff]  }
 0x2a0   : > { %8346 = vmatprep.subr.bf16.mxu1 %v9597_v9  ;;  %v9539_v9 = vld [vmem:[#allocation5 + $0xa74] ss:$40 sps:$4 sm:$0xff]  }
 0x2a2   : > { %5086 = vmatpush1.bf16.msra.mxu0 %v9456_v10  ;;  %v9495_v10 = vld [vmem:[#allocation5 + $0x610] ss:$40 sps:$4 sm:$0xff]  }
 0x2a3   : > { %5087 = vmatprep.subr.bf16.mxu0 %v9461_v11  ;;  %v9602_v11 = vld [vmem:[#allocation7 + $0x60] sm:$0xff]  }
 0x2a6   : > { %5088 = vmatpush1.bf16.msra.mxu0 %v9459_v12  ;;  %v9603_v12 = vld [vmem:[#allocation7 + $0x20] sm:$0xff]  }
 0x2a7   : > { %5089 = vmatprep.subr.bf16.mxu0 %v9464_v13  ;;  %v9498_v13 = vld [vmem:[#allocation5 + $0x660] ss:$40 sps:$4 sm:$0xff]  }
 0x2aa   : > { %5090 = vmatpush1.bf16.msra.mxu0 %v9462_v50  ;;  %v9503_v50 = vld [vmem:[#allocation5 + $0x6b4] ss:$40 sps:$4 sm:$0xff]  }
 0x2ab   : > { %5091 = vmatprep.subr.bf16.mxu0 %v9467_v14  ;;  %v9607_v14 = vld [vmem:[#allocation7 + $0x68] sm:$0xff]  }
 0x2ae   : > { %5092 = vmatpush1.bf16.msra.mxu0 %v9465_v15  ;;  %v9608_v15 = vld [vmem:[#allocation7 + $0x28] sm:$0xff]  }
 0x2af   : > { %5093 = vmatprep.subr.bf16.mxu0 %v9470_v16  ;;  %v9506_v16 = vld [vmem:[#allocation5 + $0x704] ss:$40 sps:$4 sm:$0xff]  }
 0x2b2   : > { %5094 = vmatpush1.bf16.msra.mxu0 %v9468_v18  ;;  %v9613_v18 = vld [vmem:[#allocation7 + $0x30] sm:$0xff]  }
 0x2b3   : > { %5095 = vmatprep.subr.bf16.mxu0 %v9473_v19  ;;  %v9504_v19 = vld [vmem:[#allocation5 + $0x700] ss:$40 sps:$4 sm:$0xff]  }
 0x2b6   : > { %5096 = vmatpush1.bf16.msra.mxu0 %v9471_v20  ;;  %v9509_v20 = vld [vmem:[#allocation5 + $0x754] ss:$40 sps:$4 sm:$0xff]  }
 0x2b7   : > { %5097 = vmatprep.subr.bf16.mxu0 %v9476_v21  ;;  %v9617_v21 = vld [vmem:[#allocation7 + $0x78] sm:$0xff]  }
 0x2ba   : > { %5098 = vmatpush1.bf16.msra.mxu0 %v9474_v23  ;;  %v9618_v23 = vld [vmem:[#allocation7 + $0x38] sm:$0xff]  }
 0x2bb   : > { %5099 = vmatprep.subr.bf16.mxu0 %v9479_v24  ;;  %v9507_v24 = vld [vmem:[#allocation5 + $0x750] ss:$40 sps:$4 sm:$0xff]  }
 0x2be   : > { %5100 = vmatpush1.bf16.msra.mxu0 %v9477_v35  ;;  %v9512_v35 = vld [vmem:[#allocation5 + $0x7a4] ss:$40 sps:$4 sm:$0xff]  }
 0x2bf   : > { %5101 = vmatprep.subr.bf16.mxu0 %v9482_v37  ;;  %v9510_v37 = vld [vmem:[#allocation5 + $0x7a0] ss:$40 sps:$4 sm:$0xff]  }
 0x2c2   : > { %5102 = vmatpush1.bf16.msra.mxu0 %v9480_v42  ;;  %v9515_v42 = vld [vmem:[#allocation5 + $0x7f4] ss:$40 sps:$4 sm:$0xff]  }
 0x2c3   : > { %5103 = vmatprep.subr.bf16.mxu0 %v9485_v43  ;;  %v9513_v43 = vld [vmem:[#allocation5 + $0x7f0] ss:$40 sps:$4 sm:$0xff]  }
 0x2c6   : > { %5104 = vmatpush1.bf16.msra.mxu0 %v9483_v46  ;;  %v9518_v46 = vld [vmem:[#allocation5 + $0x844] ss:$40 sps:$4 sm:$0xff]  }
 0x2c7   : > { %5126 = vmatprep.subr.bf16.mxu0 %v9488_v27  ;;  %v9516_v27 = vld [vmem:[#allocation5 + $0x840] ss:$40 sps:$4 sm:$0xff]  }
 0x2c9   : > { %5106 = vmatmul.mubr.bf16.vlgmr.msra.gmra.mrb[16].mxu0 %v10128_v5  ;;  %v9598_v5 = vld [vmem:[#allocation7 + $0x18] sm:$0xff]  }
 0x2ca   : > { %5127 = vmatpush1.bf16.msra.mxu0 %v9486_v58  ;;  %5115 = vmatprep.mubr.bf16.mxu0 %v10134_v28  ;;  %v9500_v28 = vld [vmem:[#allocation5 + $0x664] ss:$40 sps:$4 sm:$0xff]  }
 0x2cb   : > { %5128 = vmatprep.subr.bf16.mxu0 %v9491_v59  ;;  %8347 = vmatpush3.bf16.msra.mxu1 %v9598_v5  ;;  %v9524_v58 = vld [vmem:[#allocation5 + $0x8e4] ss:$40 sps:$4 sm:$0xff]   ;;  %v9522_v59 = vld [vmem:[#allocation5 + $0x8e0] ss:$40 sps:$4 sm:$0xff]   ;;  %v9537_v5 = vld [vmem:[#allocation5 + $0xa70] ss:$40 sps:$4 sm:$0xff]  }
 0x2cc   : > { %8348 = vmatprep.subr.bf16.mxu1 %v9602_v11  ;;  %v9545_v11 = vld [vmem:[#allocation5 + $0xb14] ss:$40 sps:$4 sm:$0xff]  }
 0x2ce   : > { %5129 = vmatpush1.bf16.msra.mxu0 %v9489_v3  ;;  %v9530_v3 = vld [vmem:[#allocation5 + $0x984] ss:$40 sps:$4 sm:$0xff]  }
 0x2cf   : > { %5130 = vmatprep.subr.bf16.mxu0 %v9494_v4  ;;  %8349 = vmatpush3.bf16.msra.mxu1 %v9603_v12  ;;  %v9528_v4 = vld [vmem:[#allocation5 + $0x980] ss:$40 sps:$4 sm:$0xff]   ;;  %v9543_v12 = vld [vmem:[#allocation5 + $0xb10] ss:$40 sps:$4 sm:$0xff]  }
 0x2d0   : > { %8350 = vmatprep.subr.bf16.mxu1 %v9607_v14  ;;  %v9554_v14 = vld [vmem:[#allocation5 + $0xc04] ss:$40 sps:$4 sm:$0xff]  }
 0x2d1   : > { %5116 = vmatmul.mubr.bf16.gmra.mrb[20].mxu0 %v10136_v31  ;;  %v9501_v31 = vld [vmem:[#allocation5 + $0x6b0] ss:$40 sps:$4 sm:$0xff]  }
 0x2d2   : > { %5131 = vmatpush1.bf16.msra.mxu0 %v9492_v7  ;;  %5158 = vmatprep.mubr.bf16.mxu0 %v10150_v38  ;;  %v9612_v38 = vld [vmem:[#allocation7 + $0x70] sm:$0xff]   ;;  %v9536_v7 = vld [vmem:[#allocation5 + $0xa24] ss:$40 sps:$4 sm:$0xff]  }
 0x2d3   : > { %5132 = vmatprep.subr.bf16.mxu0 %v9497_v8  ;;  %8351 = vmatpush3.bf16.msra.mxu1 %v9608_v15  ;;  %v9534_v8 = vld [vmem:[#allocation5 + $0xa20] ss:$40 sps:$4 sm:$0xff]  }
 0x2d4   : > { %8352 = vmatprep.subr.bf16.mxu1 %v9612_v38  ;;  %v9552_v15 = vld [vmem:[#allocation5 + $0xc00] ss:$40 sps:$4 sm:$0xff]   ;;  %v9563_v38 = vld [vmem:[#allocation5 + $0xcf4] ss:$40 sps:$4 sm:$0xff]  }
 0x2d6   : > { %5133 = vmatpush1.bf16.msra.mxu0 %v9495_v10  ;;  %v9542_v10 = vld [vmem:[#allocation5 + $0xac4] ss:$40 sps:$4 sm:$0xff]  }
 0x2d7   : > { %5134 = vmatprep.subr.bf16.mxu0 %v9500_v28  ;;  %8353 = vmatpush3.bf16.msra.mxu1 %v9613_v18  ;;  %v9540_v28 = vld [vmem:[#allocation5 + $0xac0] ss:$40 sps:$4 sm:$0xff]   ;;  %v9561_v18 = vld [vmem:[#allocation5 + $0xcf0] ss:$40 sps:$4 sm:$0xff]  }
 0x2d8   : > { %8354 = vmatprep.subr.bf16.mxu1 %v9617_v21  ;;  %v9569_v21 = vld [vmem:[#allocation5 + $0xd94] ss:$40 sps:$4 sm:$0xff]  }
 0x2da   : > { %5135 = vmatpush1.bf16.msra.mxu0 %v9498_v13  ;;  %v9548_v13 = vld [vmem:[#allocation5 + $0xb64] ss:$40 sps:$4 sm:$0xff]  }
 0x2db   : > { %5136 = vmatprep.subr.bf16.mxu0 %v9503_v50  ;;  %8355 = vmatpush3.bf16.msra.mxu1 %v9618_v23  ;;  %v9551_v50 = vld [vmem:[#allocation5 + $0xbb4] ss:$40 sps:$4 sm:$0xff]   ;;  %v9567_v23 = vld [vmem:[#allocation5 + $0xd90] ss:$40 sps:$4 sm:$0xff]  }
 0x2de   : > { %5137 = vmatpush1.bf16.msra.mxu0 %v9501_v31  ;;  %v9557_v31 = vld [vmem:[#allocation5 + $0xc54] ss:$40 sps:$4 sm:$0xff]  }
 0x2df   : > { %5138 = vmatprep.subr.bf16.mxu0 %v9506_v16  ;;  %v9560_v16 = vld [vmem:[#allocation5 + $0xca4] ss:$40 sps:$4 sm:$0xff]  }
 0x2e2   : > { %5139 = vmatpush1.bf16.msra.mxu0 %v9504_v19  ;;  %v9566_v19 = vld [vmem:[#allocation5 + $0xd44] ss:$40 sps:$4 sm:$0xff]  }
 0x2e3   : > { %5140 = vmatprep.subr.bf16.mxu0 %v9509_v20  ;;  %v9564_v20 = vld [vmem:[#allocation5 + $0xd40] ss:$40 sps:$4 sm:$0xff]  }
 0x2e6   : > { %5141 = vmatpush1.bf16.msra.mxu0 %v9507_v24  ;;  %v9572_v24 = vld [vmem:[#allocation5 + $0xde4] ss:$40 sps:$4 sm:$0xff]  }
 0x2e7   : > { %5142 = vmatprep.subr.bf16.mxu0 %v9512_v35  ;;  %v9570_v35 = vld [vmem:[#allocation5 + $0xde0] ss:$40 sps:$4 sm:$0xff]  }
 0x2ea   : > { %5143 = vmatpush1.bf16.msra.mxu0 %v9510_v37  ;;  %v9575_v37 = vld [vmem:[#allocation5 + $0xe34] ss:$40 sps:$4 sm:$0xff]  }
 0x2eb   : > { %5144 = vmatprep.subr.bf16.mxu0 %v9515_v42  ;;  %v9573_v42 = vld [vmem:[#allocation5 + $0xe30] ss:$40 sps:$4 sm:$0xff]  }
 0x2ee   : > { %5145 = vmatpush1.bf16.msra.mxu0 %v9513_v43  ;;  %v9578_v43 = vld [vmem:[#allocation5 + $0xe84] ss:$40 sps:$4 sm:$0xff]  }
 0x2ef   : > { %5146 = vmatprep.subr.bf16.mxu0 %v9518_v46  ;;  %v9576_v46 = vld [vmem:[#allocation5 + $0xe80] ss:$40 sps:$4 sm:$0xff]  }
 0x2f2   : > { %5147 = vmatpush1.bf16.msra.mxu0 %v9516_v27  ;;  %v9581_v27 = vld [vmem:[#allocation5 + $0xed4] ss:$40 sps:$4 sm:$0xff]  }
 0x2f3   : > { %5148 = vmatprep.subr.bf16.mxu0 %v9521_v30  ;;  %v9579_v30 = vld [vmem:[#allocation5 + $0xed0] ss:$40 sps:$4 sm:$0xff]  }
 0x2f6   : > { %5149 = vmatpush1.bf16.msra.mxu0 %v9519_v47  ;;  %v9586_v47 = vld [vmem:[#allocation5 + $0xf24] ss:$40 sps:$4 sm:$0xff]  }
 0x2f7   : > { %5150 = vmatprep.subr.bf16.mxu0 %v9524_v58  ;;  %v9584_v58 = vld [vmem:[#allocation5 + $0xf20] ss:$40 sps:$4 sm:$0xff]  }
 0x2fa   : > { %5151 = vmatpush1.bf16.msra.mxu0 %v9522_v59  ;;  %v9591_v59 = vld [vmem:[#allocation5 + $0xf74] ss:$40 sps:$4 sm:$0xff]  }
 0x2fb   : > { %5152 = vmatprep.subr.bf16.mxu0 %v9527_v63  ;;  %v9589_v63 = vld [vmem:[#allocation5 + $0xf70] ss:$40 sps:$4 sm:$0xff]  }
 0x2fe   : > { %5153 = vmatpush1.bf16.msra.mxu0 %v9525_v0  ;;  %v9596_v0 = vld [vmem:[#allocation5 + $0xfc4] ss:$40 sps:$4 sm:$0xff]  }
 0x2ff   : > { %5154 = vmatprep.subr.bf16.mxu0 %v9530_v3  ;;  %v9594_v3 = vld [vmem:[#allocation5 + $0xfc0] ss:$40 sps:$4 sm:$0xff]  }
 0x302   : > { %5155 = vmatpush1.bf16.msra.mxu0 %v9528_v4  ;;  %v9601_v4 = vld [vmem:[#allocation5 + $0x1014] ss:$40 sps:$4 sm:$0xff]  }
 0x303   : > { %5156 = vmatprep.subr.bf16.mxu0 %v9533_v51  ;;  %v9599_v51 = vld [vmem:[#allocation5 + $0x1010] ss:$40 sps:$4 sm:$0xff]  }
 0x306   : > { %5157 = vmatpush1.bf16.msra.mxu0 %v9531_v52  ;;  %v9606_v52 = vld [vmem:[#allocation5 + $0x1064] ss:$40 sps:$4 sm:$0xff]  }
 0x307   : > { %5179 = vmatprep.subr.bf16.mxu0 %v9536_v7  ;;  %v9611_v7 = vld [vmem:[#allocation5 + $0x10b4] ss:$40 sps:$4 sm:$0xff]  }
 0x309   : > { %5159 = vmatmul.mubr.bf16.vlgmr.msra.gmra.mrb[16].mxu0 %v10156_v17  ;;  %v9546_v17 = vld [vmem:[#allocation5 + $0xb60] ss:$40 sps:$4 sm:$0xff]  }
 0x30a   : > { %5180 = vmatpush1.bf16.msra.mxu0 %v9534_v8  ;;  %5168 = vmatprep.mubr.bf16.mxu0 %v10160_v22  ;;  %v9549_v22 = vld [vmem:[#allocation5 + $0xbb0] ss:$40 sps:$4 sm:$0xff]   ;;  %v9616_v8 = vld [vmem:[#allocation5 + $0x1104] ss:$40 sps:$4 sm:$0xff]  }
 0x30b   : > { %5181 = vmatprep.subr.bf16.mxu0 %v9539_v9 }
 0x30e   : > { %5182 = vmatpush1.bf16.msra.mxu0 %v9537_v5 }
 0x30f   : > { %5183 = vmatprep.subr.bf16.mxu0 %v9542_v10  ;;  %v5286_v10 = vmul.f32 %v10256_v32, %v10256_v32  ;;  %v5292_v32 = vmul.f32 %v10262_v40, %v10262_v40  ;;  %v9624_v40 = vld [vmem:[#allocation5 + $0x11a4] ss:$40 sps:$4 sm:$0xff]  }
 0x311   : > { %5169 = vmatmul.mubr.bf16.gmra.mrb[20].mxu0 %v10169_v29  ;;  %v9555_v29 = vld [vmem:[#allocation5 + $0xc50] ss:$40 sps:$4 sm:$0xff]  }
 0x312   : > { %5184 = vmatpush1.bf16.msra.mxu0 %v9540_v28  ;;  %5211 = vmatprep.mubr.bf16.mxu0 %v10176_v36  ;;  %v9558_v36 = vld [vmem:[#allocation5 + $0xca0] ss:$40 sps:$4 sm:$0xff]  }
 0x313   : > { %5185 = vmatprep.subr.bf16.mxu0 %v9545_v11 }
 0x316   : > { %5186 = vmatpush1.bf16.msra.mxu0 %v9543_v12  ;;  %v5290_v12 = vmul.f32 %v10260_v34, %v10260_v34 }
 0x317   : > { %5187 = vmatprep.subr.bf16.mxu0 %v9548_v13  ;;  %v5287_v13 = vmul.f32 %v10254_v26, %v10254_v26 }
 0x31a   : > { %5188 = vmatpush1.bf16.msra.mxu0 %v9546_v17 }
 0x31b   : > { %5189 = vmatprep.subr.bf16.mxu0 %v9551_v50 }
 0x31e   : > { %5190 = vmatpush1.bf16.msra.mxu0 %v9549_v22 }
 0x31f   : > { %5191 = vmatprep.subr.bf16.mxu0 %v9554_v14 }
 0x322   : > { %5192 = vmatpush1.bf16.msra.mxu0 %v9552_v15  ;;  %v9614_v15 = vld [vmem:[#allocation5 + $0x1100] ss:$40 sps:$4 sm:$0xff]  }
 0x323   : > { %5193 = vmatprep.subr.bf16.mxu0 %v9557_v31 }
 0x326   : > { %5194 = vmatpush1.bf16.msra.mxu0 %v9555_v29 }
 0x327   : > { %5195 = vmatprep.subr.bf16.mxu0 %v9560_v16 }
 0x32a   : > { %5196 = vmatpush1.bf16.msra.mxu0 %v9558_v36  ;;  %v9621_v36 = vld [vmem:[#allocation5 + $0x1154] ss:$40 sps:$4 sm:$0xff]  }
 0x32b   : > { %5197 = vmatprep.subr.bf16.mxu0 %v9563_v38 }
 0x32e   : > { %5198 = vmatpush1.bf16.msra.mxu0 %v9561_v18 }
 0x32f   : > { %5199 = vmatprep.subr.bf16.mxu0 %v9566_v19 }
 0x332   : > { %5200 = vmatpush1.bf16.msra.mxu0 %v9564_v20 }
 0x333   : > { %5201 = vmatprep.subr.bf16.mxu0 %v9569_v21 }
 0x336   : > { %5202 = vmatpush1.bf16.msra.mxu0 %v9567_v23 }
 0x337   : > { %5203 = vmatprep.subr.bf16.mxu0 %v9572_v24 }
 0x33a   : > { %5204 = vmatpush1.bf16.msra.mxu0 %v9570_v35 }
 0x33b   : > { %5205 = vmatprep.subr.bf16.mxu0 %v9575_v37 }
 0x33e   : > { %5206 = vmatpush1.bf16.msra.mxu0 %v9573_v42 }
 0x33f   : > { %5207 = vmatprep.subr.bf16.mxu0 %v9578_v43 }
 0x342   : > { %5208 = vmatpush1.bf16.msra.mxu0 %v9576_v46  ;;  %v5295_v46 = vmul.f32 %v10268_v48, %v10268_v48  ;;  %v9622_v48 = vld [vmem:[#allocation5 + $0x11a0] ss:$40 sps:$4 sm:$0xff]  }
 0x343   : > { %5209 = vmatprep.subr.bf16.mxu0 %v9581_v27  ;;  %v5296_v27 = vmul.f32 %v10272_v54, %v10272_v54  ;;  %v5301_v54 = vmul.f32 %v10280_v62, %v10280_v62  ;;  %v9625_v62 = vld [vmem:[#allocation5 + $0x11f0] ss:$40 sps:$4 sm:$0xff]  }
 0x346   : > { %5210 = vmatpush1.bf16.msra.mxu0 %v9579_v30  ;;  %v5297_v30 = vmul.f32 %v10270_v53, %v10270_v53  ;;  %v5302_v53 = vmul.f32 %v10278_v60, %v10278_v60  ;;  %v9630_v60 = vld [vmem:[#allocation5 + $0x1244] ss:$40 sps:$4 sm:$0xff]  }
 0x347   : > { %5232 = vmatprep.subr.bf16.mxu0 %v9586_v47 }
 0x349   : > { %5212 = vmatmul.mubr.bf16.vlgmr.msra.gmra.mrb[16].mxu0 %v10184_v39  ;;  %v9604_v39 = vld [vmem:[#allocation5 + $0x1060] ss:$40 sps:$4 sm:$0xff]  }
 0x34a   : > { %5233 = vmatpush1.bf16.msra.mxu0 %v9584_v58  ;;  %5221 = vmatprep.mubr.bf16.mxu0 %v10188_v44  ;;  %v9609_v44 = vld [vmem:[#allocation5 + $0x10b0] ss:$40 sps:$4 sm:$0xff]  }
 0x34b   : > { %5234 = vmatprep.subr.bf16.mxu0 %v9591_v59 }
 0x34e   : > { %5235 = vmatpush1.bf16.msra.mxu0 %v9589_v63  ;;  %v5300_v63 = vmul.f32 %v10276_v57, %v10276_v57  ;;  %v9627_v57 = vld [vmem:[#allocation5 + $0x11f4] ss:$40 sps:$4 sm:$0xff]  }
 0x34f   : > { %5236 = vmatprep.subr.bf16.mxu0 %v9596_v0 }
 0x351   : > { %5222 = vmatmul.mubr.bf16.gmra.mrb[20].mxu0 %v10194_v49  ;;  %v5285_v49 = vmul.f32 %v10252_v25, %v10252_v25  ;;  %v5291_v25 = vmul.f32 %v10264_v41, %v10264_v41  ;;  %v9619_v41 = vld [vmem:[#allocation5 + $0x1150] ss:$40 sps:$4 sm:$0xff]  }
 0x352   : > { %5237 = vmatpush1.bf16.msra.mxu0 %v9594_v3  ;;  %5264 = vmatprep.mubr.bf16.mxu0 %v10204_v55 }
 0x353   : > { %5238 = vmatprep.subr.bf16.mxu0 %v9601_v4 }
 0x356   : > { %5239 = vmatpush1.bf16.msra.mxu0 %v9599_v51 }
 0x357   : > { %5240 = vmatprep.subr.bf16.mxu0 %v9606_v52 }
 0x35a   : > { %5241 = vmatpush1.bf16.msra.mxu0 %v9604_v39 }
 0x35b   : > { %5242 = vmatprep.subr.bf16.mxu0 %v9611_v7 }
 0x35c   : > { %v10303_v9 = vpop.f32.mrb[8].mxu0 }
 0x35d   : > { %v5054_v5 = vpop.f32.mrb[8].mxu1  ;;  %v4844_v28 = vpop.f32.mrb[9].mxu0 }
 0x35e   : > { %v5306_v55 = vmul.f32 %v5054_v5, %v5054_v5  ;;  %v5056_v11 = vpop.f32.mrb[9].mxu1  ;;  %v5305_v17 = vmul.f32 %v4844_v28, %v4844_v28  ;;  %v10313_v22 = vpop.f32.mrb[10].mxu0  ;;  %5243 = vmatpush1.bf16.msra.mxu0 %v9609_v44 }
 0x35f   : > { %v5307_v50 = vmul.f32 %v5056_v11, %v5056_v11  ;;  %v5058_v14 = vpop.f32.mrb[10].mxu1  ;;  %v4848_v16 = vpop.f32.mrb[11].mxu0  ;;  %5244 = vmatprep.subr.bf16.mxu0 %v9616_v8 }
 0x360   : > { %v5326_v31 = vadd.f32 %v5306_v55, %v5286_v10  ;;  %v5311_v29 = vmul.f32 %v5058_v14, %v5058_v14  ;;  %v5060_v34 = vpop.f32.mrb[11].mxu1  ;;  %v5325_v26 = vadd.f32 %v5305_v17, %v5285_v49  ;;  %v5310_v18 = vmul.f32 %v4848_v16, %v4848_v16  ;;  %v9633_v14 = vld [vmem:[#allocation5 + $0x1294] ss:$40 sps:$4 sm:$0xff]   ;;  %v9642_v16 = vld [vmem:[#allocation5 + $0x1384] ss:$40 sps:$4 sm:$0xff]  }
 0x361   : > { %v10319_v38 = vadd.f32 %v5307_v50, %v5287_v13  ;;  %v5312_v19 = vmul.f32 %v5060_v34, %v5060_v34  ;;  %v9628_v50 = vld [vmem:[#allocation5 + $0x1240] ss:$40 sps:$4 sm:$0xff]  }
 0x362   : > { %v5331_v20 = vadd.f32 %v5311_v29, %v5291_v25  ;;  %v5330_v21 = vadd.f32 %v5310_v18, %v5290_v12  ;;  %5245 = vmatpush1.bf16.msra.mxu0 %v9614_v15  ;;  %v9631_v15 = vld [vmem:[#allocation5 + $0x1290] ss:$40 sps:$4 sm:$0xff]   ;;  %v9636_v25 = vld [vmem:[#allocation5 + $0x12e4] ss:$40 sps:$4 sm:$0xff]   ;;  %v9640_v34 = vld [vmem:[#allocation5 + $0x1380] ss:$40 sps:$4 sm:$0xff]  }
 0x363   : > { %v10321_v23 = vadd.f32 %v5312_v19, %v5292_v32  ;;  %5246 = vmatprep.subr.bf16.mxu0 %v9621_v36  ;;  %v9634_v32 = vld [vmem:[#allocation5 + $0x12e0] ss:$40 sps:$4 sm:$0xff]   ;;  %v9637_v29 = vld [vmem:[#allocation5 + $0x1330] ss:$40 sps:$4 sm:$0xff]   ;;  %v9645_v36 = vld [vmem:[#allocation5 + $0x13d4] ss:$40 sps:$4 sm:$0xff]  }
 0x364   : > { %v5346_v24 = vpack.c.bf16 %v5331_v20, %v5326_v31  ;;  %v5345_v35 = vpack.c.bf16 %v5330_v21, %v5325_v26  ;;  %v10325_v42 = vpop.f32.mrb[12].mxu0  ;;  %v9639_v31 = vld [vmem:[#allocation5 + $0x1334] ss:$40 sps:$4 sm:$0xff]   ;;  %v9643_v26 = vld [vmem:[#allocation5 + $0x13d0] ss:$40 sps:$4 sm:$0xff]   ;;  %v9646_v18 = vld [vmem:[#allocation7 + $0xc0] sm:$0xff]  }
 0x365   : > { %v5347_v37 = vpack.c.bf16 %v10321_v23, %v10319_v38  ;;  %v5064_v43 = vpop.f32.mrb[12].mxu1  ;;  %v4854_v58 = vpop.f32.mrb[13].mxu0  ;;  %v9647_v19 = vld [vmem:[#allocation7 + $0x80] sm:$0xff]   ;;  %8368 = vmatprep.subr.bf16.mxu1 %v9646_v18  ;;  %v9648_v20 = vld [vmem:[#allocation7 + $0xc8] sm:$0xff]   ;;  %v9665_v23 = vld [vmem:[#allocation7 + $0x118] sm:$0xff]  }
 0x366   : > { %v5316_v47 = vmul.f32 %v5064_v43, %v5064_v43  ;;  %v5066_v59 = vpop.f32.mrb[13].mxu1  ;;  %5707 = vmatprep.mubr.bf16.mxu1 %v5346_v24  ;;  %v5315_v0 = vmul.f32 %v4854_v58, %v4854_v58  ;;  %v10335_v4 = vpop.f32.mrb[14].mxu0  ;;  %5247 = vmatpush1.bf16.msra.mxu0 %v9619_v41  ;;  %v9649_v21 = vld [vmem:[#allocation7 + $0x88] sm:$0xff]   ;;  %v9650_v41 = vld [vmem:[#allocation7 + $0xd0] sm:$0xff]   ;;  %v9662_v58 = vld [vmem:[#allocation7 + $0x100] sm:$0xff]  }
 0x367   : > { %v5317_v3 = vmul.f32 %v5066_v59, %v5066_v59  ;;  %v5068_v51 = vpop.f32.mrb[14].mxu1  ;;  %5708 = vmatmul.mubr.bf16.vlgmr.msra.gmra.mrb[16].mxu1 %v5345_v35  ;;  %v4858_v7 = vpop.f32.mrb[15].mxu0  ;;  %5248 = vmatprep.subr.bf16.mxu0 %v9624_v40  ;;  %v9651_v24 = vld [vmem:[#allocation7 + $0x90] sm:$0xff]   ;;  %v9652_v40 = vld [vmem:[#allocation7 + $0xd8] sm:$0xff]   ;;  %v9657_v43 = vld [vmem:[#allocation7 + $0xa8] sm:$0xff]  }
 0x368   : > { %v5336_v52 = vadd.f32 %v5316_v47, %v5296_v27  ;;  %v5321_v39 = vmul.f32 %v5068_v51, %v5068_v51  ;;  %v5070_v44 = vpop.f32.mrb[15].mxu1  ;;  %v5335_v8 = vadd.f32 %v5315_v0, %v5295_v46  ;;  %v5320_v49 = vmul.f32 %v4858_v7, %v4858_v7  ;;  %8369 = vmatpush3.bf16.msra.mxu1 %v9647_v19  ;;  %v9653_v35 = vld [vmem:[#allocation7 + $0x98] sm:$0xff]   ;;  %v9658_v46 = vld [vmem:[#allocation7 + $0xf0] sm:$0xff]  }
 0x369   : > { %v10341_v5 = vadd.f32 %v5317_v3, %v5297_v30  ;;  %v5322_v10 = vmul.f32 %v5070_v44, %v5070_v44  ;;  %8370 = vmatprep.subr.bf16.mxu1 %v9648_v20  ;;  %v9659_v27 = vld [vmem:[#allocation7 + $0xb0] sm:$0xff]   ;;  %v9660_v30 = vld [vmem:[#allocation7 + $0xf8] sm:$0xff]  }
 0x36a   : > { %v5341_v55 = vadd.f32 %v5321_v39, %v5301_v54  ;;  %v5340_v28 = vadd.f32 %v5320_v49, %v5300_v63  ;;  %5249 = vmatpush1.bf16.msra.mxu0 %v9622_v48  ;;  %v9661_v47 = vld [vmem:[#allocation7 + $0xb8] sm:$0xff]  }
 0x36b   : > { %v10343_v11 = vadd.f32 %v5322_v10, %v5302_v53  ;;  %5250 = vmatprep.subr.bf16.mxu0 %v9627_v57 }
 0x36c   : > { %v5351_v12 = vpack.c.bf16 %v5341_v55, %v5336_v52  ;;  %v5350_v13 = vpack.c.bf16 %v5340_v28, %v5335_v8  ;;  %8371 = vmatpush3.bf16.msra.mxu1 %v9649_v21  ;;  %v5288_v8 = vmul.f32 %v10258_v33, %v10258_v33  ;;  %v5289_v55 = vmul.f32 %v10303_v9, %v10303_v9 }
 0x36d   : > { %v5352_v17 = vpack.c.bf16 %v10343_v11, %v10341_v5  ;;  %8372 = vmatprep.subr.bf16.mxu1 %v9650_v41  ;;  %v5298_v9 = vmul.f32 %v10274_v56, %v10274_v56  ;;  %v5304_v56 = vmul.f32 %v10335_v4, %v10335_v4  ;;  %v9668_v4 = vld [vmem:[#allocation7 + $0x130] sm:$0xff]   ;;  %v5837_v5 = vld [vmem:[#allocation8 + $0x18] sm:$0xff]  ;;  %v5834_v11 = vld [vmem:[#allocation8] sm:$0xff] }
 0x36e   : > { %5715 = vmatprep.mubr.bf16.mxu1 %v5351_v12  ;;  %5251 = vmatpush1.bf16.msra.mxu0 %v9625_v62  ;;  %v5293_v12 = vmul.f32 %v10266_v45, %v10266_v45  ;;  %v5299_v45 = vmul.f32 %v10325_v42, %v10325_v42  ;;  %v9664_v42 = vld [vmem:[#allocation7 + $0x110] sm:$0xff]  }
 0x36f   : > { %5716 = vmatmul.mubr.bf16.gmra.mrb[20].mxu1 %v5350_v13  ;;  %5252 = vmatprep.subr.bf16.mxu0 %v9630_v60 }
 0x370   : > { %8373 = vmatpush3.bf16.msra.mxu1 %v9651_v24 }
 0x371   : > { %8374 = vmatprep.subr.bf16.mxu1 %v9652_v40 }
 0x372   : > { %5253 = vmatpush1.bf16.msra.mxu0 %v9628_v50 }
 0x373   : > { %5254 = vmatprep.subr.bf16.mxu0 %v9633_v14  ;;  %v5294_v14 = vmul.f32 %v10313_v22, %v10313_v22  ;;  %v5303_v22 = vmul.f32 %v10282_v1, %v10282_v1  ;;  %v9666_v1 = vld [vmem:[#allocation7 + $0x120] sm:$0xff]  }
 0x374   : > { %8375 = vmatpush3.bf16.msra.mxu1 %v9653_v35 }
 0x376   : > { %5255 = vmatpush1.bf16.msra.mxu0 %v9631_v15 }
 0x377   : > { %5256 = vmatprep.subr.bf16.mxu0 %v9636_v25 }
 0x37a   : > { %5257 = vmatpush1.bf16.msra.mxu0 %v9634_v32 }
 0x37b   : > { %5258 = vmatprep.subr.bf16.mxu0 %v9639_v31 }
 0x37e   : > { %5259 = vmatpush1.bf16.msra.mxu0 %v9637_v29 }
 0x37f   : > { %5260 = vmatprep.subr.bf16.mxu0 %v9642_v16  ;;  %v9663_v16 = vld [vmem:[#allocation7 + $0x108] sm:$0xff]  }
 0x382   : > { %5261 = vmatpush1.bf16.msra.mxu0 %v9640_v34 }
 0x383   : > { %5262 = vmatprep.subr.bf16.mxu0 %v9645_v36 }
 0x386   : > { %5263 = vmatpush1.bf16.msra.mxu0 %v9643_v26 }
 0x389   : > { %5265 = vmatmul.mubr.bf16.vlgmr.msra.gmra.mrb[16].mxu0 %v10212_v61  ;;  %v9654_v61 = vld [vmem:[#allocation7 + $0xe0] sm:$0xff]  }
 0x38a   : > { %5274 = vmatprep.mubr.bf16.mxu0 %v10216_v2  ;;  %v9655_v2 = vld [vmem:[#allocation7 + $0xa0] sm:$0xff]   ;;  %8376 = vmatprep.subr.bf16.mxu1 %v9654_v61 }
 0x38b   : > { %8377 = vmatpush3.bf16.msra.mxu1 %v9655_v2 }
 0x391   : > { %5275 = vmatmul.mubr.bf16.gmra.mrb[20].mxu0 %v10222_v6  ;;  %v9656_v6 = vld [vmem:[#allocation7 + $0xe8] sm:$0xff]  }
 0x392   : > { %8378 = vmatprep.subr.bf16.mxu1 %v9656_v6  ;;  %v9669_v6 = vld [vmem:[#allocation7 + $0x138] sm:$0xff]  }
 0x393   : > { %8379 = vmatpush3.bf16.msra.mxu1 %v9657_v43  ;;  %v5835_v43 = vld [vmem:[#allocation8 + $0x8] sm:$0xff] }
 0x394   : > { %8380 = vmatprep.subr.bf16.mxu1 %v9658_v46  ;;  %v5836_v46 = vld [vmem:[#allocation8 + $0x10] sm:$0xff] }
 0x397   : > { %8381 = vmatpush3.bf16.msra.mxu1 %v9659_v27  ;;  %v5839_v27 = vld [vmem:[#allocation8 + $0x28] sm:$0xff] }
 0x398   : > { %8382 = vmatprep.subr.bf16.mxu1 %v9660_v30  ;;  %v5841_v30 = vld [vmem:[#allocation8 + $0x38] sm:$0xff] }
 0x39b   : > { %8383 = vmatpush3.bf16.msra.mxu1 %v9661_v47  ;;  %v8428_v47 = vpack.c.bf16 %v5836_v46, %v5834_v11 }
 0x39c   : > { %8406 = vmatprep.subr.bf16.mxu1 %v9662_v58 }
 0x43a   : > { %v8356_v59 = vpop.f32.mrb[16].mxu1 }
 0x43b   : > { %v8357_v63 = vpop.f32.mrb[17].mxu1 }
 0x43c   : > { %v10350_v0 = vadd.f32 %v8357_v63, %v8356_v59  ;;  %v8359_v3 = vpop.f32.mrb[18].mxu1  ;;  %v5838_v59 = vld [vmem:[#allocation8 + $0x20] sm:$0xff]  ;;  %v5840_v63 = vld [vmem:[#allocation8 + $0x30] sm:$0xff] }
 0x43d   : > { %v8360_v51 = vpop.f32.mrb[19].mxu1 }
 0x43e   : > { %v10352_v48 = vadd.f32 %v8360_v51, %v8359_v3  ;;  %v5843_v3 = vld [vmem:[#allocation8 + $0x48] sm:$0xff]  ;;  %v5845_v51 = vld [vmem:[#allocation8 + $0x58] sm:$0xff] }
 0x442   : > { %v8362_v54 = vpop.f32.mrb[20].mxu1 }
 0x443   : > { %v8363_v53 = vpop.f32.mrb[21].mxu1 }
 0x444   : > { %v10354_v52 = vadd.f32 %v8363_v53, %v8362_v54  ;;  %v8365_v39 = vpop.f32.mrb[22].mxu1  ;;  %v8432_v54 = vpack.c.bf16 %v5840_v63, %v5838_v59  ;;  %v8434_v53 = vpack.c.bf16 %v5845_v51, %v5843_v3 }
 0x445   : > { %v8366_v7 = vpop.f32.mrb[23].mxu1 }
 0x446   : > { %v10356_v44 = vadd.f32 %v8366_v7, %v8365_v39  ;;  %v5842_v39 = vld [vmem:[#allocation8 + $0x40] sm:$0xff]  ;;  %v5844_v7 = vld [vmem:[#allocation8 + $0x50] sm:$0xff] }
 0x45c   : > { %v5266_v57 = vpop.f32.mrb[16].mxu0 }
 0x45d   : > { %v5308_v49 = vmul.f32 %v5266_v57, %v5266_v57  ;;  %v5268_v10 = vpop.f32.mrb[17].mxu0  ;;  %v5847_v57 = vld [vmem:[#allocation8 + $0x68] sm:$0xff] }
 0x45e   : > { %v5309_v28 = vmul.f32 %v5268_v10, %v5268_v10  ;;  %v5270_v62 = vpop.f32.mrb[18].mxu0 }
 0x45f   : > { %v5328_v60 = vadd.f32 %v5308_v49, %v5288_v8  ;;  %v5313_v13 = vmul.f32 %v5270_v62, %v5270_v62  ;;  %v5272_v50 = vpop.f32.mrb[19].mxu0  ;;  %v5849_v8 = vld [vmem:[#allocation8 + $0x78] sm:$0xff]  ;;  %v8436_v49 = vpack.c.bf16 %v5844_v7, %v5842_v39 }
 0x460   : > { %v5329_v15 = vadd.f32 %v5309_v28, %v5289_v55  ;;  %v5314_v25 = vmul.f32 %v5272_v50, %v5272_v50  ;;  %v8438_v10 = vpack.c.bf16 %v5849_v8, %v5847_v57  ;;  %v5846_v55 = vld [vmem:[#allocation8 + $0x60] sm:$0xff]  ;;  %v5848_v28 = vld [vmem:[#allocation8 + $0x70] sm:$0xff] }
 0x461   : > { %v5333_v32 = vadd.f32 %v5313_v13, %v5293_v12  ;;  %v8440_v62 = vpack.c.bf16 %v5848_v28, %v5846_v55  ;;  %v5851_v12 = vld [vmem:[#allocation8 + $0x88] sm:$0xff]  ;;  %v5850_v50 = vld [vmem:[#allocation8 + $0x80] sm:$0xff] }
 0x462   : > { %v5334_v33 = vadd.f32 %v5314_v25, %v5294_v14  ;;  %v5852_v14 = vld [vmem:[#allocation8 + $0x90] sm:$0xff]  ;;  %v5855_v25 = vld [vmem:[#allocation8 + $0xa8] sm:$0xff] }
 0x463   : > { %v5348_v31 = vpack.c.bf16 %v5333_v32, %v5328_v60  ;;  %v5853_v60 = vld [vmem:[#allocation8 + $0x98] sm:$0xff] }
 0x464   : > { %v5276_v29 = vpop.f32.mrb[20].mxu0  ;;  %v5349_v34 = vpack.c.bf16 %v5334_v33, %v5329_v15  ;;  %v8442_v13 = vpack.c.bf16 %v5853_v60, %v5851_v12  ;;  %v8444_v15 = vpack.c.bf16 %v5852_v14, %v5850_v50  ;;  %v5857_v32 = vld [vmem:[#allocation8 + $0xb8] sm:$0xff]  ;;  %v10398_v12 = vld [vmem:[%s11149_s4] sm:$0xff]  ;;  %v10408_v50 = vld [vmem:[%s11149_s4 + $0x68] sm:$0xff] }
 0x465   : > { %v5318_v36 = vmul.f32 %v5276_v29, %v5276_v29  ;;  %v5278_v26 = vpop.f32.mrb[21].mxu0  ;;  %5756 = vmatprep.mubr.bf16.mxu1 %v5348_v31  ;;  %v8446_v33 = vpack.c.bf16 %v5857_v32, %v5855_v25  ;;  %v5854_v31 = vld [vmem:[#allocation8 + $0xa0] sm:$0xff]  ;;  %v5856_v29 = vld [vmem:[#allocation8 + $0xb0] sm:$0xff]  ;;  %v10414_v14 = vld [vmem:[%s11149_s4 + $0x8] sm:$0xff] }
 0x466   : > { %v5319_v18 = vmul.f32 %v5278_v26, %v5278_v26  ;;  %v5280_v19 = vpop.f32.mrb[22].mxu0  ;;  %5757 = vmatmul.mubr.bf16.vlgmr.msra.gmra.mrb[24].mxu1 %v5347_v37  ;;  %v9667_v37 = vld [vmem:[#allocation7 + $0x128] sm:$0xff]   ;;  %v5858_v26 = vld [vmem:[#allocation8 + $0xc0] sm:$0xff]  ;;  %v10424_v32 = vld [vmem:[%s11149_s4 + $0x70] sm:$0xff] }
 0x467   : > { %v5338_v20 = vadd.f32 %v5318_v36, %v5298_v9  ;;  %v5323_v21 = vmul.f32 %v5280_v19, %v5280_v19  ;;  %8407 = vmatpush3.bf16.msra.mxu1 %v9662_v58  ;;  %v5282_v41 = vpop.f32.mrb[23].mxu0  ;;  %v8430_v58 = vpack.c.bf16 %v5841_v30, %v5839_v27  ;;  %v5861_v9 = vld [vmem:[#allocation8 + $0xd8] sm:$0xff]  ;;  %v5863_v19 = vld [vmem:[#allocation8 + $0xe8] sm:$0xff] }
 0x468   : > { %v5339_v24 = vadd.f32 %v5319_v18, %v5299_v45  ;;  %v5324_v40 = vmul.f32 %v5282_v41, %v5282_v41  ;;  %8408 = vmatprep.subr.bf16.mxu1 %v9663_v16  ;;  %v5860_v45 = vld [vmem:[#allocation8 + $0xd0] sm:$0xff] }
 0x469   : > { %v5343_v35 = vadd.f32 %v5323_v21, %v5303_v22  ;;  %v8452_v18 = vpack.c.bf16 %v5860_v45, %v5858_v26  ;;  %v5865_v22 = vld [vmem:[#allocation8 + $0xf8] sm:$0xff]  ;;  %v5862_v21 = vld [vmem:[#allocation8 + $0xe0] sm:$0xff]  ;;  %v5864_v41 = vld [vmem:[#allocation8 + $0xf0] sm:$0xff] }
 0x46a   : > { %v5344_v61 = vadd.f32 %v5324_v40, %v5304_v56  ;;  %v8456_v56 = vpack.c.bf16 %v5864_v41, %v5862_v21  ;;  %v10474_v26 = vld [vmem:[%s11149_s4 + $0x88] sm:$0xff]  ;;  %v10522_v21 = vld [vmem:[%s11149_s4 + $0xa0] sm:$0xff] }
 0x46b   : > { %8409 = vmatpush3.bf16.msra.mxu1 %v9663_v16  ;;  %v5353_v2 = vpack.c.bf16 %v5343_v35, %v5338_v20  ;;  %v8448_v16 = vpack.c.bf16 %v5856_v29, %v5854_v31  ;;  %v8454_v20 = vpack.c.bf16 %v5865_v22, %v5863_v19  ;;  %v10480_v45 = vld [vmem:[%s11149_s4 + $0x28] sm:$0xff]  ;;  %v10496_v19 = vld [vmem:[%s11149_s4 + $0x30] sm:$0xff]  ;;  %v10506_v22 = vld [vmem:[%s11149_s4 + $0x98] sm:$0xff] }
 0x46c   : > { %v5354_v38 = vpack.c.bf16 %v5344_v61, %v5339_v24  ;;  %8410 = vmatprep.subr.bf16.mxu1 %v9664_v42  ;;  %v9880_v24 = vmov 0.0   ;;  %v10528_v41 = vld [vmem:[%s11149_s4 + $0x40] sm:$0xff] }
 0x46d   : > { %5764 = vmatprep.mubr.bf16.mxu1 %v5353_v2  ;;  %6132 = vmatprep.mubr.f32.mxu0 %v9880_v24 }
 0x46e   : > { %5765 = vmatmul.mubr.bf16.gmra.mrb[28].mxu1 %v5352_v17  ;;  %v8426_v17 = vpack.c.bf16 %v5837_v5, %v5835_v43 }
 0x46f   : > { %8411 = vmatpush3.bf16.msra.mxu1 %v9664_v42  ;;  %8422 = vmatprep.mubr.bf16.mxu1 %v5349_v34  ;;  %v5859_v34 = vld [vmem:[#allocation8 + $0xc8] sm:$0xff] }
 0x470   : > { %8412 = vmatprep.subr.bf16.mxu1 %v9665_v23  ;;  %v8450_v36 = vpack.c.bf16 %v5861_v9, %v5859_v34  ;;  %v10448_v34 = vld [vmem:[%s11149_s4 + $0x18] sm:$0xff]  ;;  %v10458_v9 = vld [vmem:[%s11149_s4 + $0x80] sm:$0xff] }
 0x473   : > { %8413 = vmatpush3.bf16.msra.mxu1 %v9665_v23 }
 0x474   : > { %8414 = vmatprep.subr.bf16.mxu1 %v9666_v1 }
 0x477   : > { %8415 = vmatpush3.bf16.msra.mxu1 %v9666_v1 }
 0x478   : > { %8416 = vmatprep.subr.bf16.mxu1 %v9667_v37 }
 0x47b   : > { %8417 = vmatpush3.bf16.msra.mxu1 %v9667_v37 }
 0x47c   : > { %8418 = vmatprep.subr.bf16.mxu1 %v9668_v4 }
 0x47f   : > { %8419 = vmatpush3.bf16.msra.mxu1 %v9668_v4 }
 0x480   : > { %8420 = vmatprep.subr.bf16.mxu1 %v9669_v6 }
 0x483   : > { %8421 = vmatpush3.bf16.msra.mxu1 %v9669_v6 }
 0x484   : > { %8427 = vmatprep.subr.bf16.mxu1 %v8426_v17 }
 0x486   : > { %8423 = vmatmul.mubr.bf16.vlgmr.msra.gmra.mrb[32].mxu1 %v5354_v38 }
 0x487   : > { %8429 = vmatpush1.bf16.msra.mxu1 %v8428_v47  ;;  %5930 = vmatprep.mubr.f32.mxu1 %v9880_v24 }
 0x488   : > { %8431 = vmatprep.subr.bf16.mxu1 %v8430_v58 }
 0x48b   : > { %8433 = vmatpush1.bf16.msra.mxu1 %v8432_v54 }
 0x48c   : > { %8435 = vmatprep.subr.bf16.mxu1 %v8434_v53 }
 0x48f   : > { %8437 = vmatpush1.bf16.msra.mxu1 %v8436_v49 }
 0x490   : > { %8439 = vmatprep.subr.bf16.mxu1 %v8438_v10 }
 0x493   : > { %8441 = vmatpush1.bf16.msra.mxu1 %v8440_v62  ;;  %v10393_v62 = vld [vmem:[%s11149_s4 + $0x60] sm:$0xff] }
 0x494   : > { %8443 = vmatprep.subr.bf16.mxu1 %v8442_v13 }
 0x497   : > { %8445 = vmatpush1.bf16.msra.mxu1 %v8444_v15 }
 0x498   : > { %8447 = vmatprep.subr.bf16.mxu1 %v8446_v33  ;;  %v10430_v33 = vld [vmem:[%s11149_s4 + $0x10] sm:$0xff] }
 0x49b   : > { %8449 = vmatpush1.bf16.msra.mxu1 %v8448_v16  ;;  %v10442_v16 = vld [vmem:[%s11149_s4 + $0x78] sm:$0xff] }
 0x49c   : > { %8451 = vmatprep.subr.bf16.mxu1 %v8450_v36  ;;  %v10464_v36 = vld [vmem:[%s11149_s4 + $0x20] sm:$0xff] }
 0x49f   : > { %8453 = vmatpush1.bf16.msra.mxu1 %v8452_v18  ;;  %v10490_v18 = vld [vmem:[%s11149_s4 + $0x90] sm:$0xff] }
 0x4a0   : > { %8455 = vmatprep.subr.bf16.mxu1 %v8454_v20  ;;  %v10512_v20 = vld [vmem:[%s11149_s4 + $0x38] sm:$0xff] }
 0x4a3   : > { %8457 = vmatpush1.bf16.msra.mxu1 %v8456_v56  ;;  %v10538_v56 = vld [vmem:[%s11149_s4 + $0xa8] sm:$0xff] }
 0x539   : > { %v8384_v40 = vpop.f32.mrb[24].mxu1 }
 0x53a   : > { %v8385_v42 = vpop.f32.mrb[25].mxu1 }
 0x53b   : > { %v8386_v35 = vadd.f32 %v8385_v42, %v8384_v40  ;;  %v8387_v61 = vpop.f32.mrb[26].mxu1  ;;  %v10544_v40 = vld [vmem:[%s11149_s4 + $0x48] sm:$0xff]  ;;  %v10554_v42 = vld [vmem:[%s11149_s4 + $0xb0] sm:$0xff] }
 0x53c   : > { %v8388_v2 = vpop.f32.mrb[27].mxu1 }
 0x53d   : > { %v8389_v38 = vadd.f32 %v8388_v2, %v8387_v61  ;;  %v5759_v23 = vadd.f32 %v8386_v35, %v10350_v0  ;;  %v10560_v35 = vld [vmem:[%s11149_s4 + $0x50] sm:$0xff]  ;;  %v10570_v61 = vld [vmem:[%s11149_s4 + $0xb8] sm:$0xff] }
 0x53e   : > { %v10576_v2 = vld [vmem:[%s11149_s4 + $0x58] sm:$0xff] }
 0x53f   : > { %v5762_v1 = vadd.f32 %v8389_v38, %v10352_v48  ;;  %v10586_v38 = vld [vmem:[%s11149_s4 + $0xc0] sm:$0xff] }
 0x541   : > { %v8390_v37 = vpop.f32.mrb[28].mxu1 }
 0x542   : > { %v8391_v4 = vpop.f32.mrb[29].mxu1 }
 0x543   : > { %v8392_v6 = vadd.f32 %v8391_v4, %v8390_v37  ;;  %v8393_v43 = vpop.f32.mrb[30].mxu1  ;;  %v10619_v37 = vld [vmem:[%s11149_s4 + $0xd8] sm:$0xff] }
 0x544   : > { %v8394_v5 = vpop.f32.mrb[31].mxu1 }
 0x545   : > { %v8395_v11 = vadd.f32 %v8394_v5, %v8393_v43  ;;  %v5767_v17 = vadd.f32 %v8392_v6, %v10354_v52 }
 0x547   : > { %v5770_v46 = vadd.f32 %v8395_v11, %v10356_v44 }
 0x559   : > { %v8424_v27 = vpop.f32.mrb[32].mxu1 }
 0x55a   : > { %v5816_v30 = vadd.f32 %v8424_v27, %v5767_v17  ;;  %v5807_v47 = vpop.f32.mrb[33].mxu1 }
 0x55b   : > { %v5808_v58 = vadd.f32 %v5807_v47, %v5759_v23  ;;  %v8425_v59 = vpop.f32.mrb[34].mxu1  ;;  %v10597_v23 = vld [vmem:[%s11149_s4 + $0xc8] sm:$0xff] }
 0x55c   : > { %v5819_v63 = vadd.f32 %v8425_v59, %v5770_v46  ;;  %v5810_v3 = vpop.f32.mrb[35].mxu1  ;;  %v5824_v54 = vmax.f32 %v5816_v30, 1e-10 }
 0x55d   : > { %v5822_v0 = vmax.f32 %v5808_v58, 1e-10  ;;  %v5811_v51 = vadd.f32 %v5810_v3, %v5762_v1  ;;  %v10608_v1 = vld [vmem:[%s11149_s4 + $0xd0] sm:$0xff] }
 0x55e   : > { %v5825_v53 = vmax.f32 %v5819_v63, 1e-10 }
 0x55f   : > { %9670 = vlog2.f32 %v5822_v0  ;;  %v5823_v48 = vmax.f32 %v5811_v51, 1e-10 }
 0x561   : > { %9672 = vlog2.f32 %v5823_v48 }
 0x562   : > { %9674 = vlog2.f32 %v5824_v54 }
 0x563   : > { %9676 = vlog2.f32 %v5825_v53 }
 0x569   : > { %v9671_v39 = vpop.eup %9670 }
 0x56a   : > { %v5827_v52 = vmul.f32 0.6931472, %v9671_v39 }
 0x56b   : > { %v9673_v7 = vpop.eup %9672 }
 0x56c   : > { %5931 = vmatmul.mubr.f32.vlgmr.msra.gmra.mrb[36].mxu1 %v5827_v52  ;;  %v5829_v44 = vmul.f32 0.6931472, %v9673_v7  ;;  %v9675_v57 = vpop.eup %9674 }
 0x56d   : > { %5936 = vmatprep.mubr.f32.mxu1 %v9880_v24  ;;  %v5831_v8 = vmul.f32 0.6931472, %v9675_v57  ;;  %v9677_v49 = vpop.eup %9676 }
 0x56e   : > { %v5833_v10 = vmul.f32 0.6931472, %v9677_v49 }
 0x570   : > { %5937 = vmatmul.mubr.f32.gmra.mrb[38].mxu1 %v5829_v44 }
 0x571   : > { %5942 = vmatprep.mubr.f32.mxu1 %v9880_v24 }
 0x574   : > { %5943 = vmatmul.mubr.f32.gmra.mrb[40].mxu1 %v5831_v8 }
 0x575   : > { %5948 = vmatprep.mubr.f32.mxu1 %v9880_v24 }
 0x578   : > { %5949 = vmatmul.mubr.f32.gmra.mrb[42].mxu1 %v5833_v10 }
 0x579   : > { %6204 = vmatprep.mubr.f32.mxu1 %v9880_v24 }
 0x63f   : > { %v5932_v55 = vpop.f32.mrb[36].mxu1 }
 0x640   : > { %v5934_v28 = vpop.f32.mrb[37].mxu1 }
 0x641   : > { %6068 = vmatprep.subr.mxu0 %v5934_v28  ;;  %8458 = vmatprep.subr.mxu1 %v5934_v28 }
 0x642   : > { %6069 = vmatpush1.msra.mxu0 %v5932_v55  ;;  %8459 = vmatpush1.msra.mxu1 %v5932_v55 }
 0x643   : > { %v5938_v60 = vpop.f32.mrb[38].mxu1  ;;  %8066 = vmatmul.mubr.msk.f32.vlgmr.msra.gmra.mrb[44].mxu1 %vm5983_vm0, %v10393_v62  ;;  %8054 = vmatmul.mubr.msk.f32.vlgmr.msra.gmra.mrb[24].mxu0 %vm5983_vm0, %v10398_v12 }
 0x644   : > { %v5940_v13 = vpop.f32.mrb[39].mxu1  ;;  %6210 = vmatprep.mubr.f32.mxu1 %v9880_v24  ;;  %6138 = vmatprep.mubr.f32.mxu0 %v9880_v24 }
 0x645   : > { %6357 = vmatprep.subr.mxu1 %v5940_v13 }
 0x646   : > { %6358 = vmatpush1.msra.mxu1 %v5938_v60 }
 0x647   : > { %v5944_v15 = vpop.f32.mrb[40].mxu1  ;;  %8067 = vmatmul.mubr.msk.f32.gmra.mrb[46].mxu1 %vm5983_vm0, %v10408_v50  ;;  %8055 = vmatmul.mubr.msk.f32.gmra.mrb[26].mxu0 %vm5983_vm0, %v10414_v14 }
 0x648   : > { %v5946_v25 = vpop.f32.mrb[41].mxu1  ;;  %6216 = vmatprep.mubr.f32.mxu1 %v9880_v24  ;;  %6144 = vmatprep.mubr.f32.mxu0 %v9880_v24 }
 0x649   : > { %6647 = vmatprep.subr.mxu0 %v5946_v25 }
 0x64a   : > { %6648 = vmatpush1.msra.mxu0 %v5944_v15 }
 0x64b   : > { %v10432_v31 = vpop.f32.mrb[42].mxu1  ;;  %8068 = vmatmul.mubr.msk.f32.gmra.mrb[48].mxu1 %vm5983_vm0, %v10424_v32  ;;  %8056 = vmatmul.mubr.msk.f32.gmra.mrb[28].mxu0 %vm5983_vm0, %v10430_v33 }
 0x64c   : > { %v5952_v29 = vpop.f32.mrb[43].mxu1  ;;  %6222 = vmatprep.mubr.f32.mxu1 %v9880_v24  ;;  %6150 = vmatprep.mubr.f32.mxu0 %v9880_v24 }
 0x64d   : > { %6937 = vmatprep.subr.mxu1 %v5952_v29 }
 0x64f   : > { %8069 = vmatmul.mubr.msk.f32.gmra.mrb[50].mxu1 %vm5983_vm0, %v10442_v16  ;;  %8057 = vmatmul.mubr.msk.f32.gmra.mrb[30].mxu0 %vm5983_vm0, %v10448_v34 }
 0x650   : > { %6228 = vmatprep.mubr.f32.mxu1 %v9880_v24  ;;  %6156 = vmatprep.mubr.f32.mxu0 %v9880_v24 }
 0x653   : > { %8070 = vmatmul.mubr.msk.f32.gmra.mrb[52].mxu1 %vm5983_vm0, %v10458_v9  ;;  %8058 = vmatmul.mubr.msk.f32.gmra.mrb[32].mxu0 %vm5983_vm0, %v10464_v36 }
 0x654   : > { %6234 = vmatprep.mubr.f32.mxu1 %v9880_v24  ;;  %6162 = vmatprep.mubr.f32.mxu0 %v9880_v24 }
 0x657   : > { %8071 = vmatmul.mubr.msk.f32.gmra.mrb[54].mxu1 %vm5983_vm0, %v10474_v26  ;;  %8059 = vmatmul.mubr.msk.f32.gmra.mrb[34].mxu0 %vm5983_vm0, %v10480_v45 }
 0x658   : > { %6240 = vmatprep.mubr.f32.mxu1 %v9880_v24  ;;  %6168 = vmatprep.mubr.f32.mxu0 %v9880_v24 }
 0x65b   : > { %8072 = vmatmul.mubr.msk.f32.gmra.mrb[56].mxu1 %vm5983_vm0, %v10490_v18  ;;  %8060 = vmatmul.mubr.msk.f32.gmra.mrb[36].mxu0 %vm5983_vm0, %v10496_v19 }
 0x65c   : > { %6246 = vmatprep.mubr.f32.mxu1 %v9880_v24  ;;  %6174 = vmatprep.mubr.f32.mxu0 %v9880_v24 }
 0x65f   : > { %8073 = vmatmul.mubr.msk.f32.gmra.mrb[58].mxu1 %vm5983_vm0, %v10506_v22  ;;  %8061 = vmatmul.mubr.msk.f32.gmra.mrb[38].mxu0 %vm5983_vm0, %v10512_v20 }
 0x660   : > { %6252 = vmatprep.mubr.f32.mxu1 %v9880_v24  ;;  %6180 = vmatprep.mubr.f32.mxu0 %v9880_v24 }
 0x663   : > { %8074 = vmatmul.mubr.msk.f32.gmra.mrb[60].mxu1 %vm5983_vm0, %v10522_v21  ;;  %8062 = vmatmul.mubr.msk.f32.gmra.mrb[40].mxu0 %vm5983_vm0, %v10528_v41 }
 0x664   : > { %6258 = vmatprep.mubr.f32.mxu1 %v9880_v24  ;;  %6186 = vmatprep.mubr.f32.mxu0 %v9880_v24 }
 0x667   : > { %8075 = vmatmul.mubr.msk.f32.gmra.mrb[62].mxu1 %vm5983_vm0, %v10538_v56  ;;  %8063 = vmatmul.mubr.msk.f32.gmra.mrb[42].mxu0 %vm5983_vm0, %v10544_v40 }
 0x668   : > { %6264 = vmatprep.mubr.f32.mxu1 %v9880_v24  ;;  %6192 = vmatprep.mubr.f32.mxu0 %v9880_v24 }
 0x66b   : > { %8076 = vmatmul.mubr.msk.f32.gmra.mrb[64].mxu1 %vm5983_vm0, %v10554_v42  ;;  %8064 = vmatmul.mubr.msk.f32.gmra.mrb[44].mxu0 %vm5983_vm0, %v10560_v35 }
 0x66c   : > { %6270 = vmatprep.mubr.f32.mxu1 %v9880_v24  ;;  %6198 = vmatprep.mubr.f32.mxu0 %v9880_v24 }
 0x66f   : > { %8077 = vmatmul.mubr.msk.f32.gmra.mrb[66].mxu1 %vm5983_vm0, %v10570_v61  ;;  %8065 = vmatmul.mubr.msk.f32.gmra.mrb[46].mxu0 %vm5983_vm0, %v10576_v2 }
 0x670   : > { %6276 = vmatprep.mubr.f32.mxu1 %v9880_v24  ;;  %6711 = vmatprep.mubr.f32.mxu0 %v9880_v24 }
 0x673   : > { %8078 = vmatmul.mubr.msk.f32.gmra.mrb[68].mxu1 %vm5983_vm0, %v10586_v38  ;;  %8166 = vmatmul.mubr.msk.f32.vlgmr.msra.gmra.mrb[48].mxu0 %vm5983_vm0, %v10398_v12 }
 0x674   : > { %6282 = vmatprep.mubr.f32.mxu1 %v9880_v24  ;;  %6717 = vmatprep.mubr.f32.mxu0 %v9880_v24 }
 0x677   : > { %8079 = vmatmul.mubr.msk.f32.gmra.mrb[70].mxu1 %vm5983_vm0, %v10597_v23  ;;  %8167 = vmatmul.mubr.msk.f32.gmra.mrb[50].mxu0 %vm5983_vm0, %v10414_v14 }
 0x678   : > { %6288 = vmatprep.mubr.f32.mxu1 %v9880_v24  ;;  %6723 = vmatprep.mubr.f32.mxu0 %v9880_v24 }
 0x67b   : > { %8080 = vmatmul.mubr.msk.f32.gmra.mrb[72].mxu1 %vm5983_vm0, %v10608_v1  ;;  %8168 = vmatmul.mubr.msk.f32.gmra.mrb[52].mxu0 %vm5983_vm0, %v10430_v33 }
 0x67c   : > { %6294 = vmatprep.mubr.f32.mxu1 %v9880_v24  ;;  %6729 = vmatprep.mubr.f32.mxu0 %v9880_v24 }
 0x67f   : > { %8081 = vmatmul.mubr.msk.f32.gmra.mrb[74].mxu1 %vm5983_vm0, %v10619_v37  ;;  %8169 = vmatmul.mubr.msk.f32.gmra.mrb[54].mxu0 %vm5983_vm0, %v10448_v34 }
 0x680   : > { %6421 = vmatprep.mubr.f32.mxu1 %v9880_v24  ;;  %6735 = vmatprep.mubr.f32.mxu0 %v9880_v24 }
 0x683   : > { %8082 = vmatmul.mubr.msk.f32.vlgmr.msra.gmra.mrb[76].mxu1 %vm5983_vm0, %v10398_v12  ;;  %8170 = vmatmul.mubr.msk.f32.gmra.mrb[56].mxu0 %vm5983_vm0, %v10464_v36 }
 0x684   : > { %6938 = vmatpush1.msra.mxu1 %v10432_v31  ;;  %6427 = vmatprep.mubr.f32.mxu1 %v9880_v24 }
 0x685   : > { %6741 = vmatprep.mubr.f32.mxu0 %v9880_v24 }
 0x687   : > { %8083 = vmatmul.mubr.msk.f32.gmra.mrb[78].mxu1 %vm5983_vm0, %v10414_v14  ;;  %8171 = vmatmul.mubr.msk.f32.gmra.mrb[58].mxu0 %vm5983_vm0, %v10480_v45 }
 0x688   : > { %6433 = vmatprep.mubr.f32.mxu1 %v9880_v24  ;;  %6747 = vmatprep.mubr.f32.mxu0 %v9880_v24 }
 0x68b   : > { %8084 = vmatmul.mubr.msk.f32.gmra.mrb[80].mxu1 %vm5983_vm0, %v10430_v33  ;;  %8172 = vmatmul.mubr.msk.f32.gmra.mrb[60].mxu0 %vm5983_vm0, %v10496_v19 }
 0x68c   : > { %6439 = vmatprep.mubr.f32.mxu1 %v9880_v24  ;;  %6753 = vmatprep.mubr.f32.mxu0 %v9880_v24 }
 0x68f   : > { %8085 = vmatmul.mubr.msk.f32.gmra.mrb[82].mxu1 %vm5983_vm0, %v10448_v34  ;;  %8173 = vmatmul.mubr.msk.f32.gmra.mrb[62].mxu0 %vm5983_vm0, %v10512_v20 }
 0x690   : > { %6445 = vmatprep.mubr.f32.mxu1 %v9880_v24  ;;  %6759 = vmatprep.mubr.f32.mxu0 %v9880_v24 }
 0x693   : > { %8086 = vmatmul.mubr.msk.f32.gmra.mrb[84].mxu1 %vm5983_vm0, %v10464_v36  ;;  %8174 = vmatmul.mubr.msk.f32.gmra.mrb[64].mxu0 %vm5983_vm0, %v10528_v41 }
 0x694   : > { %6451 = vmatprep.mubr.f32.mxu1 %v9880_v24  ;;  %6765 = vmatprep.mubr.f32.mxu0 %v9880_v24 }
 0x697   : > { %8087 = vmatmul.mubr.msk.f32.gmra.mrb[86].mxu1 %vm5983_vm0, %v10480_v45  ;;  %8175 = vmatmul.mubr.msk.f32.gmra.mrb[66].mxu0 %vm5983_vm0, %v10544_v40 }
 0x698   : > { %6457 = vmatprep.mubr.f32.mxu1 %v9880_v24  ;;  %6771 = vmatprep.mubr.f32.mxu0 %v9880_v24 }
 0x69b   : > { %8088 = vmatmul.mubr.msk.f32.gmra.mrb[88].mxu1 %vm5983_vm0, %v10496_v19  ;;  %8176 = vmatmul.mubr.msk.f32.gmra.mrb[68].mxu0 %vm5983_vm0, %v10560_v35 }
 0x69c   : > { %6463 = vmatprep.mubr.f32.mxu1 %v9880_v24  ;;  %6777 = vmatprep.mubr.f32.mxu0 %v9880_v24 }
 0x69f   : > { %8089 = vmatmul.mubr.msk.f32.gmra.mrb[90].mxu1 %vm5983_vm0, %v10512_v20  ;;  %8177 = vmatmul.mubr.msk.f32.gmra.mrb[70].mxu0 %vm5983_vm0, %v10576_v2 }
 0x6a0   : > { %6469 = vmatprep.mubr.f32.mxu1 %v9880_v24  ;;  %6783 = vmatprep.mubr.f32.mxu0 %v9880_v24 }
 0x6a3   : > { %8090 = vmatmul.mubr.msk.f32.gmra.mrb[92].mxu1 %vm5983_vm0, %v10528_v41  ;;  %8178 = vmatmul.mubr.msk.f32.gmra.mrb[72].mxu0 %vm5983_vm0, %v10393_v62 }
 0x6a4   : > { %6475 = vmatprep.mubr.f32.mxu1 %v9880_v24  ;;  %6789 = vmatprep.mubr.f32.mxu0 %v9880_v24 }
 0x6a7   : > { %8091 = vmatmul.mubr.msk.f32.gmra.mrb[94].mxu1 %vm5983_vm0, %v10544_v40  ;;  %8179 = vmatmul.mubr.msk.f32.gmra.mrb[74].mxu0 %vm5983_vm0, %v10408_v50 }
 0x6a8   : > { %6481 = vmatprep.mubr.f32.mxu1 %v9880_v24  ;;  %6795 = vmatprep.mubr.f32.mxu0 %v9880_v24 }
 0x6ab   : > { %8092 = vmatmul.mubr.msk.f32.gmra.mrb[96].mxu1 %vm5983_vm0, %v10560_v35  ;;  %8180 = vmatmul.mubr.msk.f32.gmra.mrb[76].mxu0 %vm5983_vm0, %v10424_v32 }
 0x6ac   : > { %6487 = vmatprep.mubr.f32.mxu1 %v9880_v24  ;;  %6801 = vmatprep.mubr.f32.mxu0 %v9880_v24 }
 0x6af   : > { %8093 = vmatmul.mubr.msk.f32.gmra.mrb[98].mxu1 %vm5983_vm0, %v10576_v2  ;;  %8181 = vmatmul.mubr.msk.f32.gmra.mrb[78].mxu0 %vm5983_vm0, %v10442_v16 }
 0x6b0   : > { %6493 = vmatprep.mubr.f32.mxu1 %v9880_v24  ;;  %6807 = vmatprep.mubr.f32.mxu0 %v9880_v24 }
 0x6b3   : > { %8094 = vmatmul.mubr.msk.f32.gmra.mrb[100].mxu1 %vm5983_vm0, %v10393_v62  ;;  %8182 = vmatmul.mubr.msk.f32.gmra.mrb[80].mxu0 %vm5983_vm0, %v10458_v9 }
 0x6b4   : > { %6499 = vmatprep.mubr.f32.mxu1 %v9880_v24  ;;  %6813 = vmatprep.mubr.f32.mxu0 %v9880_v24 }
 0x6b7   : > { %8095 = vmatmul.mubr.msk.f32.gmra.mrb[102].mxu1 %vm5983_vm0, %v10408_v50  ;;  %8183 = vmatmul.mubr.msk.f32.gmra.mrb[82].mxu0 %vm5983_vm0, %v10474_v26 }
 0x6b8   : > { %6505 = vmatprep.mubr.f32.mxu1 %v9880_v24  ;;  %6819 = vmatprep.mubr.f32.mxu0 %v9880_v24 }
 0x6bb   : > { %8096 = vmatmul.mubr.msk.f32.gmra.mrb[104].mxu1 %vm5983_vm0, %v10424_v32  ;;  %8184 = vmatmul.mubr.msk.f32.gmra.mrb[84].mxu0 %vm5983_vm0, %v10490_v18 }
 0x6bc   : > { %6511 = vmatprep.mubr.f32.mxu1 %v9880_v24  ;;  %6825 = vmatprep.mubr.f32.mxu0 %v9880_v24 }
 0x6bf   : > { %8097 = vmatmul.mubr.msk.f32.gmra.mrb[106].mxu1 %vm5983_vm0, %v10442_v16  ;;  %8185 = vmatmul.mubr.msk.f32.gmra.mrb[86].mxu0 %vm5983_vm0, %v10506_v22 }
 0x6c0   : > { %6517 = vmatprep.mubr.f32.mxu1 %v9880_v24  ;;  %6831 = vmatprep.mubr.f32.mxu0 %v9880_v24 }
 0x6c3   : > { %8098 = vmatmul.mubr.msk.f32.gmra.mrb[108].mxu1 %vm5983_vm0, %v10458_v9  ;;  %8186 = vmatmul.mubr.msk.f32.gmra.mrb[88].mxu0 %vm5983_vm0, %v10522_v21 }
 0x6c4   : > { %6523 = vmatprep.mubr.f32.mxu1 %v9880_v24  ;;  %6837 = vmatprep.mubr.f32.mxu0 %v9880_v24 }
 0x6c7   : > { %8099 = vmatmul.mubr.msk.f32.gmra.mrb[110].mxu1 %vm5983_vm0, %v10474_v26  ;;  %8187 = vmatmul.mubr.msk.f32.gmra.mrb[90].mxu0 %vm5983_vm0, %v10538_v56 }
 0x6c8   : > { %6529 = vmatprep.mubr.f32.mxu1 %v9880_v24  ;;  %6843 = vmatprep.mubr.f32.mxu0 %v9880_v24 }
 0x6cb   : > { %8100 = vmatmul.mubr.msk.f32.gmra.mrb[112].mxu1 %vm5983_vm0, %v10490_v18  ;;  %8188 = vmatmul.mubr.msk.f32.gmra.mrb[92].mxu0 %vm5983_vm0, %v10554_v42 }
 0x6cc   : > { %6535 = vmatprep.mubr.f32.mxu1 %v9880_v24  ;;  %6849 = vmatprep.mubr.f32.mxu0 %v9880_v24 }
 0x6cf   : > { %8101 = vmatmul.mubr.msk.f32.gmra.mrb[114].mxu1 %vm5983_vm0, %v10506_v22  ;;  %8189 = vmatmul.mubr.msk.f32.gmra.mrb[94].mxu0 %vm5983_vm0, %v10570_v61 }
 0x6d0   : > { %6541 = vmatprep.mubr.f32.mxu1 %v9880_v24  ;;  %6855 = vmatprep.mubr.f32.mxu0 %v9880_v24 }
 0x6d3   : > { %8102 = vmatmul.mubr.msk.f32.gmra.mrb[116].mxu1 %vm5983_vm0, %v10522_v21  ;;  %8190 = vmatmul.mubr.msk.f32.gmra.mrb[96].mxu0 %vm5983_vm0, %v10586_v38 }
 0x6d4   : > { %6547 = vmatprep.mubr.f32.mxu1 %v9880_v24  ;;  %6861 = vmatprep.mubr.f32.mxu0 %v9880_v24 }
 0x6d7   : > { %8103 = vmatmul.mubr.msk.f32.gmra.mrb[118].mxu1 %vm5983_vm0, %v10538_v56  ;;  %8191 = vmatmul.mubr.msk.f32.gmra.mrb[98].mxu0 %vm5983_vm0, %v10597_v23 }
 0x6d8   : > { %6553 = vmatprep.mubr.f32.mxu1 %v9880_v24  ;;  %6867 = vmatprep.mubr.f32.mxu0 %v9880_v24 }
 0x6db   : > { %8104 = vmatmul.mubr.msk.f32.gmra.mrb[120].mxu1 %vm5983_vm0, %v10554_v42  ;;  %8192 = vmatmul.mubr.msk.f32.gmra.mrb[100].mxu0 %vm5983_vm0, %v10608_v1 }
 0x6dc   : > { %6559 = vmatprep.mubr.f32.mxu1 %v9880_v24  ;;  %6873 = vmatprep.mubr.f32.mxu0 %v9880_v24 }
 0x6df   : > { %8105 = vmatmul.mubr.msk.f32.gmra.mrb[122].mxu1 %vm5983_vm0, %v10570_v61  ;;  %8193 = vmatmul.mubr.msk.f32.gmra.mrb[102].mxu0 %vm5983_vm0, %v10619_v37 }
 0x6e0   : > { %6565 = vmatprep.mubr.f32.mxu1 %v9880_v24 }
 0x6e3   : > { %8106 = vmatmul.mubr.msk.f32.gmra.mrb[124].mxu1 %vm5983_vm0, %v10586_v38 }
 0x6e4   : > { %6571 = vmatprep.mubr.f32.mxu1 %v9880_v24 }
 0x6e7   : > { %8107 = vmatmul.mubr.msk.f32.gmra.mrb[126].mxu1 %vm5983_vm0, %v10597_v23 }
 0x6e8   : > { %6577 = vmatprep.mubr.f32.mxu1 %v9880_v24 }
 0x6eb   : > { %8108 = vmatmul.mubr.msk.f32.gmra.mrb[128].mxu1 %vm5983_vm0, %v10608_v1 }
 0x6ec   : > { %6583 = vmatprep.mubr.f32.mxu1 %v9880_v24 }
 0x6ef   : > { %8109 = vmatmul.mubr.msk.f32.gmra.mrb[130].mxu1 %vm5983_vm0, %v10619_v37 }
 0x6f0   : > { %7001 = vmatprep.mubr.f32.mxu1 %v9880_v24 }
 0x6f3   : > { %8250 = vmatmul.mubr.msk.f32.vlgmr.msra.gmra.mrb[132].mxu1 %vm5983_vm0, %v10398_v12 }
 0x6f4   : > { %7007 = vmatprep.mubr.f32.mxu1 %v9880_v24 }
 0x6f7   : > { %8251 = vmatmul.mubr.msk.f32.gmra.mrb[134].mxu1 %vm5983_vm0, %v10414_v14 }
 0x6f8   : > { %7013 = vmatprep.mubr.f32.mxu1 %v9880_v24 }
 0x6fb   : > { %8252 = vmatmul.mubr.msk.f32.gmra.mrb[136].mxu1 %vm5983_vm0, %v10430_v33 }
 0x6fc   : > { %7019 = vmatprep.mubr.f32.mxu1 %v9880_v24 }
 0x6ff   : > { %8253 = vmatmul.mubr.msk.f32.gmra.mrb[138].mxu1 %vm5983_vm0, %v10448_v34 }
 0x700   : > { %7025 = vmatprep.mubr.f32.mxu1 %v9880_v24 }
 0x703   : > { %8254 = vmatmul.mubr.msk.f32.gmra.mrb[140].mxu1 %vm5983_vm0, %v10464_v36 }
 0x704   : > { %7031 = vmatprep.mubr.f32.mxu1 %v9880_v24 }
 0x707   : > { %8255 = vmatmul.mubr.msk.f32.gmra.mrb[142].mxu1 %vm5983_vm0, %v10480_v45 }
 0x708   : > { %7037 = vmatprep.mubr.f32.mxu1 %v9880_v24 }
 0x70b   : > { %8256 = vmatmul.mubr.msk.f32.gmra.mrb[144].mxu1 %vm5983_vm0, %v10496_v19 }
 0x70c   : > { %7043 = vmatprep.mubr.f32.mxu1 %v9880_v24 }
 0x70f   : > { %8257 = vmatmul.mubr.msk.f32.gmra.mrb[146].mxu1 %vm5983_vm0, %v10512_v20 }
 0x710   : > { %7049 = vmatprep.mubr.f32.mxu1 %v9880_v24 }
 0x713   : > { %8258 = vmatmul.mubr.msk.f32.gmra.mrb[148].mxu1 %vm5983_vm0, %v10528_v41 }
 0x714   : > { %7055 = vmatprep.mubr.f32.mxu1 %v9880_v24 }
 0x716   : > { %v6206_v4 = vpop.f32.mrb[44].mxu1  ;;  %v6134_v6 = vpop.f32.mrb[24].mxu0 }
 0x717   : > { %6325 = vst [vmem:[%s10812_s23 + $0xc0] sm:$0xff] %v6206_v4  ;;  %v6208_v43 = vpop.f32.mrb[45].mxu1  ;;  %8259 = vmatmul.mubr.msk.f32.gmra.mrb[150].mxu1 %vm5983_vm0, %v10544_v40  ;;  %6301 = vst [vmem:[%s10812_s23] sm:$0xff] %v6134_v6  ;;  %v6136_v5 = vpop.f32.mrb[25].mxu0 }
 0x718   : > { %6326 = vst [vmem:[%s10812_s23 + $0xc8] sm:$0xff] %v6208_v43  ;;  %7061 = vmatprep.mubr.f32.mxu1 %v9880_v24  ;;  %6302 = vst [vmem:[%s10812_s23 + $0x8] sm:$0xff] %v6136_v5 }
 0x71a   : > { %v6212_v11 = vpop.f32.mrb[46].mxu1  ;;  %v6140_v17 = vpop.f32.mrb[26].mxu0 }
 0x71b   : > { %6327 = vst [vmem:[%s10812_s23 + $0xd0] sm:$0xff] %v6212_v11  ;;  %v6214_v46 = vpop.f32.mrb[47].mxu1  ;;  %8260 = vmatmul.mubr.msk.f32.gmra.mrb[152].mxu1 %vm5983_vm0, %v10560_v35  ;;  %6303 = vst [vmem:[%s10812_s23 + $0x10] sm:$0xff] %v6140_v17  ;;  %v6142_v27 = vpop.f32.mrb[27].mxu0 }
 0x71c   : > { %6328 = vst [vmem:[%s10812_s23 + $0xd8] sm:$0xff] %v6214_v46  ;;  %7067 = vmatprep.mubr.f32.mxu1 %v9880_v24  ;;  %6304 = vst [vmem:[%s10812_s23 + $0x18] sm:$0xff] %v6142_v27 }
 0x71e   : > { %v6218_v30 = vpop.f32.mrb[48].mxu1  ;;  %v6146_v47 = vpop.f32.mrb[28].mxu0 }
 0x71f   : > { %6329 = vst [vmem:[%s10812_s23 + $0xe0] sm:$0xff] %v6218_v30  ;;  %v6220_v58 = vpop.f32.mrb[49].mxu1  ;;  %8261 = vmatmul.mubr.msk.f32.gmra.mrb[154].mxu1 %vm5983_vm0, %v10576_v2  ;;  %6305 = vst [vmem:[%s10812_s23 + $0x20] sm:$0xff] %v6146_v47  ;;  %v6148_v59 = vpop.f32.mrb[29].mxu0 }
 0x720   : > { %6330 = vst [vmem:[%s10812_s23 + $0xe8] sm:$0xff] %v6220_v58  ;;  %7073 = vmatprep.mubr.f32.mxu1 %v9880_v24  ;;  %6306 = vst [vmem:[%s10812_s23 + $0x28] sm:$0xff] %v6148_v59 }
 0x722   : > { %v6224_v63 = vpop.f32.mrb[50].mxu1  ;;  %v6152_v3 = vpop.f32.mrb[30].mxu0 }
 0x723   : > { %6331 = vst [vmem:[%s10812_s23 + $0xf0] sm:$0xff] %v6224_v63  ;;  %v6226_v0 = vpop.f32.mrb[51].mxu1  ;;  %8262 = vmatmul.mubr.msk.f32.gmra.mrb[156].mxu1 %vm5983_vm0, %v10393_v62  ;;  %6307 = vst [vmem:[%s10812_s23 + $0x30] sm:$0xff] %v6152_v3  ;;  %v6154_v51 = vpop.f32.mrb[31].mxu0 }
 0x724   : > { %6332 = vst [vmem:[%s10812_s23 + $0xf8] sm:$0xff] %v6226_v0  ;;  %7079 = vmatprep.mubr.f32.mxu1 %v9880_v24  ;;  %6308 = vst [vmem:[%s10812_s23 + $0x38] sm:$0xff] %v6154_v51 }
 0x726   : > { %v6230_v48 = vpop.f32.mrb[52].mxu1  ;;  %v6158_v54 = vpop.f32.mrb[32].mxu0 }
 0x727   : > { %6333 = vst [vmem:[%s10812_s23 + $0x100] sm:$0xff] %v6230_v48  ;;  %v6232_v53 = vpop.f32.mrb[53].mxu1  ;;  %8263 = vmatmul.mubr.msk.f32.gmra.mrb[158].mxu1 %vm5983_vm0, %v10408_v50  ;;  %6309 = vst [vmem:[%s10812_s23 + $0x40] sm:$0xff] %v6158_v54  ;;  %v6160_v39 = vpop.f32.mrb[33].mxu0 }
 0x728   : > { %6334 = vst [vmem:[%s10812_s23 + $0x108] sm:$0xff] %v6232_v53  ;;  %7085 = vmatprep.mubr.f32.mxu1 %v9880_v24  ;;  %6310 = vst [vmem:[%s10812_s23 + $0x48] sm:$0xff] %v6160_v39 }
 0x72a   : > { %v6236_v52 = vpop.f32.mrb[54].mxu1  ;;  %v6164_v7 = vpop.f32.mrb[34].mxu0 }
 0x72b   : > { %6335 = vst [vmem:[%s10812_s23 + $0x110] sm:$0xff] %v6236_v52  ;;  %v6238_v44 = vpop.f32.mrb[55].mxu1  ;;  %8264 = vmatmul.mubr.msk.f32.gmra.mrb[160].mxu1 %vm5983_vm0, %v10424_v32  ;;  %6311 = vst [vmem:[%s10812_s23 + $0x50] sm:$0xff] %v6164_v7  ;;  %v6166_v57 = vpop.f32.mrb[35].mxu0 }
 0x72c   : > { %6336 = vst [vmem:[%s10812_s23 + $0x118] sm:$0xff] %v6238_v44  ;;  %7091 = vmatprep.mubr.f32.mxu1 %v9880_v24  ;;  %6312 = vst [vmem:[%s10812_s23 + $0x58] sm:$0xff] %v6166_v57 }
 0x72e   : > { %v6242_v8 = vpop.f32.mrb[56].mxu1  ;;  %v6170_v49 = vpop.f32.mrb[36].mxu0 }
 0x72f   : > { %6337 = vst [vmem:[%s10812_s23 + $0x120] sm:$0xff] %v6242_v8  ;;  %v6244_v10 = vpop.f32.mrb[57].mxu1  ;;  %8265 = vmatmul.mubr.msk.f32.gmra.mrb[162].mxu1 %vm5983_vm0, %v10442_v16  ;;  %6313 = vst [vmem:[%s10812_s23 + $0x60] sm:$0xff] %v6170_v49  ;;  %v6172_v55 = vpop.f32.mrb[37].mxu0 }
 0x730   : > { %6338 = vst [vmem:[%s10812_s23 + $0x128] sm:$0xff] %v6244_v10  ;;  %7097 = vmatprep.mubr.f32.mxu1 %v9880_v24  ;;  %6314 = vst [vmem:[%s10812_s23 + $0x68] sm:$0xff] %v6172_v55 }
 0x732   : > { %v6248_v28 = vpop.f32.mrb[58].mxu1  ;;  %v6176_v62 = vpop.f32.mrb[38].mxu0 }
 0x733   : > { %6339 = vst [vmem:[%s10812_s23 + $0x130] sm:$0xff] %v6248_v28  ;;  %v6250_v12 = vpop.f32.mrb[59].mxu1  ;;  %8266 = vmatmul.mubr.msk.f32.gmra.mrb[164].mxu1 %vm5983_vm0, %v10458_v9  ;;  %6315 = vst [vmem:[%s10812_s23 + $0x70] sm:$0xff] %v6176_v62  ;;  %v6178_v60 = vpop.f32.mrb[39].mxu0 }
 0x734   : > { %6340 = vst [vmem:[%s10812_s23 + $0x138] sm:$0xff] %v6250_v12  ;;  %7103 = vmatprep.mubr.f32.mxu1 %v9880_v24  ;;  %6316 = vst [vmem:[%s10812_s23 + $0x78] sm:$0xff] %v6178_v60 }
 0x736   : > { %v6254_v13 = vpop.f32.mrb[60].mxu1  ;;  %v6182_v50 = vpop.f32.mrb[40].mxu0 }
 0x737   : > { %6341 = vst [vmem:[%s10812_s23 + $0x140] sm:$0xff] %v6254_v13  ;;  %v6256_v14 = vpop.f32.mrb[61].mxu1  ;;  %8267 = vmatmul.mubr.msk.f32.gmra.mrb[166].mxu1 %vm5983_vm0, %v10474_v26  ;;  %6317 = vst [vmem:[%s10812_s23 + $0x80] sm:$0xff] %v6182_v50  ;;  %v6184_v15 = vpop.f32.mrb[41].mxu0 }
 0x738   : > { %6342 = vst [vmem:[%s10812_s23 + $0x148] sm:$0xff] %v6256_v14  ;;  %7109 = vmatprep.mubr.f32.mxu1 %v9880_v24  ;;  %6318 = vst [vmem:[%s10812_s23 + $0x88] sm:$0xff] %v6184_v15 }
 0x73a   : > { %v6260_v25 = vpop.f32.mrb[62].mxu1  ;;  %v6188_v32 = vpop.f32.mrb[42].mxu0 }
 0x73b   : > { %6343 = vst [vmem:[%s10812_s23 + $0x150] sm:$0xff] %v6260_v25  ;;  %v6262_v33 = vpop.f32.mrb[63].mxu1  ;;  %8268 = vmatmul.mubr.msk.f32.gmra.mrb[168].mxu1 %vm5983_vm0, %v10490_v18  ;;  %6319 = vst [vmem:[%s10812_s23 + $0x90] sm:$0xff] %v6188_v32  ;;  %v6190_v31 = vpop.f32.mrb[43].mxu0 }
 0x73c   : > { %6344 = vst [vmem:[%s10812_s23 + $0x158] sm:$0xff] %v6262_v33  ;;  %7115 = vmatprep.mubr.f32.mxu1 %v9880_v24  ;;  %6320 = vst [vmem:[%s10812_s23 + $0x98] sm:$0xff] %v6190_v31 }
 0x73e   : > { %v6266_v29 = vpop.f32.mrb[64].mxu1  ;;  %v6194_v16 = vpop.f32.mrb[44].mxu0 }
 0x73f   : > { %6345 = vst [vmem:[%s10812_s23 + $0x160] sm:$0xff] %v6266_v29  ;;  %v6268_v34 = vpop.f32.mrb[65].mxu1  ;;  %8269 = vmatmul.mubr.msk.f32.gmra.mrb[170].mxu1 %vm5983_vm0, %v10506_v22  ;;  %6321 = vst [vmem:[%s10812_s23 + $0xa0] sm:$0xff] %v6194_v16  ;;  %v6196_v9 = vpop.f32.mrb[45].mxu0 }
 0x740   : > { %6346 = vst [vmem:[%s10812_s23 + $0x168] sm:$0xff] %v6268_v34  ;;  %7121 = vmatprep.mubr.f32.mxu1 %v9880_v24  ;;  %6322 = vst [vmem:[%s10812_s23 + $0xa8] sm:$0xff] %v6196_v9 }
 0x742   : > { %v6272_v36 = vpop.f32.mrb[66].mxu1  ;;  %v6200_v26 = vpop.f32.mrb[46].mxu0 }
 0x743   : > { %6347 = vst [vmem:[%s10812_s23 + $0x170] sm:$0xff] %v6272_v36  ;;  %v6274_v45 = vpop.f32.mrb[67].mxu1  ;;  %8270 = vmatmul.mubr.msk.f32.gmra.mrb[172].mxu1 %vm5983_vm0, %v10522_v21  ;;  %6323 = vst [vmem:[%s10812_s23 + $0xb0] sm:$0xff] %v6200_v26  ;;  %v6202_v18 = vpop.f32.mrb[47].mxu0 }
 0x744   : > { %6348 = vst [vmem:[%s10812_s23 + $0x178] sm:$0xff] %v6274_v45  ;;  %7127 = vmatprep.mubr.f32.mxu1 %v9880_v24  ;;  %6324 = vst [vmem:[%s10812_s23 + $0xb8] sm:$0xff] %v6202_v18 }
 0x746   : > { %v6278_v19 = vpop.f32.mrb[68].mxu1  ;;  %v6713_v22 = vpop.f32.mrb[48].mxu0 }
 0x747   : > { %6349 = vst [vmem:[%s10812_s23 + $0x180] sm:$0xff] %v6278_v19  ;;  %v6280_v20 = vpop.f32.mrb[69].mxu1  ;;  %8271 = vmatmul.mubr.msk.f32.gmra.mrb[174].mxu1 %vm5983_vm0, %v10538_v56  ;;  %8194 = vst [vmem:[%s10812_s23 + $0x380] sm:$0xff] %v6713_v22  ;;  %v6715_v41 = vpop.f32.mrb[49].mxu0 }
 0x748   : > { %6350 = vst [vmem:[%s10812_s23 + $0x188] sm:$0xff] %v6280_v20  ;;  %7133 = vmatprep.mubr.f32.mxu1 %v9880_v24  ;;  %8195 = vst [vmem:[%s10812_s23 + $0x388] sm:$0xff] %v6715_v41 }
 0x74a   : > { %v6284_v21 = vpop.f32.mrb[70].mxu1  ;;  %v6719_v40 = vpop.f32.mrb[50].mxu0 }
 0x74b   : > { %6351 = vst [vmem:[%s10812_s23 + $0x190] sm:$0xff] %v6284_v21  ;;  %v6286_v35 = vpop.f32.mrb[71].mxu1  ;;  %8272 = vmatmul.mubr.msk.f32.gmra.mrb[176].mxu1 %vm5983_vm0, %v10554_v42  ;;  %8196 = vst [vmem:[%s10812_s23 + $0x390] sm:$0xff] %v6719_v40  ;;  %v6721_v2 = vpop.f32.mrb[51].mxu0 }
 0x74c   : > { %6352 = vst [vmem:[%s10812_s23 + $0x198] sm:$0xff] %v6286_v35  ;;  %7139 = vmatprep.mubr.f32.mxu1 %v9880_v24  ;;  %8197 = vst [vmem:[%s10812_s23 + $0x398] sm:$0xff] %v6721_v2 }
 0x74e   : > { %v6290_v56 = vpop.f32.mrb[72].mxu1  ;;  %v6725_v4 = vpop.f32.mrb[52].mxu0 }
 0x74f   : > { %6353 = vst [vmem:[%s10812_s23 + $0x1a0] sm:$0xff] %v6290_v56  ;;  %v6292_v6 = vpop.f32.mrb[73].mxu1  ;;  %8273 = vmatmul.mubr.msk.f32.gmra.mrb[178].mxu1 %vm5983_vm0, %v10570_v61  ;;  %8198 = vst [vmem:[%s10812_s23 + $0x3a0] sm:$0xff] %v6725_v4  ;;  %v6727_v43 = vpop.f32.mrb[53].mxu0 }
 0x750   : > { %6354 = vst [vmem:[%s10812_s23 + $0x1a8] sm:$0xff] %v6292_v6  ;;  %7145 = vmatprep.mubr.f32.mxu1 %v9880_v24  ;;  %8199 = vst [vmem:[%s10812_s23 + $0x3a8] sm:$0xff] %v6727_v43 }
 0x752   : > { %v6296_v42 = vpop.f32.mrb[74].mxu1  ;;  %v6731_v5 = vpop.f32.mrb[54].mxu0 }
 0x753   : > { %6355 = vst [vmem:[%s10812_s23 + $0x1b0] sm:$0xff] %v6296_v42  ;;  %v6298_v11 = vpop.f32.mrb[75].mxu1  ;;  %8274 = vmatmul.mubr.msk.f32.gmra.mrb[180].mxu1 %vm5983_vm0, %v10586_v38  ;;  %8200 = vst [vmem:[%s10812_s23 + $0x3b0] sm:$0xff] %v6731_v5  ;;  %v6733_v17 = vpop.f32.mrb[55].mxu0 }
 0x754   : > { %6356 = vst [vmem:[%s10812_s23 + $0x1b8] sm:$0xff] %v6298_v11  ;;  %7151 = vmatprep.mubr.f32.mxu1 %v9880_v24  ;;  %8201 = vst [vmem:[%s10812_s23 + $0x3b8] sm:$0xff] %v6733_v17 }
 0x756   : > { %v6423_v61 = vpop.f32.mrb[76].mxu1  ;;  %v6737_v46 = vpop.f32.mrb[56].mxu0 }
 0x757   : > { %8110 = vst [vmem:[%s10812_s23 + $0x1c0] sm:$0xff] %v6423_v61  ;;  %v6425_v27 = vpop.f32.mrb[77].mxu1  ;;  %8275 = vmatmul.mubr.msk.f32.gmra.mrb[182].mxu1 %vm5983_vm0, %v10597_v23  ;;  %8202 = vst [vmem:[%s10812_s23 + $0x3c0] sm:$0xff] %v6737_v46  ;;  %v6739_v30 = vpop.f32.mrb[57].mxu0 }
 0x758   : > { %8111 = vst [vmem:[%s10812_s23 + $0x1c8] sm:$0xff] %v6425_v27  ;;  %7157 = vmatprep.mubr.f32.mxu1 %v9880_v24  ;;  %8203 = vst [vmem:[%s10812_s23 + $0x3c8] sm:$0xff] %v6739_v30 }
 0x75a   : > { %v6429_v38 = vpop.f32.mrb[78].mxu1  ;;  %v6743_v47 = vpop.f32.mrb[58].mxu0 }
 0x75b   : > { %8112 = vst [vmem:[%s10812_s23 + $0x1d0] sm:$0xff] %v6429_v38  ;;  %v6431_v58 = vpop.f32.mrb[79].mxu1  ;;  %8276 = vmatmul.mubr.msk.f32.gmra.mrb[184].mxu1 %vm5983_vm0, %v10608_v1  ;;  %8204 = vst [vmem:[%s10812_s23 + $0x3d0] sm:$0xff] %v6743_v47  ;;  %v6745_v23 = vpop.f32.mrb[59].mxu0 }
 0x75c   : > { %8113 = vst [vmem:[%s10812_s23 + $0x1d8] sm:$0xff] %v6431_v58  ;;  %7163 = vmatprep.mubr.f32.mxu1 %v9880_v24  ;;  %8205 = vst [vmem:[%s10812_s23 + $0x3d8] sm:$0xff] %v6745_v23 }
 0x75e   : > { %v6435_v59 = vpop.f32.mrb[80].mxu1  ;;  %v6749_v63 = vpop.f32.mrb[60].mxu0 }
 0x75f   : > { %8114 = vst [vmem:[%s10812_s23 + $0x1e0] sm:$0xff] %v6435_v59  ;;  %v6437_v3 = vpop.f32.mrb[81].mxu1  ;;  %8277 = vmatmul.mubr.msk.f32.gmra.mrb[186].mxu1 %vm5983_vm0, %v10619_v37  ;;  %8206 = vst [vmem:[%s10812_s23 + $0x3e0] sm:$0xff] %v6749_v63  ;;  %v6751_v1 = vpop.f32.mrb[61].mxu0 }
 0x760   : > { %8115 = vst [vmem:[%s10812_s23 + $0x1e8] sm:$0xff] %v6437_v3  ;;  %8207 = vst [vmem:[%s10812_s23 + $0x3e8] sm:$0xff] %v6751_v1 }
 0x762   : > { %v6441_v0 = vpop.f32.mrb[82].mxu1  ;;  %v6755_v24 = vpop.f32.mrb[62].mxu0 }
 0x763   : > { %8116 = vst [vmem:[%s10812_s23 + $0x1f0] sm:$0xff] %v6441_v0  ;;  %v6443_v51 = vpop.f32.mrb[83].mxu1  ;;  %8208 = vst [vmem:[%s10812_s23 + $0x3f0] sm:$0xff] %v6755_v24  ;;  %v6757_v48 = vpop.f32.mrb[63].mxu0 }
 0x764   : > { %8117 = vst [vmem:[%s10812_s23 + $0x1f8] sm:$0xff] %v6443_v51  ;;  %8209 = vst [vmem:[%s10812_s23 + $0x3f8] sm:$0xff] %v6757_v48 }
 0x766   : > { %v6447_v37 = vpop.f32.mrb[84].mxu1  ;;  %v6761_v54 = vpop.f32.mrb[64].mxu0 }
 0x767   : > { %8118 = vst [vmem:[%s10812_s23 + $0x200] sm:$0xff] %v6447_v37  ;;  %v6449_v53 = vpop.f32.mrb[85].mxu1  ;;  %8210 = vst [vmem:[%s10812_s23 + $0x400] sm:$0xff] %v6761_v54  ;;  %v6763_v39 = vpop.f32.mrb[65].mxu0 }
 0x768   : > { %8119 = vst [vmem:[%s10812_s23 + $0x208] sm:$0xff] %v6449_v53  ;;  %8211 = vst [vmem:[%s10812_s23 + $0x408] sm:$0xff] %v6763_v39 }
 0x76a   : > { %v6453_v52 = vpop.f32.mrb[86].mxu1  ;;  %v6767_v7 = vpop.f32.mrb[66].mxu0 }
 0x76b   : > { %8120 = vst [vmem:[%s10812_s23 + $0x210] sm:$0xff] %v6453_v52  ;;  %v6455_v44 = vpop.f32.mrb[87].mxu1  ;;  %8212 = vst [vmem:[%s10812_s23 + $0x410] sm:$0xff] %v6767_v7  ;;  %v6769_v57 = vpop.f32.mrb[67].mxu0 }
 0x76c   : > { %8121 = vst [vmem:[%s10812_s23 + $0x218] sm:$0xff] %v6455_v44  ;;  %8213 = vst [vmem:[%s10812_s23 + $0x418] sm:$0xff] %v6769_v57 }
 0x76e   : > { %v6459_v8 = vpop.f32.mrb[88].mxu1  ;;  %v6773_v49 = vpop.f32.mrb[68].mxu0 }
 0x76f   : > { %8122 = vst [vmem:[%s10812_s23 + $0x220] sm:$0xff] %v6459_v8  ;;  %v6461_v10 = vpop.f32.mrb[89].mxu1  ;;  %8214 = vst [vmem:[%s10812_s23 + $0x420] sm:$0xff] %v6773_v49  ;;  %v6775_v55 = vpop.f32.mrb[69].mxu0 }
 0x770   : > { %8123 = vst [vmem:[%s10812_s23 + $0x228] sm:$0xff] %v6461_v10  ;;  %8215 = vst [vmem:[%s10812_s23 + $0x428] sm:$0xff] %v6775_v55 }
 0x772   : > { %v6465_v28 = vpop.f32.mrb[90].mxu1  ;;  %v6779_v62 = vpop.f32.mrb[70].mxu0 }
 0x773   : > { %8124 = vst [vmem:[%s10812_s23 + $0x230] sm:$0xff] %v6465_v28  ;;  %v6467_v12 = vpop.f32.mrb[91].mxu1  ;;  %8216 = vst [vmem:[%s10812_s23 + $0x430] sm:$0xff] %v6779_v62  ;;  %v6781_v60 = vpop.f32.mrb[71].mxu0 }
 0x774   : > { %8125 = vst [vmem:[%s10812_s23 + $0x238] sm:$0xff] %v6467_v12  ;;  %8217 = vst [vmem:[%s10812_s23 + $0x438] sm:$0xff] %v6781_v60 }
 0x776   : > { %v6471_v13 = vpop.f32.mrb[92].mxu1  ;;  %v6785_v50 = vpop.f32.mrb[72].mxu0 }
 0x777   : > { %8126 = vst [vmem:[%s10812_s23 + $0x240] sm:$0xff] %v6471_v13  ;;  %v6473_v14 = vpop.f32.mrb[93].mxu1  ;;  %8218 = vst [vmem:[%s10812_s23 + $0x440] sm:$0xff] %v6785_v50  ;;  %v6787_v15 = vpop.f32.mrb[73].mxu0 }
 0x778   : > { %8127 = vst [vmem:[%s10812_s23 + $0x248] sm:$0xff] %v6473_v14  ;;  %8219 = vst [vmem:[%s10812_s23 + $0x448] sm:$0xff] %v6787_v15 }
 0x77a   : > { %v6477_v25 = vpop.f32.mrb[94].mxu1  ;;  %v6791_v32 = vpop.f32.mrb[74].mxu0 }
 0x77b   : > { %8128 = vst [vmem:[%s10812_s23 + $0x250] sm:$0xff] %v6477_v25  ;;  %v6479_v33 = vpop.f32.mrb[95].mxu1  ;;  %8220 = vst [vmem:[%s10812_s23 + $0x450] sm:$0xff] %v6791_v32  ;;  %v6793_v31 = vpop.f32.mrb[75].mxu0 }
 0x77c   : > { %8129 = vst [vmem:[%s10812_s23 + $0x258] sm:$0xff] %v6479_v33  ;;  %8221 = vst [vmem:[%s10812_s23 + $0x458] sm:$0xff] %v6793_v31 }
 0x77e   : > { %v6483_v29 = vpop.f32.mrb[96].mxu1  ;;  %v6797_v16 = vpop.f32.mrb[76].mxu0 }
 0x77f   : > { %8130 = vst [vmem:[%s10812_s23 + $0x260] sm:$0xff] %v6483_v29  ;;  %v6485_v34 = vpop.f32.mrb[97].mxu1  ;;  %8222 = vst [vmem:[%s10812_s23 + $0x460] sm:$0xff] %v6797_v16  ;;  %v6799_v9 = vpop.f32.mrb[77].mxu0 }
 0x780   : > { %8131 = vst [vmem:[%s10812_s23 + $0x268] sm:$0xff] %v6485_v34  ;;  %8223 = vst [vmem:[%s10812_s23 + $0x468] sm:$0xff] %v6799_v9 }
 0x782   : > { %v6489_v36 = vpop.f32.mrb[98].mxu1  ;;  %v6803_v26 = vpop.f32.mrb[78].mxu0 }
 0x783   : > { %8132 = vst [vmem:[%s10812_s23 + $0x270] sm:$0xff] %v6489_v36  ;;  %v6491_v45 = vpop.f32.mrb[99].mxu1  ;;  %8224 = vst [vmem:[%s10812_s23 + $0x470] sm:$0xff] %v6803_v26  ;;  %v6805_v18 = vpop.f32.mrb[79].mxu0 }
 0x784   : > { %8133 = vst [vmem:[%s10812_s23 + $0x278] sm:$0xff] %v6491_v45  ;;  %8225 = vst [vmem:[%s10812_s23 + $0x478] sm:$0xff] %v6805_v18 }
 0x786   : > { %v6495_v19 = vpop.f32.mrb[100].mxu1  ;;  %v6809_v22 = vpop.f32.mrb[80].mxu0 }
 0x787   : > { %8134 = vst [vmem:[%s10812_s23 + $0x280] sm:$0xff] %v6495_v19  ;;  %v6497_v20 = vpop.f32.mrb[101].mxu1  ;;  %8226 = vst [vmem:[%s10812_s23 + $0x480] sm:$0xff] %v6809_v22  ;;  %v6811_v41 = vpop.f32.mrb[81].mxu0 }
 0x788   : > { %8135 = vst [vmem:[%s10812_s23 + $0x288] sm:$0xff] %v6497_v20  ;;  %8227 = vst [vmem:[%s10812_s23 + $0x488] sm:$0xff] %v6811_v41 }
 0x78a   : > { %v6501_v21 = vpop.f32.mrb[102].mxu1  ;;  %v6815_v40 = vpop.f32.mrb[82].mxu0 }
 0x78b   : > { %8136 = vst [vmem:[%s10812_s23 + $0x290] sm:$0xff] %v6501_v21  ;;  %v6503_v35 = vpop.f32.mrb[103].mxu1  ;;  %8228 = vst [vmem:[%s10812_s23 + $0x490] sm:$0xff] %v6815_v40  ;;  %v6817_v2 = vpop.f32.mrb[83].mxu0 }
 0x78c   : > { %8137 = vst [vmem:[%s10812_s23 + $0x298] sm:$0xff] %v6503_v35  ;;  %8229 = vst [vmem:[%s10812_s23 + $0x498] sm:$0xff] %v6817_v2 }
 0x78e   : > { %v6507_v56 = vpop.f32.mrb[104].mxu1  ;;  %v6821_v4 = vpop.f32.mrb[84].mxu0 }
 0x78f   : > { %8138 = vst [vmem:[%s10812_s23 + $0x2a0] sm:$0xff] %v6507_v56  ;;  %v6509_v6 = vpop.f32.mrb[105].mxu1  ;;  %8230 = vst [vmem:[%s10812_s23 + $0x4a0] sm:$0xff] %v6821_v4  ;;  %v6823_v43 = vpop.f32.mrb[85].mxu0 }
 0x790   : > { %8139 = vst [vmem:[%s10812_s23 + $0x2a8] sm:$0xff] %v6509_v6  ;;  %8231 = vst [vmem:[%s10812_s23 + $0x4a8] sm:$0xff] %v6823_v43 }
 0x792   : > { %v6513_v42 = vpop.f32.mrb[106].mxu1  ;;  %v6827_v5 = vpop.f32.mrb[86].mxu0 }
 0x793   : > { %8140 = vst [vmem:[%s10812_s23 + $0x2b0] sm:$0xff] %v6513_v42  ;;  %v6515_v11 = vpop.f32.mrb[107].mxu1  ;;  %8232 = vst [vmem:[%s10812_s23 + $0x4b0] sm:$0xff] %v6827_v5  ;;  %v6829_v17 = vpop.f32.mrb[87].mxu0 }
 0x794   : > { %8141 = vst [vmem:[%s10812_s23 + $0x2b8] sm:$0xff] %v6515_v11  ;;  %8233 = vst [vmem:[%s10812_s23 + $0x4b8] sm:$0xff] %v6829_v17 }
 0x796   : > { %v6519_v61 = vpop.f32.mrb[108].mxu1  ;;  %v6833_v46 = vpop.f32.mrb[88].mxu0 }
 0x797   : > { %8142 = vst [vmem:[%s10812_s23 + $0x2c0] sm:$0xff] %v6519_v61  ;;  %v6521_v27 = vpop.f32.mrb[109].mxu1  ;;  %8234 = vst [vmem:[%s10812_s23 + $0x4c0] sm:$0xff] %v6833_v46  ;;  %v6835_v30 = vpop.f32.mrb[89].mxu0 }
 0x798   : > { %8143 = vst [vmem:[%s10812_s23 + $0x2c8] sm:$0xff] %v6521_v27  ;;  %8235 = vst [vmem:[%s10812_s23 + $0x4c8] sm:$0xff] %v6835_v30 }
 0x79a   : > { %v6525_v38 = vpop.f32.mrb[110].mxu1  ;;  %v6839_v47 = vpop.f32.mrb[90].mxu0 }
 0x79b   : > { %8144 = vst [vmem:[%s10812_s23 + $0x2d0] sm:$0xff] %v6525_v38  ;;  %v6527_v58 = vpop.f32.mrb[111].mxu1  ;;  %8236 = vst [vmem:[%s10812_s23 + $0x4d0] sm:$0xff] %v6839_v47  ;;  %v6841_v23 = vpop.f32.mrb[91].mxu0 }
 0x79c   : > { %8145 = vst [vmem:[%s10812_s23 + $0x2d8] sm:$0xff] %v6527_v58  ;;  %8237 = vst [vmem:[%s10812_s23 + $0x4d8] sm:$0xff] %v6841_v23 }
 0x79e   : > { %v6531_v59 = vpop.f32.mrb[112].mxu1  ;;  %v6845_v63 = vpop.f32.mrb[92].mxu0 }
 0x79f   : > { %8146 = vst [vmem:[%s10812_s23 + $0x2e0] sm:$0xff] %v6531_v59  ;;  %v6533_v3 = vpop.f32.mrb[113].mxu1  ;;  %8238 = vst [vmem:[%s10812_s23 + $0x4e0] sm:$0xff] %v6845_v63  ;;  %v6847_v1 = vpop.f32.mrb[93].mxu0 }
 0x7a0   : > { %8147 = vst [vmem:[%s10812_s23 + $0x2e8] sm:$0xff] %v6533_v3  ;;  %8239 = vst [vmem:[%s10812_s23 + $0x4e8] sm:$0xff] %v6847_v1 }
 0x7a2   : > { %v6537_v0 = vpop.f32.mrb[114].mxu1  ;;  %v6851_v24 = vpop.f32.mrb[94].mxu0 }
 0x7a3   : > { %8148 = vst [vmem:[%s10812_s23 + $0x2f0] sm:$0xff] %v6537_v0  ;;  %v6539_v51 = vpop.f32.mrb[115].mxu1  ;;  %8240 = vst [vmem:[%s10812_s23 + $0x4f0] sm:$0xff] %v6851_v24  ;;  %v6853_v48 = vpop.f32.mrb[95].mxu0 }
 0x7a4   : > { %8149 = vst [vmem:[%s10812_s23 + $0x2f8] sm:$0xff] %v6539_v51  ;;  %8241 = vst [vmem:[%s10812_s23 + $0x4f8] sm:$0xff] %v6853_v48 }
 0x7a6   : > { %v6543_v37 = vpop.f32.mrb[116].mxu1  ;;  %v6857_v54 = vpop.f32.mrb[96].mxu0 }
 0x7a7   : > { %8150 = vst [vmem:[%s10812_s23 + $0x300] sm:$0xff] %v6543_v37  ;;  %v6545_v53 = vpop.f32.mrb[117].mxu1  ;;  %8242 = vst [vmem:[%s10812_s23 + $0x500] sm:$0xff] %v6857_v54  ;;  %v6859_v39 = vpop.f32.mrb[97].mxu0 }
 0x7a8   : > { %8151 = vst [vmem:[%s10812_s23 + $0x308] sm:$0xff] %v6545_v53  ;;  %8243 = vst [vmem:[%s10812_s23 + $0x508] sm:$0xff] %v6859_v39 }
 0x7aa   : > { %v6549_v52 = vpop.f32.mrb[118].mxu1  ;;  %v6863_v7 = vpop.f32.mrb[98].mxu0 }
 0x7ab   : > { %8152 = vst [vmem:[%s10812_s23 + $0x310] sm:$0xff] %v6549_v52  ;;  %v6551_v44 = vpop.f32.mrb[119].mxu1  ;;  %8244 = vst [vmem:[%s10812_s23 + $0x510] sm:$0xff] %v6863_v7  ;;  %v6865_v57 = vpop.f32.mrb[99].mxu0 }
 0x7ac   : > { %8153 = vst [vmem:[%s10812_s23 + $0x318] sm:$0xff] %v6551_v44  ;;  %8245 = vst [vmem:[%s10812_s23 + $0x518] sm:$0xff] %v6865_v57 }
 0x7ae   : > { %v6555_v8 = vpop.f32.mrb[120].mxu1  ;;  %v6869_v49 = vpop.f32.mrb[100].mxu0 }
 0x7af   : > { %8154 = vst [vmem:[%s10812_s23 + $0x320] sm:$0xff] %v6555_v8  ;;  %v6557_v10 = vpop.f32.mrb[121].mxu1  ;;  %8246 = vst [vmem:[%s10812_s23 + $0x520] sm:$0xff] %v6869_v49  ;;  %v6871_v55 = vpop.f32.mrb[101].mxu0 }
 0x7b0   : > { %8155 = vst [vmem:[%s10812_s23 + $0x328] sm:$0xff] %v6557_v10  ;;  %8247 = vst [vmem:[%s10812_s23 + $0x528] sm:$0xff] %v6871_v55 }
 0x7b2   : > { %v6561_v28 = vpop.f32.mrb[122].mxu1  ;;  %v6875_v62 = vpop.f32.mrb[102].mxu0 }
 0x7b3   : > { %8156 = vst [vmem:[%s10812_s23 + $0x330] sm:$0xff] %v6561_v28  ;;  %v6563_v12 = vpop.f32.mrb[123].mxu1  ;;  %8248 = vst [vmem:[%s10812_s23 + $0x530] sm:$0xff] %v6875_v62  ;;  %v6877_v60 = vpop.f32.mrb[103].mxu0 }
 0x7b4   : > { %8157 = vst [vmem:[%s10812_s23 + $0x338] sm:$0xff] %v6563_v12  ;;  %8249 = vst [vmem:[%s10812_s23 + $0x538] sm:$0xff] %v6877_v60 }
 0x7b6   : > { %v6567_v13 = vpop.f32.mrb[124].mxu1 }
 0x7b7   : > { %8158 = vst [vmem:[%s10812_s23 + $0x340] sm:$0xff] %v6567_v13  ;;  %v6569_v50 = vpop.f32.mrb[125].mxu1 }
 0x7b8   : > { %8159 = vst [vmem:[%s10812_s23 + $0x348] sm:$0xff] %v6569_v50 }
 0x7ba   : > { %v6573_v14 = vpop.f32.mrb[126].mxu1 }
 0x7bb   : > { %8160 = vst [vmem:[%s10812_s23 + $0x350] sm:$0xff] %v6573_v14  ;;  %v6575_v15 = vpop.f32.mrb[127].mxu1 }
 0x7bc   : > { %8161 = vst [vmem:[%s10812_s23 + $0x358] sm:$0xff] %v6575_v15 }
 0x7be   : > { %v6579_v25 = vpop.f32.mrb[128].mxu1 }
 0x7bf   : > { %8162 = vst [vmem:[%s10812_s23 + $0x360] sm:$0xff] %v6579_v25  ;;  %v6581_v32 = vpop.f32.mrb[129].mxu1 }
 0x7c0   : > { %8163 = vst [vmem:[%s10812_s23 + $0x368] sm:$0xff] %v6581_v32 }
 0x7c2   : > { %v6585_v33 = vpop.f32.mrb[130].mxu1 }
 0x7c3   : > { %8164 = vst [vmem:[%s10812_s23 + $0x370] sm:$0xff] %v6585_v33  ;;  %v6587_v31 = vpop.f32.mrb[131].mxu1 }
 0x7c4   : > { %8165 = vst [vmem:[%s10812_s23 + $0x378] sm:$0xff] %v6587_v31 }
 0x7c6   : > { %v7003_v29 = vpop.f32.mrb[132].mxu1 }
 0x7c7   : > { %8278 = vst [vmem:[%s10812_s23 + $0x540] sm:$0xff] %v7003_v29  ;;  %v7005_v16 = vpop.f32.mrb[133].mxu1 }
 0x7c8   : > { %8279 = vst [vmem:[%s10812_s23 + $0x548] sm:$0xff] %v7005_v16 }
 0x7ca   : > { %v7009_v34 = vpop.f32.mrb[134].mxu1 }
 0x7cb   : > { %8280 = vst [vmem:[%s10812_s23 + $0x550] sm:$0xff] %v7009_v34  ;;  %v7011_v9 = vpop.f32.mrb[135].mxu1 }
 0x7cc   : > { %8281 = vst [vmem:[%s10812_s23 + $0x558] sm:$0xff] %v7011_v9 }
 0x7ce   : > { %v7015_v36 = vpop.f32.mrb[136].mxu1 }
 0x7cf   : > { %8282 = vst [vmem:[%s10812_s23 + $0x560] sm:$0xff] %v7015_v36  ;;  %v7017_v26 = vpop.f32.mrb[137].mxu1 }
 0x7d0   : > { %8283 = vst [vmem:[%s10812_s23 + $0x568] sm:$0xff] %v7017_v26 }
 0x7d2   : > { %v7021_v45 = vpop.f32.mrb[138].mxu1 }
 0x7d3   : > { %8284 = vst [vmem:[%s10812_s23 + $0x570] sm:$0xff] %v7021_v45  ;;  %v7023_v18 = vpop.f32.mrb[139].mxu1 }
 0x7d4   : > { %8285 = vst [vmem:[%s10812_s23 + $0x578] sm:$0xff] %v7023_v18 }
 0x7d6   : > { %v7027_v19 = vpop.f32.mrb[140].mxu1 }
 0x7d7   : > { %8286 = vst [vmem:[%s10812_s23 + $0x580] sm:$0xff] %v7027_v19  ;;  %v7029_v22 = vpop.f32.mrb[141].mxu1 }
 0x7d8   : > { %8287 = vst [vmem:[%s10812_s23 + $0x588] sm:$0xff] %v7029_v22 }
 0x7da   : > { %v7033_v20 = vpop.f32.mrb[142].mxu1 }
 0x7db   : > { %8288 = vst [vmem:[%s10812_s23 + $0x590] sm:$0xff] %v7033_v20  ;;  %v7035_v41 = vpop.f32.mrb[143].mxu1 }
 0x7dc   : > { %8289 = vst [vmem:[%s10812_s23 + $0x598] sm:$0xff] %v7035_v41 }
 0x7de   : > { %v7039_v21 = vpop.f32.mrb[144].mxu1 }
 0x7df   : > { %8290 = vst [vmem:[%s10812_s23 + $0x5a0] sm:$0xff] %v7039_v21  ;;  %v7041_v40 = vpop.f32.mrb[145].mxu1 }
 0x7e0   : > { %8291 = vst [vmem:[%s10812_s23 + $0x5a8] sm:$0xff] %v7041_v40 }
 0x7e2   : > { %v7045_v35 = vpop.f32.mrb[146].mxu1 }
 0x7e3   : > { %8292 = vst [vmem:[%s10812_s23 + $0x5b0] sm:$0xff] %v7045_v35  ;;  %v7047_v2 = vpop.f32.mrb[147].mxu1 }
 0x7e4   : > { %8293 = vst [vmem:[%s10812_s23 + $0x5b8] sm:$0xff] %v7047_v2 }
 0x7e6   : > { %v7051_v56 = vpop.f32.mrb[148].mxu1 }
 0x7e7   : > { %8294 = vst [vmem:[%s10812_s23 + $0x5c0] sm:$0xff] %v7051_v56  ;;  %v7053_v4 = vpop.f32.mrb[149].mxu1 }
 0x7e8   : > { %8295 = vst [vmem:[%s10812_s23 + $0x5c8] sm:$0xff] %v7053_v4 }
 0x7ea   : > { %v7057_v6 = vpop.f32.mrb[150].mxu1 }
 0x7eb   : > { %8296 = vst [vmem:[%s10812_s23 + $0x5d0] sm:$0xff] %v7057_v6  ;;  %v7059_v43 = vpop.f32.mrb[151].mxu1 }
 0x7ec   : > { %8297 = vst [vmem:[%s10812_s23 + $0x5d8] sm:$0xff] %v7059_v43 }
 0x7ee   : > { %v7063_v42 = vpop.f32.mrb[152].mxu1 }
 0x7ef   : > { %8298 = vst [vmem:[%s10812_s23 + $0x5e0] sm:$0xff] %v7063_v42  ;;  %v7065_v5 = vpop.f32.mrb[153].mxu1 }
 0x7f0   : > { %8299 = vst [vmem:[%s10812_s23 + $0x5e8] sm:$0xff] %v7065_v5 }
 0x7f2   : > { %v7069_v11 = vpop.f32.mrb[154].mxu1 }
 0x7f3   : > { %8300 = vst [vmem:[%s10812_s23 + $0x5f0] sm:$0xff] %v7069_v11  ;;  %v7071_v17 = vpop.f32.mrb[155].mxu1 }
 0x7f4   : > { %8301 = vst [vmem:[%s10812_s23 + $0x5f8] sm:$0xff] %v7071_v17 }
 0x7f6   : > { %v7075_v61 = vpop.f32.mrb[156].mxu1 }
 0x7f7   : > { %8302 = vst [vmem:[%s10812_s23 + $0x600] sm:$0xff] %v7075_v61  ;;  %v7077_v46 = vpop.f32.mrb[157].mxu1 }
 0x7f8   : > { %8303 = vst [vmem:[%s10812_s23 + $0x608] sm:$0xff] %v7077_v46 }
 0x7fa   : > { %v7081_v27 = vpop.f32.mrb[158].mxu1 }
 0x7fb   : > { %8304 = vst [vmem:[%s10812_s23 + $0x610] sm:$0xff] %v7081_v27  ;;  %v7083_v30 = vpop.f32.mrb[159].mxu1 }
 0x7fc   : > { %8305 = vst [vmem:[%s10812_s23 + $0x618] sm:$0xff] %v7083_v30 }
 0x7fe   : > { %v7087_v38 = vpop.f32.mrb[160].mxu1 }
 0x7ff   : > { %8306 = vst [vmem:[%s10812_s23 + $0x620] sm:$0xff] %v7087_v38  ;;  %v7089_v47 = vpop.f32.mrb[161].mxu1 }
 0x800   : > { %8307 = vst [vmem:[%s10812_s23 + $0x628] sm:$0xff] %v7089_v47 }
 0x802   : > { %v7093_v58 = vpop.f32.mrb[162].mxu1 }
 0x803   : > { %8308 = vst [vmem:[%s10812_s23 + $0x630] sm:$0xff] %v7093_v58  ;;  %v7095_v23 = vpop.f32.mrb[163].mxu1 }
 0x804   : > { %8309 = vst [vmem:[%s10812_s23 + $0x638] sm:$0xff] %v7095_v23 }
 0x806   : > { %v7099_v59 = vpop.f32.mrb[164].mxu1 }
 0x807   : > { %8310 = vst [vmem:[%s10812_s23 + $0x640] sm:$0xff] %v7099_v59  ;;  %v7101_v63 = vpop.f32.mrb[165].mxu1 }
 0x808   : > { %8311 = vst [vmem:[%s10812_s23 + $0x648] sm:$0xff] %v7101_v63 }
 0x80a   : > { %v7105_v3 = vpop.f32.mrb[166].mxu1 }
 0x80b   : > { %8312 = vst [vmem:[%s10812_s23 + $0x650] sm:$0xff] %v7105_v3  ;;  %v7107_v1 = vpop.f32.mrb[167].mxu1 }
 0x80c   : > { %8313 = vst [vmem:[%s10812_s23 + $0x658] sm:$0xff] %v7107_v1 }
 0x80e   : > { %v7111_v0 = vpop.f32.mrb[168].mxu1 }
 0x80f   : > { %8314 = vst [vmem:[%s10812_s23 + $0x660] sm:$0xff] %v7111_v0  ;;  %v7113_v24 = vpop.f32.mrb[169].mxu1 }
 0x810   : > { %8315 = vst [vmem:[%s10812_s23 + $0x668] sm:$0xff] %v7113_v24 }
 0x812   : > { %v7117_v51 = vpop.f32.mrb[170].mxu1 }
 0x813   : > { %8316 = vst [vmem:[%s10812_s23 + $0x670] sm:$0xff] %v7117_v51  ;;  %v7119_v48 = vpop.f32.mrb[171].mxu1 }
 0x814   : > { %8317 = vst [vmem:[%s10812_s23 + $0x678] sm:$0xff] %v7119_v48 }
 0x816   : > { %v7123_v37 = vpop.f32.mrb[172].mxu1 }
 0x817   : > { %8318 = vst [vmem:[%s10812_s23 + $0x680] sm:$0xff] %v7123_v37  ;;  %v7125_v54 = vpop.f32.mrb[173].mxu1 }
 0x818   : > { %8319 = vst [vmem:[%s10812_s23 + $0x688] sm:$0xff] %v7125_v54 }
 0x81a   : > { %v7129_v53 = vpop.f32.mrb[174].mxu1 }
 0x81b   : > { %8320 = vst [vmem:[%s10812_s23 + $0x690] sm:$0xff] %v7129_v53  ;;  %v7131_v39 = vpop.f32.mrb[175].mxu1 }
 0x81c   : > { %8321 = vst [vmem:[%s10812_s23 + $0x698] sm:$0xff] %v7131_v39 }
 0x81e   : > { %v7135_v52 = vpop.f32.mrb[176].mxu1 }
 0x81f   : > { %8322 = vst [vmem:[%s10812_s23 + $0x6a0] sm:$0xff] %v7135_v52  ;;  %v7137_v7 = vpop.f32.mrb[177].mxu1 }
 0x820   : > { %8323 = vst [vmem:[%s10812_s23 + $0x6a8] sm:$0xff] %v7137_v7 }
 0x822   : > { %v7141_v44 = vpop.f32.mrb[178].mxu1 }
 0x823   : > { %8324 = vst [vmem:[%s10812_s23 + $0x6b0] sm:$0xff] %v7141_v44  ;;  %v7143_v57 = vpop.f32.mrb[179].mxu1 }
 0x824   : > { %8325 = vst [vmem:[%s10812_s23 + $0x6b8] sm:$0xff] %v7143_v57 }
 0x826   : > { %v7147_v8 = vpop.f32.mrb[180].mxu1 }
 0x827   : > { %8326 = vst [vmem:[%s10812_s23 + $0x6c0] sm:$0xff] %v7147_v8  ;;  %v7149_v49 = vpop.f32.mrb[181].mxu1 }
 0x828   : > { %8327 = vst [vmem:[%s10812_s23 + $0x6c8] sm:$0xff] %v7149_v49 }
 0x82a   : > { %v7153_v10 = vpop.f32.mrb[182].mxu1 }
 0x82b   : > { %8328 = vst [vmem:[%s10812_s23 + $0x6d0] sm:$0xff] %v7153_v10  ;;  %v7155_v55 = vpop.f32.mrb[183].mxu1 }
 0x82c   : > { %8329 = vst [vmem:[%s10812_s23 + $0x6d8] sm:$0xff] %v7155_v55 }
 0x82e   : > { %v7159_v28 = vpop.f32.mrb[184].mxu1 }
 0x82f   : > { %8330 = vst [vmem:[%s10812_s23 + $0x6e0] sm:$0xff] %v7159_v28  ;;  %v7161_v62 = vpop.f32.mrb[185].mxu1 }
 0x830   : > { %8331 = vst [vmem:[%s10812_s23 + $0x6e8] sm:$0xff] %v7161_v62 }
 0x832   : > { %v7165_v12 = vpop.f32.mrb[186].mxu1 }
 0x833   : > { %8332 = vst [vmem:[%s10812_s23 + $0x6f0] sm:$0xff] %v7165_v12  ;;  %v7167_v60 = vpop.f32.mrb[187].mxu1 }
 0x834   : > { %8333 = vst [vmem:[%s10812_s23 + $0x6f8] sm:$0xff] %v7167_v60 }
 0x835   : > { %9805 = shalt.err (!%p9802_p4)
}
 0x836   : > { %s9806_s9 = scalar_lea.hbm %s11097_s11, 28672  ;;  %s9810_s14 = scalar_lea.hbm %s11150_s5, 57344 }
 0x837   : > { %p9807_p9 = scmp.ne.s32.totalorder %s11097_s11, %s9806_s9  ;;  %p9811_p8 = scmp.lt.u32.totalorder %s11097_s11, %s11150_s5 }
 0x838   : > { %p9812_p13 = scmp.lt.u32.totalorder %s9810_s14, %s9806_s9  ;;  %p9814_p10 = scmp.lt.u32.totalorder %s9806_s9, %s11097_s11 }
 0x839   : > { %p9808_p0 = pnand %p9807_p9, %p10056_p5 }
 0x83a   : > { %p9813_p6 = por %p9812_p13, %p9811_p8 }
 0x83b   : > { %p9809_p11 = pneg %p9808_p0 }
 0x83c   : > { %p9815_p3 = por %p9814_p10, %p9813_p6 }
 0x83e   : > { %p9816_p7 = pnand %p9815_p3, %p9809_p11 }
 0x840   : > { %9819 = shalt.err (!%p9816_p7)
}
 0x841   : > { %s9882_s8 = smov 256   ;;  %s9883_s24 = smov 16  }
 0x842   : > { %8596 = dma.vmem_to_hbm [thread:$0]  (%p10056_p5), %s11099_s27, 28672, %s11097_s11, %s7228_s22, %s9882_s8, %s9882_s8, %s9883_s24  }
 0x843 PF: > { %s7257_s26 = sand.u32 1, %s9854_s18   ;;  %p11168_p12 = scmp.ne.s32.totalorder %s11155_s25, 0 }
 0x844   : > { %p11169_p2 = scmp.ge.s32.totalorder %s9866_s21, 2  ;;  %s7258_s6 = scalar_lea.sflag [#allocation4], %s7257_s26 }
 0x846   : > { %p8613_p1 = pnand %p11169_p2, %p11168_p12 }
 0x848   : > { %9849 = dma.done.wait (!%p8613_p1), %s7258_s6, 28672  }
 0x849   : > { %9851 = vsyncadd (!%p8613_p1), %s7258_s6, 4294938624  ;;  %p20_p4 = scmp.ge.s32.totalorder %s10042_s16, 4   ;;  %s11170_s18 = smov %s9858_s19 }
 0x84a   : > { %s11171_s19 = smov %s9862_s20  ;;  %s11172_s20 = smov %s10052_s30 }
 0x84b   : > { %s11173_s21 = smov %s10042_s16  ;;  %22 = sbr.rel (!%p20_p4) target bundleno = 7 (0x7), region = 100 }
 0x852   :  { %7263 = vsyncpa [#allocation3], 1 }
 0x853   :  { %7265 = vsyncpa [#allocation3 + $0x1], 1 }
 0x854   :  { %7266 = vsyncpa [#allocation6], 1 }
 0x855   :  { %7267 = vsyncpa [#allocation9], 1 }
 0x856   :  { %7268 = vsyncpa [#allocation4], 1 }
 0x857   :  { %7270 = vsyncpa [#allocation4 + $0x1], 1 }

</bundles_post_ra>
